<compile_context>
chip_gen: v7x
topology: tpu7x:2x2x1
jax: 0.10.0
libtpu: 0.0.40
codegen_flags: <defaults>
</compile_context>

<pallas_src>
import jax
import jax.numpy as jnp
from jax.experimental import pallas as pl
from jax.experimental.pallas import tpu as pltpu

NUM_CAPS = 2
CAPS_DIM = 16
IMAGE_SIZE = 16            # module default is 64; small test size here
H1, H2, H3 = 512, 1024, 2048
IN_DIM = NUM_CAPS * CAPS_DIM
OUT_DIM = IMAGE_SIZE * IMAGE_SIZE

TK = 512                   # tile of the H3 (=2048) axis -> 4 grid steps
assert H3 % TK == 0


def decoder_mlp_kernel(h_ref, w1_ref, b1_ref, w2_ref, b2_ref,
                       w3_ref, b3_ref, w4_ref, b4_ref,
                       out_ref, h2_scratch, acc_scratch):
    k = pl.program_id(0)

    # Layers 1 & 2 (small, weights resident) run once; stash h2 + zero the acc.
    @pl.when(k == 0)
    def _():
        h0 = h_ref[...].astype(jnp.bfloat16)                       # [Bp, 32]
        h1 = jnp.dot(h0, w1_ref[...], preferred_element_type=jnp.float32)
        h1 = jnp.maximum(h1 + b1_ref[...], 0.0)                    # [Bp, 512]
        h2 = jnp.dot(h1.astype(jnp.bfloat16), w2_ref[...],
                     preferred_element_type=jnp.float32)
        h2_scratch[...] = jnp.maximum(h2 + b2_ref[...], 0.0)       # [Bp, 1024]
        acc_scratch[...] = jnp.zeros_like(acc_scratch)

    # Per-step: one 512-wide column slab of layer 3 and the matching row slab
    # of layer 4, accumulating the layer-4 partial product in f32.
    h3 = jnp.dot(h2_scratch[...].astype(jnp.bfloat16), w3_ref[...],
                 preferred_element_type=jnp.float32)
    h3 = jnp.maximum(h3 + b3_ref[...], 0.0)                        # [Bp, TK]
    acc_scratch[...] += jnp.dot(h3.astype(jnp.bfloat16), w4_ref[...],
                                preferred_element_type=jnp.float32)

    @pl.when(k == pl.num_programs(0) - 1)
    def _():
        out_ref[...] = jax.nn.sigmoid(acc_scratch[...] + b4_ref[...])


@jax.jit
def decoder_forward(x, data, params):
    """x: [B, 2, 16, 1] float32. `data` is unused (matches the PyTorch forward)."""
    del data
    B = x.shape[0]
    w1, b1, w2, b2, w3, b3, w4, b4 = params

    # --- capsule selection / masking (tiny; plain XLA) -----------------------
    # argmax(softmax(sqrt(sum(x^2)))) == argmax(sum(x^2)); ties -> class 0.
    sq_len = jnp.sum(jnp.square(x), axis=2)[:, :, 0]               # [B, 2]
    idx = jnp.argmax(sq_len, axis=1)                               # [B]
    masked = jnp.eye(NUM_CAPS, dtype=jnp.float32)[idx]             # [B, 2]
    h = (x * masked[:, :, None, None]).reshape(B, IN_DIM).astype(jnp.float32)

    # Pad LHS rows to a full sublane group.
    b_pad = max(8, ((B + 7) // 8) * 8)
    h = jnp.pad(h, ((0, b_pad - B), (0, 0)))

    # Weights travel HBM->VMEM as bf16 (half the bytes); accumulate in f32.
    w1b, w2b, w3b, w4b = (w.astype(jnp.bfloat16) for w in (w1, w2, w3, w4))

    resident = lambda k: (0, 0)
    grid_spec = pltpu.PrefetchScalarGridSpec(
        num_scalar_prefetch=0,
        grid=(H3 // TK,),
        in_specs=[
            pl.BlockSpec((b_pad, IN_DIM), resident),        # h
            pl.BlockSpec((IN_DIM, H1), resident),           # w1
            pl.BlockSpec((1, H1), resident),                # b1
            pl.BlockSpec((H1, H2), resident),               # w2
            pl.BlockSpec((1, H2), resident),                # b2
            pl.BlockSpec((H2, TK), lambda k: (0, k)),       # w3 column tile
            pl.BlockSpec((1, TK), lambda k: (0, k)),        # b3 tile
            pl.BlockSpec((TK, OUT_DIM), lambda k: (k, 0)),  # w4 row tile
            pl.BlockSpec((1, OUT_DIM), resident),           # b4
        ],
        out_specs=pl.BlockSpec((b_pad, OUT_DIM), resident),
        scratch_shapes=[
            pltpu.VMEM((b_pad, H2), jnp.float32),           # h2 (kept across steps)
            pltpu.VMEM((b_pad, OUT_DIM), jnp.float32),      # layer-4 accumulator
        ],
    )

    recon = pl.pallas_call(
        decoder_mlp_kernel,
        out_shape=jax.ShapeDtypeStruct((b_pad, OUT_DIM), jnp.float32),
        grid_spec=grid_spec,
        compiler_params=pltpu.CompilerParams(
            dimension_semantics=("arbitrary",),
            vmem_limit_bytes=32 * 1024 * 1024,              # fits v5e/v6e/v7x
        ),
    )(h, w1b, b1, w2b, b2, w3b, b3, w4b, b4)

    reconstructions = recon[:B].reshape(B, 1, IMAGE_SIZE, IMAGE_SIZE)
    return reconstructions, masked


def init_params(key):
    """Deterministic Linear params (PyTorch-style U(-1/sqrt(fan_in), +...)), f32."""
    sizes = [(IN_DIM, H1), (H1, H2), (H2, H3), (H3, OUT_DIM)]
    params = []
    for fan_in, fan_out in sizes:
        key, kw, kb = jax.random.split(key, 3)
        bound = 1.0 / float(fan_in) ** 0.5
        w = jax.random.uniform(kw, (fan_in, fan_out), jnp.float32, -bound, bound)
        b = jax.random.uniform(kb, (1, fan_out), jnp.float32, -bound, bound)
        params += [w, b]
    return tuple(params)


def decoder_reference(x, params):
    """Pure-JAX f32 reference mirroring the PyTorch forward."""
    B = x.shape[0]
    classes = jnp.sqrt(jnp.sum(x ** 2, axis=2))            # [B, 2, 1]
    classes = jax.nn.softmax(classes, axis=1)
    idx = jnp.argmax(classes, axis=1)[:, 0]                # [B]
    masked = jnp.eye(NUM_CAPS, dtype=jnp.float32)[idx]     # [B, 2]
    h = (x * masked[:, :, None, None]).reshape(B, -1)
    w1, b1, w2, b2, w3, b3, w4, b4 = params
    h = jax.nn.relu(h @ w1 + b1)
    h = jax.nn.relu(h @ w2 + b2)
    h = jax.nn.relu(h @ w3 + b3)
    rec = jax.nn.sigmoid(h @ w4 + b4)
    return rec.reshape(B, 1, IMAGE_SIZE, IMAGE_SIZE), masked


if __name__ == "__main__":
    key = jax.random.PRNGKey(0)
    key, kx, kd = jax.random.split(key, 3)

    B = 4
    x = jax.random.normal(kx, (B, NUM_CAPS, CAPS_DIM, 1), jnp.float32)
    data = jax.random.normal(kd, (B, 1, IMAGE_SIZE, IMAGE_SIZE), jnp.float32)  # unused

    params = init_params(key)

    recon, masked = decoder_forward(x, data, params)
    recon = jax.block_until_ready(recon)
    masked = jax.block_until_ready(masked)

    ref_recon, ref_masked = decoder_reference(x, params)
    assert recon.shape == (B, 1, IMAGE_SIZE, IMAGE_SIZE)
    assert masked.shape == (B, NUM_CAPS)
    # bf16 weights in the kernel vs f32 reference -> loose tolerance on recon.
    assert jnp.allclose(recon, ref_recon, atol=2e-2, rtol=0.0), (
        float(jnp.max(jnp.abs(recon - ref_recon))))
    assert jnp.allclose(masked, ref_masked, atol=0.0)

    print("KERNEL_OK")
</pallas_src>

<mosaic_0001>
module attributes {stable_mosaic.version = 11 : i64} {
  func.func @decoder_mlp_kernel(%arg0: i32, %arg1: memref<8x32xf32, #tpu.memory_space<vmem>>, %arg2: memref<32x512xbf16, #tpu.memory_space<vmem>>, %arg3: memref<1x512xf32, #tpu.memory_space<vmem>>, %arg4: memref<512x1024xbf16, #tpu.memory_space<vmem>>, %arg5: memref<1x1024xf32, #tpu.memory_space<vmem>>, %arg6: memref<1024x512xbf16, #tpu.memory_space<vmem>>, %arg7: memref<1x512xf32, #tpu.memory_space<vmem>>, %arg8: memref<512x256xbf16, #tpu.memory_space<vmem>>, %arg9: memref<1x256xf32, #tpu.memory_space<vmem>>, %arg10: memref<8x256xf32, #tpu.memory_space<vmem>>, %arg11: memref<8x1024xf32, #tpu.memory_space<vmem>>, %arg12: memref<8x256xf32, #tpu.memory_space<vmem>>) attributes {dimension_semantics = [#tpu.dimension_semantics<arbitrary>], iteration_bounds = array<i64: 4>, scalar_prefetch = 0 : i64, scratch_operands = 2 : i64, tpu.core_type = #tpu.core_type<tc>, window_params = [{pipeline_mode = #tpu.pipeline_mode<synchronous>, transform_indices = @transform_0, window_bounds = array<i64: 8, 32>}, {pipeline_mode = #tpu.pipeline_mode<synchronous>, transform_indices = @transform_1, window_bounds = array<i64: 32, 512>}, {pipeline_mode = #tpu.pipeline_mode<synchronous>, transform_indices = @transform_2, window_bounds = array<i64: 1, 512>}, {pipeline_mode = #tpu.pipeline_mode<synchronous>, transform_indices = @transform_3, window_bounds = array<i64: 512, 1024>}, {pipeline_mode = #tpu.pipeline_mode<synchronous>, transform_indices = @transform_4, window_bounds = array<i64: 1, 1024>}, {transform_indices = @transform_5, window_bounds = array<i64: 1024, 512>}, {transform_indices = @transform_6, window_bounds = array<i64: 1, 512>}, {transform_indices = @transform_7, window_bounds = array<i64: 512, 256>}, {pipeline_mode = #tpu.pipeline_mode<synchronous>, transform_indices = @transform_8, window_bounds = array<i64: 1, 256>}, {pipeline_mode = #tpu.pipeline_mode<synchronous>, transform_indices = @transform_9, window_bounds = array<i64: 8, 256>}]} {
    %c0_i32 = arith.constant 0 : i32
    %0 = arith.cmpi eq, %arg0, %c0_i32 : i32
    %1 = arith.extui %0 : i1 to i32
    %c0_i32_0 = arith.constant 0 : i32
    %2 = arith.cmpi ne, %1, %c0_i32_0 : i32
    scf.if %2 {
      %c0_15 = arith.constant 0 : index
      %c0_16 = arith.constant 0 : index
      %21 = vector.load %arg1[%c0_15, %c0_16] : memref<8x32xf32, #tpu.memory_space<vmem>>, vector<8x32xf32>
      %22 = arith.truncf %21 : vector<8x32xf32> to vector<8x32xbf16>
      %c0_17 = arith.constant 0 : index
      %c0_18 = arith.constant 0 : index
      %23 = vector.load %arg2[%c0_17, %c0_18] : memref<32x512xbf16, #tpu.memory_space<vmem>>, vector<32x512xbf16>
      %cst_19 = arith.constant dense<0.000000e+00> : vector<8x512xf32>
      %24 = tpu.matmul %22, %23, %cst_19 {dimension_numbers = #tpu.dot_dimension_numbers<[1], [0], [0], [1], [0, 0, 1, 1], [], []>} : vector<8x32xbf16>, vector<32x512xbf16>, vector<8x512xf32> -> vector<8x512xf32>
      %c0_20 = arith.constant 0 : index
      %c0_21 = arith.constant 0 : index
      %25 = vector.load %arg3[%c0_20, %c0_21] : memref<1x512xf32, #tpu.memory_space<vmem>>, vector<1x512xf32>
      %26 = vector.broadcast %25 : vector<1x512xf32> to vector<8x512xf32>
      %27 = arith.addf %24, %26 : vector<8x512xf32>
      %cst_22 = arith.constant 0.000000e+00 : f32
      %28 = vector.broadcast %cst_22 : f32 to vector<8x512xf32>
      %29 = arith.maximumf %27, %28 : vector<8x512xf32>
      %30 = arith.truncf %29 : vector<8x512xf32> to vector<8x512xbf16>
      %c0_23 = arith.constant 0 : index
      %c0_24 = arith.constant 0 : index
      %31 = vector.load %arg4[%c0_23, %c0_24] : memref<512x1024xbf16, #tpu.memory_space<vmem>>, vector<512x1024xbf16>
      %cst_25 = arith.constant dense<0.000000e+00> : vector<8x1024xf32>
      %32 = tpu.matmul %30, %31, %cst_25 {dimension_numbers = #tpu.dot_dimension_numbers<[1], [0], [0], [1], [0, 0, 1, 1], [], []>} : vector<8x512xbf16>, vector<512x1024xbf16>, vector<8x1024xf32> -> vector<8x1024xf32>
      %c0_26 = arith.constant 0 : index
      %c0_27 = arith.constant 0 : index
      %33 = vector.load %arg5[%c0_26, %c0_27] : memref<1x1024xf32, #tpu.memory_space<vmem>>, vector<1x1024xf32>
      %34 = vector.broadcast %33 : vector<1x1024xf32> to vector<8x1024xf32>
      %35 = arith.addf %32, %34 : vector<8x1024xf32>
      %cst_28 = arith.constant 0.000000e+00 : f32
      %36 = vector.broadcast %cst_28 : f32 to vector<8x1024xf32>
      %37 = arith.maximumf %35, %36 : vector<8x1024xf32>
      %c0_29 = arith.constant 0 : index
      %c0_30 = arith.constant 0 : index
      %38 = vector.load %arg11[%c0_29, %c0_30] : memref<8x1024xf32, #tpu.memory_space<vmem>>, vector<8x1024xf32>
      tpu.vector_store %arg11[%c0_29, %c0_30], %37 {strides = array<i32>} : memref<8x1024xf32, #tpu.memory_space<vmem>>, vector<8x1024xf32>,
      %cst_31 = arith.constant 0.000000e+00 : f32
      %39 = vector.broadcast %cst_31 : f32 to vector<8x256xf32>
      %c0_32 = arith.constant 0 : index
      %c0_33 = arith.constant 0 : index
      %40 = vector.load %arg12[%c0_32, %c0_33] : memref<8x256xf32, #tpu.memory_space<vmem>>, vector<8x256xf32>
      tpu.vector_store %arg12[%c0_32, %c0_33], %39 {strides = array<i32>} : memref<8x256xf32, #tpu.memory_space<vmem>>, vector<8x256xf32>,
    } else {
    }
    %c0 = arith.constant 0 : index
    %c0_1 = arith.constant 0 : index
    %3 = vector.load %arg11[%c0, %c0_1] : memref<8x1024xf32, #tpu.memory_space<vmem>>, vector<8x1024xf32>
    %4 = arith.truncf %3 : vector<8x1024xf32> to vector<8x1024xbf16>
    %c0_2 = arith.constant 0 : index
    %c0_3 = arith.constant 0 : index
    %5 = vector.load %arg6[%c0_2, %c0_3] : memref<1024x512xbf16, #tpu.memory_space<vmem>>, vector<1024x512xbf16>
    %cst = arith.constant dense<0.000000e+00> : vector<8x512xf32>
    %6 = tpu.matmul %4, %5, %cst {dimension_numbers = #tpu.dot_dimension_numbers<[1], [0], [0], [1], [0, 0, 1, 1], [], []>} : vector<8x1024xbf16>, vector<1024x512xbf16>, vector<8x512xf32> -> vector<8x512xf32>
    %c0_4 = arith.constant 0 : index
    %c0_5 = arith.constant 0 : index
    %7 = vector.load %arg7[%c0_4, %c0_5] : memref<1x512xf32, #tpu.memory_space<vmem>>, vector<1x512xf32>
    %8 = vector.broadcast %7 : vector<1x512xf32> to vector<8x512xf32>
    %9 = arith.addf %6, %8 : vector<8x512xf32>
    %cst_6 = arith.constant 0.000000e+00 : f32
    %10 = vector.broadcast %cst_6 : f32 to vector<8x512xf32>
    %11 = arith.maximumf %9, %10 : vector<8x512xf32>
    %c0_7 = arith.constant 0 : index
    %c0_8 = arith.constant 0 : index
    %12 = vector.load %arg12[%c0_7, %c0_8] : memref<8x256xf32, #tpu.memory_space<vmem>>, vector<8x256xf32>
    %13 = arith.truncf %11 : vector<8x512xf32> to vector<8x512xbf16>
    %c0_9 = arith.constant 0 : index
    %c0_10 = arith.constant 0 : index
    %14 = vector.load %arg8[%c0_9, %c0_10] : memref<512x256xbf16, #tpu.memory_space<vmem>>, vector<512x256xbf16>
    %cst_11 = arith.constant dense<0.000000e+00> : vector<8x256xf32>
    %15 = tpu.matmul %13, %14, %cst_11 {dimension_numbers = #tpu.dot_dimension_numbers<[1], [0], [0], [1], [0, 0, 1, 1], [], []>} : vector<8x512xbf16>, vector<512x256xbf16>, vector<8x256xf32> -> vector<8x256xf32>
    %16 = arith.addf %12, %15 : vector<8x256xf32>
    %c0_12 = arith.constant 0 : index
    %c0_13 = arith.constant 0 : index
    %17 = vector.load %arg12[%c0_12, %c0_13] : memref<8x256xf32, #tpu.memory_space<vmem>>, vector<8x256xf32>
    tpu.vector_store %arg12[%c0_12, %c0_13], %16 {strides = array<i32>} : memref<8x256xf32, #tpu.memory_space<vmem>>, vector<8x256xf32>,
    %c3_i32 = arith.constant 3 : i32
    %18 = arith.cmpi eq, %arg0, %c3_i32 : i32
    %19 = arith.extui %18 : i1 to i32
    %c0_i32_14 = arith.constant 0 : i32
    %20 = arith.cmpi ne, %19, %c0_i32_14 : i32
    scf.if %20 {
      %c0_15 = arith.constant 0 : index
      %c0_16 = arith.constant 0 : index
      %21 = vector.load %arg12[%c0_15, %c0_16] : memref<8x256xf32, #tpu.memory_space<vmem>>, vector<8x256xf32>
      %c0_17 = arith.constant 0 : index
      %c0_18 = arith.constant 0 : index
      %22 = vector.load %arg9[%c0_17, %c0_18] : memref<1x256xf32, #tpu.memory_space<vmem>>, vector<1x256xf32>
      %23 = vector.broadcast %22 : vector<1x256xf32> to vector<8x256xf32>
      %24 = arith.addf %21, %23 : vector<8x256xf32>
      %25 = arith.negf %24 : vector<8x256xf32>
      %26 = math.exp %25 : vector<8x256xf32>
      %cst_19 = arith.constant 1.000000e+00 : f32
      %27 = vector.broadcast %cst_19 : f32 to vector<8x256xf32>
      %28 = arith.addf %27, %26 : vector<8x256xf32>
      %29 = arith.divf %27, %28 : vector<8x256xf32>
      %c0_20 = arith.constant 0 : index
      %c0_21 = arith.constant 0 : index
      %30 = vector.load %arg10[%c0_20, %c0_21] : memref<8x256xf32, #tpu.memory_space<vmem>>, vector<8x256xf32>
      tpu.vector_store %arg10[%c0_20, %c0_21], %29 {strides = array<i32>} : memref<8x256xf32, #tpu.memory_space<vmem>>, vector<8x256xf32>,
    } else {
    }
    return
  }
  func.func @transform_0(%arg0: i32) -> (i32, i32) {
    %c0_i32 = arith.constant 0 : i32
    %c0_i32_0 = arith.constant 0 : i32
    %c0_i32_1 = arith.constant 0 : i32
    return %c0_i32, %c0_i32_0 : i32, i32
  }
  func.func @transform_1(%arg0: i32) -> (i32, i32) {
    %c0_i32 = arith.constant 0 : i32
    %c0_i32_0 = arith.constant 0 : i32
    %c0_i32_1 = arith.constant 0 : i32
    return %c0_i32, %c0_i32_0 : i32, i32
  }
  func.func @transform_2(%arg0: i32) -> (i32, i32) {
    %c0_i32 = arith.constant 0 : i32
    %c0_i32_0 = arith.constant 0 : i32
    %c0_i32_1 = arith.constant 0 : i32
    return %c0_i32, %c0_i32_0 : i32, i32
  }
  func.func @transform_3(%arg0: i32) -> (i32, i32) {
    %c0_i32 = arith.constant 0 : i32
    %c0_i32_0 = arith.constant 0 : i32
    %c0_i32_1 = arith.constant 0 : i32
    return %c0_i32, %c0_i32_0 : i32, i32
  }
  func.func @transform_4(%arg0: i32) -> (i32, i32) {
    %c0_i32 = arith.constant 0 : i32
    %c0_i32_0 = arith.constant 0 : i32
    %c0_i32_1 = arith.constant 0 : i32
    return %c0_i32, %c0_i32_0 : i32, i32
  }
  func.func @transform_5(%arg0: i32) -> (i32, i32) {
    %c0_i32 = arith.constant 0 : i32
    %c0_i32_0 = arith.constant 0 : i32
    return %c0_i32, %arg0 : i32, i32
  }
  func.func @transform_6(%arg0: i32) -> (i32, i32) {
    %c0_i32 = arith.constant 0 : i32
    %c0_i32_0 = arith.constant 0 : i32
    return %c0_i32, %arg0 : i32, i32
  }
  func.func @transform_7(%arg0: i32) -> (i32, i32) {
    %c0_i32 = arith.constant 0 : i32
    %c0_i32_0 = arith.constant 0 : i32
    return %arg0, %c0_i32 : i32, i32
  }
  func.func @transform_8(%arg0: i32) -> (i32, i32) {
    %c0_i32 = arith.constant 0 : i32
    %c0_i32_0 = arith.constant 0 : i32
    %c0_i32_1 = arith.constant 0 : i32
    return %c0_i32, %c0_i32_0 : i32, i32
  }
  func.func @transform_9(%arg0: i32) -> (i32, i32) {
    %c0_i32 = arith.constant 0 : i32
    %c0_i32_0 = arith.constant 0 : i32
    %c0_i32_1 = arith.constant 0 : i32
    return %c0_i32, %c0_i32_0 : i32, i32
  }
}

</mosaic_0001>

<bundles_post_ra>
// kernel: decoder_forward.1
= control target key start
LH: loop header
LB: loop body
LE: loop exit
PB: predicated region body
PF: predicated region fallthrough
CT: control target
= control target key end

     0   :  { %s6719_s30 = smov 0   ;;  %s6721_s10 = smov 0   ;;  %s8497_s0 = inlined_call_operand.vmem [shape: f32[8,32], index: 0, kind: input, shape index: {}]   ;;  %s8498_s1 = inlined_call_operand.vmem [shape: bf16[32,512], index: 1, kind: input, shape index: {}]   ;;  %s8499_s2 = inlined_call_operand.vmem [shape: f32[1,512], index: 2, kind: input, shape index: {}]   ;;  %s8500_s3 = inlined_call_operand.vmem [shape: bf16[512,1024], index: 3, kind: input, shape index: {}]   ;;  %s8501_s4 = inlined_call_operand.vmem [shape: f32[1,1024], index: 4, kind: input, shape index: {}]   ;;  %s8502_s5 = inlined_call_operand.vmem [shape: bf16[1024,2048], index: 5, kind: input, shape index: {}]   ;;  %s8503_s6 = inlined_call_operand.vmem [shape: f32[1,2048], index: 6, kind: input, shape index: {}]   ;;  %s8504_s7 = inlined_call_operand.vmem [shape: bf16[2048,256], index: 7, kind: input, shape index: {}]   ;;  %s8505_s8 = inlined_call_operand.vmem [shape: f32[1,256], index: 8, kind: input, shape index: {}]   ;;  %s8506_s9 = inlined_call_operand.vmem [shape: f32[8,256], index: 9, kind: output, shape index: {}]  }
   0x1   :  { %s6723_s11 = smov 0  }
   0x2 LB: > { %s6735_s12 = sadd.s32 4294967295, %s6665_s11   ;;  %s6738_s13 = sadd.s32 1, %s6665_s11   ;;  %s6665_s11 = sphi %s6723_s11, %s8509_s11   ;;  %s6661_s10 = sphi %s6721_s10, %s8508_s10   ;;  %s6657_s30 = sphi %s6719_s30, %s8507_s30  }
   0x3   : > { %s128_s14 = ssub.s32 %s6665_s11, %s6738_s13  ;;  %s131_s15 = sadd.s32 1, %s6661_s10 }
   0x4   : > { %p129_p0 = scmp.eq.s32.totalorder %s128_s14, 0  ;;  %p138_p1 = scmp.ne.s32.totalorder %s6661_s10, %s6657_s30 }
   0x5   : > { %p139_p2 = scmp.eq.s32.totalorder %s6665_s11, 0  ;;  %p5461_p4 = scmp.ge.s32.totalorder %s6665_s11, 4 }
   0x6   : > { %s6747_s16 = scalar_select %p129_p0, %s6661_s10, %s131_s15  }
   0x7   : > { %p140_p3 = por %p139_p2, %p138_p1  ;;  %276 = sbr.rel (%p5461_p4) target bundleno = 146 (0x92), region = 40 }
   0xe   : > { %279 = sbr.rel (!%p140_p3) target bundleno = 146 (0x92), region = 44  ;;  %s281_s17 = sand.u32 (%p140_p3), 1, %s6661_s10  }
   0xf   : > { %s6063_s18 = sshll.u32 (%p140_p3), %s6665_s11, 4  ;;  %s5462_s19 = sshll.u32 (%p140_p3), %s281_s17, 11 }
  0x10   : > { %s6755_s22 = scalar_lea.vmem (%p140_p3), %s8502_s5, %s6063_s18  ;;  %s6760_s23 = scalar_lea.vmem (%p140_p3), [#allocation4], %s5462_s19 }
  0x11   : > { %v299_v0 = vld [vmem:[%s6755_s22] sm:$0xff] (%p140_p3)  ;;  %v301_v1 = vld [vmem:[%s6755_s22 + $0x8] sm:$0xff] (%p140_p3) }
  0x12   : > { %v303_v2 = vld [vmem:[%s6755_s22 + $0x40] sm:$0xff] (%p140_p3)  ;;  %300 = vst [vmem:[%s6760_s23] sm:$0xff] (%p140_p3), %v299_v0  ;;  %302 = vst [vmem:[%s6760_s23 + $0x8] sm:$0xff] (%p140_p3), %v301_v1  ;;  %v305_v3 = vld [vmem:[%s6755_s22 + $0x48] sm:$0xff] (%p140_p3) }
  0x13   : > { %304 = vst [vmem:[%s6760_s23 + $0x10] sm:$0xff] (%p140_p3), %v303_v2  ;;  %v307_v4 = vld [vmem:[%s6755_s22 + $0x80] sm:$0xff] (%p140_p3)  ;;  %v309_v5 = vld [vmem:[%s6755_s22 + $0x88] sm:$0xff] (%p140_p3)  ;;  %306 = vst [vmem:[%s6760_s23 + $0x18] sm:$0xff] (%p140_p3), %v305_v3 }
  0x14   : > { %308 = vst [vmem:[%s6760_s23 + $0x20] sm:$0xff] (%p140_p3), %v307_v4  ;;  %310 = vst [vmem:[%s6760_s23 + $0x28] sm:$0xff] (%p140_p3), %v309_v5  ;;  %v311_v6 = vld [vmem:[%s6755_s22 + $0xc0] sm:$0xff] (%p140_p3)  ;;  %v313_v7 = vld [vmem:[%s6755_s22 + $0xc8] sm:$0xff] (%p140_p3) }
  0x15   : > { %v315_v8 = vld [vmem:[%s6755_s22 + $0x100] sm:$0xff]  ;;  %312 = vst [vmem:[%s6760_s23 + $0x30] sm:$0xff] %v311_v6  ;;  %314 = vst [vmem:[%s6760_s23 + $0x38] sm:$0xff] %v313_v7  ;;  %v317_v9 = vld [vmem:[%s6755_s22 + $0x108] sm:$0xff] }
  0x16   : > { %316 = vst [vmem:[%s6760_s23 + $0x40] sm:$0xff] %v315_v8  ;;  %v319_v10 = vld [vmem:[%s6755_s22 + $0x140] sm:$0xff]  ;;  %v321_v11 = vld [vmem:[%s6755_s22 + $0x148] sm:$0xff]  ;;  %318 = vst [vmem:[%s6760_s23 + $0x48] sm:$0xff] %v317_v9 }
  0x17   : > { %320 = vst [vmem:[%s6760_s23 + $0x50] sm:$0xff] %v319_v10  ;;  %322 = vst [vmem:[%s6760_s23 + $0x58] sm:$0xff] %v321_v11  ;;  %v323_v12 = vld [vmem:[%s6755_s22 + $0x180] sm:$0xff]  ;;  %v325_v13 = vld [vmem:[%s6755_s22 + $0x188] sm:$0xff] }
  0x18   : > { %v327_v14 = vld [vmem:[%s6755_s22 + $0x1c0] sm:$0xff]  ;;  %324 = vst [vmem:[%s6760_s23 + $0x60] sm:$0xff] %v323_v12  ;;  %326 = vst [vmem:[%s6760_s23 + $0x68] sm:$0xff] %v325_v13  ;;  %v329_v15 = vld [vmem:[%s6755_s22 + $0x1c8] sm:$0xff] }
  0x19   : > { %328 = vst [vmem:[%s6760_s23 + $0x70] sm:$0xff] %v327_v14  ;;  %v331_v16 = vld [vmem:[%s6755_s22 + $0x200] sm:$0xff]  ;;  %v333_v17 = vld [vmem:[%s6755_s22 + $0x208] sm:$0xff]  ;;  %330 = vst [vmem:[%s6760_s23 + $0x78] sm:$0xff] %v329_v15 }
  0x1a   : > { %332 = vst [vmem:[%s6760_s23 + $0x80] sm:$0xff] %v331_v16  ;;  %334 = vst [vmem:[%s6760_s23 + $0x88] sm:$0xff] %v333_v17  ;;  %v335_v18 = vld [vmem:[%s6755_s22 + $0x240] sm:$0xff]  ;;  %v337_v19 = vld [vmem:[%s6755_s22 + $0x248] sm:$0xff] }
  0x1b   : > { %v339_v20 = vld [vmem:[%s6755_s22 + $0x280] sm:$0xff]  ;;  %336 = vst [vmem:[%s6760_s23 + $0x90] sm:$0xff] %v335_v18  ;;  %338 = vst [vmem:[%s6760_s23 + $0x98] sm:$0xff] %v337_v19  ;;  %v341_v21 = vld [vmem:[%s6755_s22 + $0x288] sm:$0xff] }
  0x1c   : > { %340 = vst [vmem:[%s6760_s23 + $0xa0] sm:$0xff] %v339_v20  ;;  %v343_v22 = vld [vmem:[%s6755_s22 + $0x2c0] sm:$0xff]  ;;  %v345_v23 = vld [vmem:[%s6755_s22 + $0x2c8] sm:$0xff]  ;;  %342 = vst [vmem:[%s6760_s23 + $0xa8] sm:$0xff] %v341_v21 }
  0x1d   : > { %344 = vst [vmem:[%s6760_s23 + $0xb0] sm:$0xff] %v343_v22  ;;  %346 = vst [vmem:[%s6760_s23 + $0xb8] sm:$0xff] %v345_v23  ;;  %v347_v24 = vld [vmem:[%s6755_s22 + $0x300] sm:$0xff]  ;;  %v349_v25 = vld [vmem:[%s6755_s22 + $0x308] sm:$0xff] }
  0x1e   : > { %v351_v26 = vld [vmem:[%s6755_s22 + $0x340] sm:$0xff]  ;;  %348 = vst [vmem:[%s6760_s23 + $0xc0] sm:$0xff] %v347_v24  ;;  %350 = vst [vmem:[%s6760_s23 + $0xc8] sm:$0xff] %v349_v25  ;;  %v353_v27 = vld [vmem:[%s6755_s22 + $0x348] sm:$0xff] }
  0x1f   : > { %352 = vst [vmem:[%s6760_s23 + $0xd0] sm:$0xff] %v351_v26  ;;  %v355_v28 = vld [vmem:[%s6755_s22 + $0x380] sm:$0xff]  ;;  %v357_v29 = vld [vmem:[%s6755_s22 + $0x388] sm:$0xff]  ;;  %354 = vst [vmem:[%s6760_s23 + $0xd8] sm:$0xff] %v353_v27 }
  0x20   : > { %356 = vst [vmem:[%s6760_s23 + $0xe0] sm:$0xff] %v355_v28  ;;  %358 = vst [vmem:[%s6760_s23 + $0xe8] sm:$0xff] %v357_v29  ;;  %v359_v30 = vld [vmem:[%s6755_s22 + $0x3c0] sm:$0xff]  ;;  %v361_v31 = vld [vmem:[%s6755_s22 + $0x3c8] sm:$0xff] }
  0x21   : > { %v363_v32 = vld [vmem:[%s6755_s22 + $0x400] sm:$0xff]  ;;  %360 = vst [vmem:[%s6760_s23 + $0xf0] sm:$0xff] %v359_v30  ;;  %362 = vst [vmem:[%s6760_s23 + $0xf8] sm:$0xff] %v361_v31  ;;  %v365_v33 = vld [vmem:[%s6755_s22 + $0x408] sm:$0xff] }
  0x22   : > { %364 = vst [vmem:[%s6760_s23 + $0x100] sm:$0xff] %v363_v32  ;;  %v367_v34 = vld [vmem:[%s6755_s22 + $0x440] sm:$0xff]  ;;  %v369_v35 = vld [vmem:[%s6755_s22 + $0x448] sm:$0xff]  ;;  %366 = vst [vmem:[%s6760_s23 + $0x108] sm:$0xff] %v365_v33 }
  0x23   : > { %368 = vst [vmem:[%s6760_s23 + $0x110] sm:$0xff] %v367_v34  ;;  %370 = vst [vmem:[%s6760_s23 + $0x118] sm:$0xff] %v369_v35  ;;  %v371_v36 = vld [vmem:[%s6755_s22 + $0x480] sm:$0xff]  ;;  %v373_v37 = vld [vmem:[%s6755_s22 + $0x488] sm:$0xff] }
  0x24   : > { %v375_v38 = vld [vmem:[%s6755_s22 + $0x4c0] sm:$0xff]  ;;  %372 = vst [vmem:[%s6760_s23 + $0x120] sm:$0xff] %v371_v36  ;;  %374 = vst [vmem:[%s6760_s23 + $0x128] sm:$0xff] %v373_v37  ;;  %v377_v39 = vld [vmem:[%s6755_s22 + $0x4c8] sm:$0xff] }
  0x25   : > { %376 = vst [vmem:[%s6760_s23 + $0x130] sm:$0xff] %v375_v38  ;;  %v379_v40 = vld [vmem:[%s6755_s22 + $0x500] sm:$0xff]  ;;  %v381_v41 = vld [vmem:[%s6755_s22 + $0x508] sm:$0xff]  ;;  %378 = vst [vmem:[%s6760_s23 + $0x138] sm:$0xff] %v377_v39 }
  0x26   : > { %380 = vst [vmem:[%s6760_s23 + $0x140] sm:$0xff] %v379_v40  ;;  %382 = vst [vmem:[%s6760_s23 + $0x148] sm:$0xff] %v381_v41  ;;  %v383_v42 = vld [vmem:[%s6755_s22 + $0x540] sm:$0xff]  ;;  %v385_v43 = vld [vmem:[%s6755_s22 + $0x548] sm:$0xff] }
  0x27   : > { %v387_v44 = vld [vmem:[%s6755_s22 + $0x580] sm:$0xff]  ;;  %384 = vst [vmem:[%s6760_s23 + $0x150] sm:$0xff] %v383_v42  ;;  %386 = vst [vmem:[%s6760_s23 + $0x158] sm:$0xff] %v385_v43  ;;  %v389_v45 = vld [vmem:[%s6755_s22 + $0x588] sm:$0xff] }
  0x28   : > { %388 = vst [vmem:[%s6760_s23 + $0x160] sm:$0xff] %v387_v44  ;;  %v391_v46 = vld [vmem:[%s6755_s22 + $0x5c0] sm:$0xff]  ;;  %v393_v47 = vld [vmem:[%s6755_s22 + $0x5c8] sm:$0xff]  ;;  %390 = vst [vmem:[%s6760_s23 + $0x168] sm:$0xff] %v389_v45 }
  0x29   : > { %392 = vst [vmem:[%s6760_s23 + $0x170] sm:$0xff] %v391_v46  ;;  %394 = vst [vmem:[%s6760_s23 + $0x178] sm:$0xff] %v393_v47  ;;  %v395_v48 = vld [vmem:[%s6755_s22 + $0x600] sm:$0xff]  ;;  %v397_v49 = vld [vmem:[%s6755_s22 + $0x608] sm:$0xff] }
  0x2a   : > { %v399_v50 = vld [vmem:[%s6755_s22 + $0x640] sm:$0xff]  ;;  %396 = vst [vmem:[%s6760_s23 + $0x180] sm:$0xff] %v395_v48  ;;  %398 = vst [vmem:[%s6760_s23 + $0x188] sm:$0xff] %v397_v49  ;;  %v401_v51 = vld [vmem:[%s6755_s22 + $0x648] sm:$0xff] }
  0x2b   : > { %400 = vst [vmem:[%s6760_s23 + $0x190] sm:$0xff] %v399_v50  ;;  %v403_v52 = vld [vmem:[%s6755_s22 + $0x680] sm:$0xff]  ;;  %v405_v53 = vld [vmem:[%s6755_s22 + $0x688] sm:$0xff]  ;;  %402 = vst [vmem:[%s6760_s23 + $0x198] sm:$0xff] %v401_v51 }
  0x2c   : > { %404 = vst [vmem:[%s6760_s23 + $0x1a0] sm:$0xff] %v403_v52  ;;  %406 = vst [vmem:[%s6760_s23 + $0x1a8] sm:$0xff] %v405_v53  ;;  %v407_v54 = vld [vmem:[%s6755_s22 + $0x6c0] sm:$0xff]  ;;  %v409_v55 = vld [vmem:[%s6755_s22 + $0x6c8] sm:$0xff] }
  0x2d   : > { %v411_v56 = vld [vmem:[%s6755_s22 + $0x700] sm:$0xff]  ;;  %408 = vst [vmem:[%s6760_s23 + $0x1b0] sm:$0xff] %v407_v54  ;;  %410 = vst [vmem:[%s6760_s23 + $0x1b8] sm:$0xff] %v409_v55  ;;  %v413_v57 = vld [vmem:[%s6755_s22 + $0x708] sm:$0xff] }
  0x2e   : > { %412 = vst [vmem:[%s6760_s23 + $0x1c0] sm:$0xff] %v411_v56  ;;  %v415_v58 = vld [vmem:[%s6755_s22 + $0x740] sm:$0xff]  ;;  %v417_v59 = vld [vmem:[%s6755_s22 + $0x748] sm:$0xff]  ;;  %414 = vst [vmem:[%s6760_s23 + $0x1c8] sm:$0xff] %v413_v57 }
  0x2f   : > { %416 = vst [vmem:[%s6760_s23 + $0x1d0] sm:$0xff] %v415_v58  ;;  %418 = vst [vmem:[%s6760_s23 + $0x1d8] sm:$0xff] %v417_v59  ;;  %v419_v60 = vld [vmem:[%s6755_s22 + $0x780] sm:$0xff]  ;;  %v421_v61 = vld [vmem:[%s6755_s22 + $0x788] sm:$0xff] }
  0x30   : > { %v423_v62 = vld [vmem:[%s6755_s22 + $0x7c0] sm:$0xff]  ;;  %420 = vst [vmem:[%s6760_s23 + $0x1e0] sm:$0xff] %v419_v60  ;;  %422 = vst [vmem:[%s6760_s23 + $0x1e8] sm:$0xff] %v421_v61  ;;  %v425_v63 = vld [vmem:[%s6755_s22 + $0x7c8] sm:$0xff] }
  0x31   : > { %424 = vst [vmem:[%s6760_s23 + $0x1f0] sm:$0xff] %v423_v62  ;;  %v427_v0 = vld [vmem:[%s6755_s22 + $0x800] sm:$0xff]  ;;  %v429_v1 = vld [vmem:[%s6755_s22 + $0x808] sm:$0xff]  ;;  %426 = vst [vmem:[%s6760_s23 + $0x1f8] sm:$0xff] %v425_v63 }
  0x32   : > { %428 = vst [vmem:[%s6760_s23 + $0x200] sm:$0xff] %v427_v0  ;;  %430 = vst [vmem:[%s6760_s23 + $0x208] sm:$0xff] %v429_v1  ;;  %v431_v2 = vld [vmem:[%s6755_s22 + $0x840] sm:$0xff]  ;;  %v433_v3 = vld [vmem:[%s6755_s22 + $0x848] sm:$0xff] }
  0x33   : > { %v435_v4 = vld [vmem:[%s6755_s22 + $0x880] sm:$0xff]  ;;  %432 = vst [vmem:[%s6760_s23 + $0x210] sm:$0xff] %v431_v2  ;;  %434 = vst [vmem:[%s6760_s23 + $0x218] sm:$0xff] %v433_v3  ;;  %v437_v5 = vld [vmem:[%s6755_s22 + $0x888] sm:$0xff] }
  0x34   : > { %436 = vst [vmem:[%s6760_s23 + $0x220] sm:$0xff] %v435_v4  ;;  %v439_v6 = vld [vmem:[%s6755_s22 + $0x8c0] sm:$0xff]  ;;  %v441_v7 = vld [vmem:[%s6755_s22 + $0x8c8] sm:$0xff]  ;;  %438 = vst [vmem:[%s6760_s23 + $0x228] sm:$0xff] %v437_v5 }
  0x35   : > { %440 = vst [vmem:[%s6760_s23 + $0x230] sm:$0xff] %v439_v6  ;;  %442 = vst [vmem:[%s6760_s23 + $0x238] sm:$0xff] %v441_v7  ;;  %v443_v8 = vld [vmem:[%s6755_s22 + $0x900] sm:$0xff]  ;;  %v445_v9 = vld [vmem:[%s6755_s22 + $0x908] sm:$0xff] }
  0x36   : > { %v447_v10 = vld [vmem:[%s6755_s22 + $0x940] sm:$0xff]  ;;  %444 = vst [vmem:[%s6760_s23 + $0x240] sm:$0xff] %v443_v8  ;;  %446 = vst [vmem:[%s6760_s23 + $0x248] sm:$0xff] %v445_v9  ;;  %v449_v11 = vld [vmem:[%s6755_s22 + $0x948] sm:$0xff] }
  0x37   : > { %448 = vst [vmem:[%s6760_s23 + $0x250] sm:$0xff] %v447_v10  ;;  %v451_v12 = vld [vmem:[%s6755_s22 + $0x980] sm:$0xff]  ;;  %v453_v13 = vld [vmem:[%s6755_s22 + $0x988] sm:$0xff]  ;;  %450 = vst [vmem:[%s6760_s23 + $0x258] sm:$0xff] %v449_v11 }
  0x38   : > { %452 = vst [vmem:[%s6760_s23 + $0x260] sm:$0xff] %v451_v12  ;;  %454 = vst [vmem:[%s6760_s23 + $0x268] sm:$0xff] %v453_v13  ;;  %v455_v14 = vld [vmem:[%s6755_s22 + $0x9c0] sm:$0xff]  ;;  %v457_v15 = vld [vmem:[%s6755_s22 + $0x9c8] sm:$0xff] }
  0x39   : > { %v459_v16 = vld [vmem:[%s6755_s22 + $0xa00] sm:$0xff]  ;;  %456 = vst [vmem:[%s6760_s23 + $0x270] sm:$0xff] %v455_v14  ;;  %458 = vst [vmem:[%s6760_s23 + $0x278] sm:$0xff] %v457_v15  ;;  %v461_v17 = vld [vmem:[%s6755_s22 + $0xa08] sm:$0xff] }
  0x3a   : > { %460 = vst [vmem:[%s6760_s23 + $0x280] sm:$0xff] %v459_v16  ;;  %v463_v18 = vld [vmem:[%s6755_s22 + $0xa40] sm:$0xff]  ;;  %v465_v19 = vld [vmem:[%s6755_s22 + $0xa48] sm:$0xff]  ;;  %462 = vst [vmem:[%s6760_s23 + $0x288] sm:$0xff] %v461_v17 }
  0x3b   : > { %464 = vst [vmem:[%s6760_s23 + $0x290] sm:$0xff] %v463_v18  ;;  %466 = vst [vmem:[%s6760_s23 + $0x298] sm:$0xff] %v465_v19  ;;  %v467_v20 = vld [vmem:[%s6755_s22 + $0xa80] sm:$0xff]  ;;  %v469_v21 = vld [vmem:[%s6755_s22 + $0xa88] sm:$0xff] }
  0x3c   : > { %v471_v22 = vld [vmem:[%s6755_s22 + $0xac0] sm:$0xff]  ;;  %468 = vst [vmem:[%s6760_s23 + $0x2a0] sm:$0xff] %v467_v20  ;;  %470 = vst [vmem:[%s6760_s23 + $0x2a8] sm:$0xff] %v469_v21  ;;  %v473_v23 = vld [vmem:[%s6755_s22 + $0xac8] sm:$0xff] }
  0x3d   : > { %472 = vst [vmem:[%s6760_s23 + $0x2b0] sm:$0xff] %v471_v22  ;;  %v475_v24 = vld [vmem:[%s6755_s22 + $0xb00] sm:$0xff]  ;;  %v477_v25 = vld [vmem:[%s6755_s22 + $0xb08] sm:$0xff]  ;;  %474 = vst [vmem:[%s6760_s23 + $0x2b8] sm:$0xff] %v473_v23 }
  0x3e   : > { %476 = vst [vmem:[%s6760_s23 + $0x2c0] sm:$0xff] %v475_v24  ;;  %478 = vst [vmem:[%s6760_s23 + $0x2c8] sm:$0xff] %v477_v25  ;;  %v479_v26 = vld [vmem:[%s6755_s22 + $0xb40] sm:$0xff]  ;;  %v481_v27 = vld [vmem:[%s6755_s22 + $0xb48] sm:$0xff] }
  0x3f   : > { %v483_v28 = vld [vmem:[%s6755_s22 + $0xb80] sm:$0xff]  ;;  %480 = vst [vmem:[%s6760_s23 + $0x2d0] sm:$0xff] %v479_v26  ;;  %482 = vst [vmem:[%s6760_s23 + $0x2d8] sm:$0xff] %v481_v27  ;;  %v485_v29 = vld [vmem:[%s6755_s22 + $0xb88] sm:$0xff] }
  0x40   : > { %484 = vst [vmem:[%s6760_s23 + $0x2e0] sm:$0xff] %v483_v28  ;;  %v487_v30 = vld [vmem:[%s6755_s22 + $0xbc0] sm:$0xff]  ;;  %v489_v31 = vld [vmem:[%s6755_s22 + $0xbc8] sm:$0xff]  ;;  %486 = vst [vmem:[%s6760_s23 + $0x2e8] sm:$0xff] %v485_v29 }
  0x41   : > { %488 = vst [vmem:[%s6760_s23 + $0x2f0] sm:$0xff] %v487_v30  ;;  %490 = vst [vmem:[%s6760_s23 + $0x2f8] sm:$0xff] %v489_v31  ;;  %v491_v32 = vld [vmem:[%s6755_s22 + $0xc00] sm:$0xff]  ;;  %v493_v33 = vld [vmem:[%s6755_s22 + $0xc08] sm:$0xff] }
  0x42   : > { %v495_v34 = vld [vmem:[%s6755_s22 + $0xc40] sm:$0xff]  ;;  %492 = vst [vmem:[%s6760_s23 + $0x300] sm:$0xff] %v491_v32  ;;  %494 = vst [vmem:[%s6760_s23 + $0x308] sm:$0xff] %v493_v33  ;;  %v497_v35 = vld [vmem:[%s6755_s22 + $0xc48] sm:$0xff] }
  0x43   : > { %496 = vst [vmem:[%s6760_s23 + $0x310] sm:$0xff] %v495_v34  ;;  %v499_v36 = vld [vmem:[%s6755_s22 + $0xc80] sm:$0xff]  ;;  %v501_v37 = vld [vmem:[%s6755_s22 + $0xc88] sm:$0xff]  ;;  %498 = vst [vmem:[%s6760_s23 + $0x318] sm:$0xff] %v497_v35 }
  0x44   : > { %500 = vst [vmem:[%s6760_s23 + $0x320] sm:$0xff] %v499_v36  ;;  %502 = vst [vmem:[%s6760_s23 + $0x328] sm:$0xff] %v501_v37  ;;  %v503_v38 = vld [vmem:[%s6755_s22 + $0xcc0] sm:$0xff]  ;;  %v505_v39 = vld [vmem:[%s6755_s22 + $0xcc8] sm:$0xff] }
  0x45   : > { %v507_v40 = vld [vmem:[%s6755_s22 + $0xd00] sm:$0xff]  ;;  %504 = vst [vmem:[%s6760_s23 + $0x330] sm:$0xff] %v503_v38  ;;  %506 = vst [vmem:[%s6760_s23 + $0x338] sm:$0xff] %v505_v39  ;;  %v509_v41 = vld [vmem:[%s6755_s22 + $0xd08] sm:$0xff] }
  0x46   : > { %508 = vst [vmem:[%s6760_s23 + $0x340] sm:$0xff] %v507_v40  ;;  %v511_v42 = vld [vmem:[%s6755_s22 + $0xd40] sm:$0xff]  ;;  %v513_v43 = vld [vmem:[%s6755_s22 + $0xd48] sm:$0xff]  ;;  %510 = vst [vmem:[%s6760_s23 + $0x348] sm:$0xff] %v509_v41 }
  0x47   : > { %512 = vst [vmem:[%s6760_s23 + $0x350] sm:$0xff] %v511_v42  ;;  %514 = vst [vmem:[%s6760_s23 + $0x358] sm:$0xff] %v513_v43  ;;  %v515_v44 = vld [vmem:[%s6755_s22 + $0xd80] sm:$0xff]  ;;  %v517_v45 = vld [vmem:[%s6755_s22 + $0xd88] sm:$0xff] }
  0x48   : > { %v519_v46 = vld [vmem:[%s6755_s22 + $0xdc0] sm:$0xff]  ;;  %516 = vst [vmem:[%s6760_s23 + $0x360] sm:$0xff] %v515_v44  ;;  %518 = vst [vmem:[%s6760_s23 + $0x368] sm:$0xff] %v517_v45  ;;  %v521_v47 = vld [vmem:[%s6755_s22 + $0xdc8] sm:$0xff] }
  0x49   : > { %520 = vst [vmem:[%s6760_s23 + $0x370] sm:$0xff] %v519_v46  ;;  %v523_v48 = vld [vmem:[%s6755_s22 + $0xe00] sm:$0xff]  ;;  %v525_v49 = vld [vmem:[%s6755_s22 + $0xe08] sm:$0xff]  ;;  %522 = vst [vmem:[%s6760_s23 + $0x378] sm:$0xff] %v521_v47 }
  0x4a   : > { %524 = vst [vmem:[%s6760_s23 + $0x380] sm:$0xff] %v523_v48  ;;  %526 = vst [vmem:[%s6760_s23 + $0x388] sm:$0xff] %v525_v49  ;;  %v527_v50 = vld [vmem:[%s6755_s22 + $0xe40] sm:$0xff]  ;;  %v529_v51 = vld [vmem:[%s6755_s22 + $0xe48] sm:$0xff] }
  0x4b   : > { %v531_v52 = vld [vmem:[%s6755_s22 + $0xe80] sm:$0xff]  ;;  %528 = vst [vmem:[%s6760_s23 + $0x390] sm:$0xff] %v527_v50  ;;  %530 = vst [vmem:[%s6760_s23 + $0x398] sm:$0xff] %v529_v51  ;;  %v533_v53 = vld [vmem:[%s6755_s22 + $0xe88] sm:$0xff] }
  0x4c   : > { %532 = vst [vmem:[%s6760_s23 + $0x3a0] sm:$0xff] %v531_v52  ;;  %v535_v54 = vld [vmem:[%s6755_s22 + $0xec0] sm:$0xff]  ;;  %v537_v55 = vld [vmem:[%s6755_s22 + $0xec8] sm:$0xff]  ;;  %534 = vst [vmem:[%s6760_s23 + $0x3a8] sm:$0xff] %v533_v53 }
  0x4d   : > { %536 = vst [vmem:[%s6760_s23 + $0x3b0] sm:$0xff] %v535_v54  ;;  %538 = vst [vmem:[%s6760_s23 + $0x3b8] sm:$0xff] %v537_v55  ;;  %v539_v56 = vld [vmem:[%s6755_s22 + $0xf00] sm:$0xff]  ;;  %v541_v57 = vld [vmem:[%s6755_s22 + $0xf08] sm:$0xff] }
  0x4e   : > { %v543_v58 = vld [vmem:[%s6755_s22 + $0xf40] sm:$0xff]  ;;  %540 = vst [vmem:[%s6760_s23 + $0x3c0] sm:$0xff] %v539_v56  ;;  %542 = vst [vmem:[%s6760_s23 + $0x3c8] sm:$0xff] %v541_v57  ;;  %v545_v59 = vld [vmem:[%s6755_s22 + $0xf48] sm:$0xff] }
  0x4f   : > { %544 = vst [vmem:[%s6760_s23 + $0x3d0] sm:$0xff] %v543_v58  ;;  %v547_v60 = vld [vmem:[%s6755_s22 + $0xf80] sm:$0xff]  ;;  %v549_v61 = vld [vmem:[%s6755_s22 + $0xf88] sm:$0xff]  ;;  %546 = vst [vmem:[%s6760_s23 + $0x3d8] sm:$0xff] %v545_v59 }
  0x50   : > { %548 = vst [vmem:[%s6760_s23 + $0x3e0] sm:$0xff] %v547_v60  ;;  %550 = vst [vmem:[%s6760_s23 + $0x3e8] sm:$0xff] %v549_v61  ;;  %v551_v62 = vld [vmem:[%s6755_s22 + $0xfc0] sm:$0xff]  ;;  %v553_v63 = vld [vmem:[%s6755_s22 + $0xfc8] sm:$0xff] }
  0x51   : > { %v555_v0 = vld [vmem:[%s6755_s22 + $0x1000] sm:$0xff]  ;;  %552 = vst [vmem:[%s6760_s23 + $0x3f0] sm:$0xff] %v551_v62  ;;  %554 = vst [vmem:[%s6760_s23 + $0x3f8] sm:$0xff] %v553_v63  ;;  %v557_v1 = vld [vmem:[%s6755_s22 + $0x1008] sm:$0xff] }
  0x52   : > { %556 = vst [vmem:[%s6760_s23 + $0x400] sm:$0xff] %v555_v0  ;;  %v559_v2 = vld [vmem:[%s6755_s22 + $0x1040] sm:$0xff]  ;;  %v561_v3 = vld [vmem:[%s6755_s22 + $0x1048] sm:$0xff]  ;;  %558 = vst [vmem:[%s6760_s23 + $0x408] sm:$0xff] %v557_v1 }
  0x53   : > { %560 = vst [vmem:[%s6760_s23 + $0x410] sm:$0xff] %v559_v2  ;;  %562 = vst [vmem:[%s6760_s23 + $0x418] sm:$0xff] %v561_v3  ;;  %v563_v4 = vld [vmem:[%s6755_s22 + $0x1080] sm:$0xff]  ;;  %v565_v5 = vld [vmem:[%s6755_s22 + $0x1088] sm:$0xff] }
  0x54   : > { %v567_v6 = vld [vmem:[%s6755_s22 + $0x10c0] sm:$0xff]  ;;  %564 = vst [vmem:[%s6760_s23 + $0x420] sm:$0xff] %v563_v4  ;;  %566 = vst [vmem:[%s6760_s23 + $0x428] sm:$0xff] %v565_v5  ;;  %v569_v7 = vld [vmem:[%s6755_s22 + $0x10c8] sm:$0xff] }
  0x55   : > { %568 = vst [vmem:[%s6760_s23 + $0x430] sm:$0xff] %v567_v6  ;;  %v571_v8 = vld [vmem:[%s6755_s22 + $0x1100] sm:$0xff]  ;;  %v573_v9 = vld [vmem:[%s6755_s22 + $0x1108] sm:$0xff]  ;;  %570 = vst [vmem:[%s6760_s23 + $0x438] sm:$0xff] %v569_v7 }
  0x56   : > { %572 = vst [vmem:[%s6760_s23 + $0x440] sm:$0xff] %v571_v8  ;;  %574 = vst [vmem:[%s6760_s23 + $0x448] sm:$0xff] %v573_v9  ;;  %v575_v10 = vld [vmem:[%s6755_s22 + $0x1140] sm:$0xff]  ;;  %v577_v11 = vld [vmem:[%s6755_s22 + $0x1148] sm:$0xff] }
  0x57   : > { %v579_v12 = vld [vmem:[%s6755_s22 + $0x1180] sm:$0xff]  ;;  %576 = vst [vmem:[%s6760_s23 + $0x450] sm:$0xff] %v575_v10  ;;  %578 = vst [vmem:[%s6760_s23 + $0x458] sm:$0xff] %v577_v11  ;;  %v581_v13 = vld [vmem:[%s6755_s22 + $0x1188] sm:$0xff] }
  0x58   : > { %580 = vst [vmem:[%s6760_s23 + $0x460] sm:$0xff] %v579_v12  ;;  %v583_v14 = vld [vmem:[%s6755_s22 + $0x11c0] sm:$0xff]  ;;  %v585_v15 = vld [vmem:[%s6755_s22 + $0x11c8] sm:$0xff]  ;;  %582 = vst [vmem:[%s6760_s23 + $0x468] sm:$0xff] %v581_v13 }
  0x59   : > { %584 = vst [vmem:[%s6760_s23 + $0x470] sm:$0xff] %v583_v14  ;;  %586 = vst [vmem:[%s6760_s23 + $0x478] sm:$0xff] %v585_v15  ;;  %v587_v16 = vld [vmem:[%s6755_s22 + $0x1200] sm:$0xff]  ;;  %v589_v17 = vld [vmem:[%s6755_s22 + $0x1208] sm:$0xff] }
  0x5a   : > { %v591_v18 = vld [vmem:[%s6755_s22 + $0x1240] sm:$0xff]  ;;  %588 = vst [vmem:[%s6760_s23 + $0x480] sm:$0xff] %v587_v16  ;;  %590 = vst [vmem:[%s6760_s23 + $0x488] sm:$0xff] %v589_v17  ;;  %v593_v19 = vld [vmem:[%s6755_s22 + $0x1248] sm:$0xff] }
  0x5b   : > { %592 = vst [vmem:[%s6760_s23 + $0x490] sm:$0xff] %v591_v18  ;;  %v595_v20 = vld [vmem:[%s6755_s22 + $0x1280] sm:$0xff]  ;;  %v597_v21 = vld [vmem:[%s6755_s22 + $0x1288] sm:$0xff]  ;;  %594 = vst [vmem:[%s6760_s23 + $0x498] sm:$0xff] %v593_v19 }
  0x5c   : > { %596 = vst [vmem:[%s6760_s23 + $0x4a0] sm:$0xff] %v595_v20  ;;  %598 = vst [vmem:[%s6760_s23 + $0x4a8] sm:$0xff] %v597_v21  ;;  %v599_v22 = vld [vmem:[%s6755_s22 + $0x12c0] sm:$0xff]  ;;  %v601_v23 = vld [vmem:[%s6755_s22 + $0x12c8] sm:$0xff] }
  0x5d   : > { %v603_v24 = vld [vmem:[%s6755_s22 + $0x1300] sm:$0xff]  ;;  %600 = vst [vmem:[%s6760_s23 + $0x4b0] sm:$0xff] %v599_v22  ;;  %602 = vst [vmem:[%s6760_s23 + $0x4b8] sm:$0xff] %v601_v23  ;;  %v605_v25 = vld [vmem:[%s6755_s22 + $0x1308] sm:$0xff] }
  0x5e   : > { %604 = vst [vmem:[%s6760_s23 + $0x4c0] sm:$0xff] %v603_v24  ;;  %v607_v26 = vld [vmem:[%s6755_s22 + $0x1340] sm:$0xff]  ;;  %v609_v27 = vld [vmem:[%s6755_s22 + $0x1348] sm:$0xff]  ;;  %606 = vst [vmem:[%s6760_s23 + $0x4c8] sm:$0xff] %v605_v25 }
  0x5f   : > { %608 = vst [vmem:[%s6760_s23 + $0x4d0] sm:$0xff] %v607_v26  ;;  %610 = vst [vmem:[%s6760_s23 + $0x4d8] sm:$0xff] %v609_v27  ;;  %v611_v28 = vld [vmem:[%s6755_s22 + $0x1380] sm:$0xff]  ;;  %v613_v29 = vld [vmem:[%s6755_s22 + $0x1388] sm:$0xff] }
  0x60   : > { %v615_v30 = vld [vmem:[%s6755_s22 + $0x13c0] sm:$0xff]  ;;  %612 = vst [vmem:[%s6760_s23 + $0x4e0] sm:$0xff] %v611_v28  ;;  %614 = vst [vmem:[%s6760_s23 + $0x4e8] sm:$0xff] %v613_v29  ;;  %v617_v31 = vld [vmem:[%s6755_s22 + $0x13c8] sm:$0xff] }
  0x61   : > { %616 = vst [vmem:[%s6760_s23 + $0x4f0] sm:$0xff] %v615_v30  ;;  %v619_v32 = vld [vmem:[%s6755_s22 + $0x1400] sm:$0xff]  ;;  %v621_v33 = vld [vmem:[%s6755_s22 + $0x1408] sm:$0xff]  ;;  %618 = vst [vmem:[%s6760_s23 + $0x4f8] sm:$0xff] %v617_v31 }
  0x62   : > { %620 = vst [vmem:[%s6760_s23 + $0x500] sm:$0xff] %v619_v32  ;;  %622 = vst [vmem:[%s6760_s23 + $0x508] sm:$0xff] %v621_v33  ;;  %v623_v34 = vld [vmem:[%s6755_s22 + $0x1440] sm:$0xff]  ;;  %v625_v35 = vld [vmem:[%s6755_s22 + $0x1448] sm:$0xff] }
  0x63   : > { %v627_v36 = vld [vmem:[%s6755_s22 + $0x1480] sm:$0xff]  ;;  %624 = vst [vmem:[%s6760_s23 + $0x510] sm:$0xff] %v623_v34  ;;  %626 = vst [vmem:[%s6760_s23 + $0x518] sm:$0xff] %v625_v35  ;;  %v629_v37 = vld [vmem:[%s6755_s22 + $0x1488] sm:$0xff] }
  0x64   : > { %628 = vst [vmem:[%s6760_s23 + $0x520] sm:$0xff] %v627_v36  ;;  %v631_v38 = vld [vmem:[%s6755_s22 + $0x14c0] sm:$0xff]  ;;  %v633_v39 = vld [vmem:[%s6755_s22 + $0x14c8] sm:$0xff]  ;;  %630 = vst [vmem:[%s6760_s23 + $0x528] sm:$0xff] %v629_v37 }
  0x65   : > { %632 = vst [vmem:[%s6760_s23 + $0x530] sm:$0xff] %v631_v38  ;;  %634 = vst [vmem:[%s6760_s23 + $0x538] sm:$0xff] %v633_v39  ;;  %v635_v40 = vld [vmem:[%s6755_s22 + $0x1500] sm:$0xff]  ;;  %v637_v41 = vld [vmem:[%s6755_s22 + $0x1508] sm:$0xff] }
  0x66   : > { %v639_v42 = vld [vmem:[%s6755_s22 + $0x1540] sm:$0xff]  ;;  %636 = vst [vmem:[%s6760_s23 + $0x540] sm:$0xff] %v635_v40  ;;  %638 = vst [vmem:[%s6760_s23 + $0x548] sm:$0xff] %v637_v41  ;;  %v641_v43 = vld [vmem:[%s6755_s22 + $0x1548] sm:$0xff] }
  0x67   : > { %640 = vst [vmem:[%s6760_s23 + $0x550] sm:$0xff] %v639_v42  ;;  %v643_v44 = vld [vmem:[%s6755_s22 + $0x1580] sm:$0xff]  ;;  %v645_v45 = vld [vmem:[%s6755_s22 + $0x1588] sm:$0xff]  ;;  %642 = vst [vmem:[%s6760_s23 + $0x558] sm:$0xff] %v641_v43 }
  0x68   : > { %644 = vst [vmem:[%s6760_s23 + $0x560] sm:$0xff] %v643_v44  ;;  %646 = vst [vmem:[%s6760_s23 + $0x568] sm:$0xff] %v645_v45  ;;  %v647_v46 = vld [vmem:[%s6755_s22 + $0x15c0] sm:$0xff]  ;;  %v649_v47 = vld [vmem:[%s6755_s22 + $0x15c8] sm:$0xff] }
  0x69   : > { %v651_v48 = vld [vmem:[%s6755_s22 + $0x1600] sm:$0xff]  ;;  %648 = vst [vmem:[%s6760_s23 + $0x570] sm:$0xff] %v647_v46  ;;  %650 = vst [vmem:[%s6760_s23 + $0x578] sm:$0xff] %v649_v47  ;;  %v653_v49 = vld [vmem:[%s6755_s22 + $0x1608] sm:$0xff] }
  0x6a   : > { %652 = vst [vmem:[%s6760_s23 + $0x580] sm:$0xff] %v651_v48  ;;  %v655_v50 = vld [vmem:[%s6755_s22 + $0x1640] sm:$0xff]  ;;  %v657_v51 = vld [vmem:[%s6755_s22 + $0x1648] sm:$0xff]  ;;  %654 = vst [vmem:[%s6760_s23 + $0x588] sm:$0xff] %v653_v49 }
  0x6b   : > { %656 = vst [vmem:[%s6760_s23 + $0x590] sm:$0xff] %v655_v50  ;;  %658 = vst [vmem:[%s6760_s23 + $0x598] sm:$0xff] %v657_v51  ;;  %v659_v52 = vld [vmem:[%s6755_s22 + $0x1680] sm:$0xff]  ;;  %v661_v53 = vld [vmem:[%s6755_s22 + $0x1688] sm:$0xff] }
  0x6c   : > { %v663_v54 = vld [vmem:[%s6755_s22 + $0x16c0] sm:$0xff]  ;;  %660 = vst [vmem:[%s6760_s23 + $0x5a0] sm:$0xff] %v659_v52  ;;  %662 = vst [vmem:[%s6760_s23 + $0x5a8] sm:$0xff] %v661_v53  ;;  %v665_v55 = vld [vmem:[%s6755_s22 + $0x16c8] sm:$0xff] }
  0x6d   : > { %664 = vst [vmem:[%s6760_s23 + $0x5b0] sm:$0xff] %v663_v54  ;;  %v667_v56 = vld [vmem:[%s6755_s22 + $0x1700] sm:$0xff]  ;;  %v669_v57 = vld [vmem:[%s6755_s22 + $0x1708] sm:$0xff]  ;;  %666 = vst [vmem:[%s6760_s23 + $0x5b8] sm:$0xff] %v665_v55 }
  0x6e   : > { %668 = vst [vmem:[%s6760_s23 + $0x5c0] sm:$0xff] %v667_v56  ;;  %670 = vst [vmem:[%s6760_s23 + $0x5c8] sm:$0xff] %v669_v57  ;;  %v671_v58 = vld [vmem:[%s6755_s22 + $0x1740] sm:$0xff]  ;;  %v673_v59 = vld [vmem:[%s6755_s22 + $0x1748] sm:$0xff] }
  0x6f   : > { %v675_v60 = vld [vmem:[%s6755_s22 + $0x1780] sm:$0xff]  ;;  %672 = vst [vmem:[%s6760_s23 + $0x5d0] sm:$0xff] %v671_v58  ;;  %674 = vst [vmem:[%s6760_s23 + $0x5d8] sm:$0xff] %v673_v59  ;;  %v677_v61 = vld [vmem:[%s6755_s22 + $0x1788] sm:$0xff] }
  0x70   : > { %676 = vst [vmem:[%s6760_s23 + $0x5e0] sm:$0xff] %v675_v60  ;;  %v679_v62 = vld [vmem:[%s6755_s22 + $0x17c0] sm:$0xff]  ;;  %v681_v63 = vld [vmem:[%s6755_s22 + $0x17c8] sm:$0xff]  ;;  %678 = vst [vmem:[%s6760_s23 + $0x5e8] sm:$0xff] %v677_v61 }
  0x71   : > { %680 = vst [vmem:[%s6760_s23 + $0x5f0] sm:$0xff] %v679_v62  ;;  %682 = vst [vmem:[%s6760_s23 + $0x5f8] sm:$0xff] %v681_v63  ;;  %v683_v0 = vld [vmem:[%s6755_s22 + $0x1800] sm:$0xff]  ;;  %v685_v1 = vld [vmem:[%s6755_s22 + $0x1808] sm:$0xff] }
  0x72   : > { %v687_v2 = vld [vmem:[%s6755_s22 + $0x1840] sm:$0xff]  ;;  %684 = vst [vmem:[%s6760_s23 + $0x600] sm:$0xff] %v683_v0  ;;  %686 = vst [vmem:[%s6760_s23 + $0x608] sm:$0xff] %v685_v1  ;;  %v689_v3 = vld [vmem:[%s6755_s22 + $0x1848] sm:$0xff] }
  0x73   : > { %688 = vst [vmem:[%s6760_s23 + $0x610] sm:$0xff] %v687_v2  ;;  %v691_v4 = vld [vmem:[%s6755_s22 + $0x1880] sm:$0xff]  ;;  %v693_v5 = vld [vmem:[%s6755_s22 + $0x1888] sm:$0xff]  ;;  %690 = vst [vmem:[%s6760_s23 + $0x618] sm:$0xff] %v689_v3 }
  0x74   : > { %692 = vst [vmem:[%s6760_s23 + $0x620] sm:$0xff] %v691_v4  ;;  %694 = vst [vmem:[%s6760_s23 + $0x628] sm:$0xff] %v693_v5  ;;  %v695_v6 = vld [vmem:[%s6755_s22 + $0x18c0] sm:$0xff]  ;;  %v697_v7 = vld [vmem:[%s6755_s22 + $0x18c8] sm:$0xff] }
  0x75   : > { %v699_v8 = vld [vmem:[%s6755_s22 + $0x1900] sm:$0xff]  ;;  %696 = vst [vmem:[%s6760_s23 + $0x630] sm:$0xff] %v695_v6  ;;  %698 = vst [vmem:[%s6760_s23 + $0x638] sm:$0xff] %v697_v7  ;;  %v701_v9 = vld [vmem:[%s6755_s22 + $0x1908] sm:$0xff] }
  0x76   : > { %700 = vst [vmem:[%s6760_s23 + $0x640] sm:$0xff] %v699_v8  ;;  %v703_v10 = vld [vmem:[%s6755_s22 + $0x1940] sm:$0xff]  ;;  %v705_v11 = vld [vmem:[%s6755_s22 + $0x1948] sm:$0xff]  ;;  %702 = vst [vmem:[%s6760_s23 + $0x648] sm:$0xff] %v701_v9 }
  0x77   : > { %704 = vst [vmem:[%s6760_s23 + $0x650] sm:$0xff] %v703_v10  ;;  %706 = vst [vmem:[%s6760_s23 + $0x658] sm:$0xff] %v705_v11  ;;  %v707_v12 = vld [vmem:[%s6755_s22 + $0x1980] sm:$0xff]  ;;  %v709_v13 = vld [vmem:[%s6755_s22 + $0x1988] sm:$0xff] }
  0x78   : > { %v711_v14 = vld [vmem:[%s6755_s22 + $0x19c0] sm:$0xff]  ;;  %708 = vst [vmem:[%s6760_s23 + $0x660] sm:$0xff] %v707_v12  ;;  %710 = vst [vmem:[%s6760_s23 + $0x668] sm:$0xff] %v709_v13  ;;  %v713_v15 = vld [vmem:[%s6755_s22 + $0x19c8] sm:$0xff] }
  0x79   : > { %712 = vst [vmem:[%s6760_s23 + $0x670] sm:$0xff] %v711_v14  ;;  %v715_v16 = vld [vmem:[%s6755_s22 + $0x1a00] sm:$0xff]  ;;  %v717_v17 = vld [vmem:[%s6755_s22 + $0x1a08] sm:$0xff]  ;;  %714 = vst [vmem:[%s6760_s23 + $0x678] sm:$0xff] %v713_v15 }
  0x7a   : > { %716 = vst [vmem:[%s6760_s23 + $0x680] sm:$0xff] %v715_v16  ;;  %718 = vst [vmem:[%s6760_s23 + $0x688] sm:$0xff] %v717_v17  ;;  %v719_v18 = vld [vmem:[%s6755_s22 + $0x1a40] sm:$0xff]  ;;  %v721_v19 = vld [vmem:[%s6755_s22 + $0x1a48] sm:$0xff] }
  0x7b   : > { %v723_v20 = vld [vmem:[%s6755_s22 + $0x1a80] sm:$0xff]  ;;  %720 = vst [vmem:[%s6760_s23 + $0x690] sm:$0xff] %v719_v18  ;;  %722 = vst [vmem:[%s6760_s23 + $0x698] sm:$0xff] %v721_v19  ;;  %v725_v21 = vld [vmem:[%s6755_s22 + $0x1a88] sm:$0xff] }
  0x7c   : > { %724 = vst [vmem:[%s6760_s23 + $0x6a0] sm:$0xff] %v723_v20  ;;  %v727_v22 = vld [vmem:[%s6755_s22 + $0x1ac0] sm:$0xff]  ;;  %v729_v23 = vld [vmem:[%s6755_s22 + $0x1ac8] sm:$0xff]  ;;  %726 = vst [vmem:[%s6760_s23 + $0x6a8] sm:$0xff] %v725_v21 }
  0x7d   : > { %728 = vst [vmem:[%s6760_s23 + $0x6b0] sm:$0xff] %v727_v22  ;;  %730 = vst [vmem:[%s6760_s23 + $0x6b8] sm:$0xff] %v729_v23  ;;  %v731_v24 = vld [vmem:[%s6755_s22 + $0x1b00] sm:$0xff]  ;;  %v733_v25 = vld [vmem:[%s6755_s22 + $0x1b08] sm:$0xff] }
  0x7e   : > { %v735_v26 = vld [vmem:[%s6755_s22 + $0x1b40] sm:$0xff]  ;;  %732 = vst [vmem:[%s6760_s23 + $0x6c0] sm:$0xff] %v731_v24  ;;  %734 = vst [vmem:[%s6760_s23 + $0x6c8] sm:$0xff] %v733_v25  ;;  %v737_v27 = vld [vmem:[%s6755_s22 + $0x1b48] sm:$0xff] }
  0x7f   : > { %736 = vst [vmem:[%s6760_s23 + $0x6d0] sm:$0xff] %v735_v26  ;;  %v739_v28 = vld [vmem:[%s6755_s22 + $0x1b80] sm:$0xff]  ;;  %v741_v29 = vld [vmem:[%s6755_s22 + $0x1b88] sm:$0xff]  ;;  %738 = vst [vmem:[%s6760_s23 + $0x6d8] sm:$0xff] %v737_v27 }
  0x80   : > { %740 = vst [vmem:[%s6760_s23 + $0x6e0] sm:$0xff] %v739_v28  ;;  %742 = vst [vmem:[%s6760_s23 + $0x6e8] sm:$0xff] %v741_v29  ;;  %v743_v30 = vld [vmem:[%s6755_s22 + $0x1bc0] sm:$0xff]  ;;  %v745_v31 = vld [vmem:[%s6755_s22 + $0x1bc8] sm:$0xff] }
  0x81   : > { %v747_v32 = vld [vmem:[%s6755_s22 + $0x1c00] sm:$0xff]  ;;  %744 = vst [vmem:[%s6760_s23 + $0x6f0] sm:$0xff] %v743_v30  ;;  %746 = vst [vmem:[%s6760_s23 + $0x6f8] sm:$0xff] %v745_v31  ;;  %v749_v33 = vld [vmem:[%s6755_s22 + $0x1c08] sm:$0xff] }
  0x82   : > { %748 = vst [vmem:[%s6760_s23 + $0x700] sm:$0xff] %v747_v32  ;;  %v751_v34 = vld [vmem:[%s6755_s22 + $0x1c40] sm:$0xff]  ;;  %v753_v35 = vld [vmem:[%s6755_s22 + $0x1c48] sm:$0xff]  ;;  %750 = vst [vmem:[%s6760_s23 + $0x708] sm:$0xff] %v749_v33 }
  0x83   : > { %752 = vst [vmem:[%s6760_s23 + $0x710] sm:$0xff] %v751_v34  ;;  %754 = vst [vmem:[%s6760_s23 + $0x718] sm:$0xff] %v753_v35  ;;  %v755_v36 = vld [vmem:[%s6755_s22 + $0x1c80] sm:$0xff]  ;;  %v757_v37 = vld [vmem:[%s6755_s22 + $0x1c88] sm:$0xff] }
  0x84   : > { %v759_v38 = vld [vmem:[%s6755_s22 + $0x1cc0] sm:$0xff]  ;;  %756 = vst [vmem:[%s6760_s23 + $0x720] sm:$0xff] %v755_v36  ;;  %758 = vst [vmem:[%s6760_s23 + $0x728] sm:$0xff] %v757_v37  ;;  %v761_v39 = vld [vmem:[%s6755_s22 + $0x1cc8] sm:$0xff] }
  0x85   : > { %760 = vst [vmem:[%s6760_s23 + $0x730] sm:$0xff] %v759_v38  ;;  %v763_v40 = vld [vmem:[%s6755_s22 + $0x1d00] sm:$0xff]  ;;  %v765_v41 = vld [vmem:[%s6755_s22 + $0x1d08] sm:$0xff]  ;;  %762 = vst [vmem:[%s6760_s23 + $0x738] sm:$0xff] %v761_v39 }
  0x86   : > { %764 = vst [vmem:[%s6760_s23 + $0x740] sm:$0xff] %v763_v40  ;;  %766 = vst [vmem:[%s6760_s23 + $0x748] sm:$0xff] %v765_v41  ;;  %v767_v42 = vld [vmem:[%s6755_s22 + $0x1d40] sm:$0xff]  ;;  %v769_v43 = vld [vmem:[%s6755_s22 + $0x1d48] sm:$0xff] }
  0x87   : > { %v771_v44 = vld [vmem:[%s6755_s22 + $0x1d80] sm:$0xff]  ;;  %768 = vst [vmem:[%s6760_s23 + $0x750] sm:$0xff] %v767_v42  ;;  %770 = vst [vmem:[%s6760_s23 + $0x758] sm:$0xff] %v769_v43  ;;  %v773_v45 = vld [vmem:[%s6755_s22 + $0x1d88] sm:$0xff] }
  0x88   : > { %772 = vst [vmem:[%s6760_s23 + $0x760] sm:$0xff] %v771_v44  ;;  %v775_v46 = vld [vmem:[%s6755_s22 + $0x1dc0] sm:$0xff]  ;;  %v777_v47 = vld [vmem:[%s6755_s22 + $0x1dc8] sm:$0xff]  ;;  %774 = vst [vmem:[%s6760_s23 + $0x768] sm:$0xff] %v773_v45 }
  0x89   : > { %776 = vst [vmem:[%s6760_s23 + $0x770] sm:$0xff] %v775_v46  ;;  %778 = vst [vmem:[%s6760_s23 + $0x778] sm:$0xff] %v777_v47  ;;  %v779_v48 = vld [vmem:[%s6755_s22 + $0x1e00] sm:$0xff]  ;;  %v781_v49 = vld [vmem:[%s6755_s22 + $0x1e08] sm:$0xff] }
  0x8a   : > { %v783_v50 = vld [vmem:[%s6755_s22 + $0x1e40] sm:$0xff]  ;;  %780 = vst [vmem:[%s6760_s23 + $0x780] sm:$0xff] %v779_v48  ;;  %782 = vst [vmem:[%s6760_s23 + $0x788] sm:$0xff] %v781_v49  ;;  %v785_v51 = vld [vmem:[%s6755_s22 + $0x1e48] sm:$0xff] }
  0x8b   : > { %784 = vst [vmem:[%s6760_s23 + $0x790] sm:$0xff] %v783_v50  ;;  %v787_v52 = vld [vmem:[%s6755_s22 + $0x1e80] sm:$0xff]  ;;  %v789_v53 = vld [vmem:[%s6755_s22 + $0x1e88] sm:$0xff]  ;;  %786 = vst [vmem:[%s6760_s23 + $0x798] sm:$0xff] %v785_v51 }
  0x8c   : > { %788 = vst [vmem:[%s6760_s23 + $0x7a0] sm:$0xff] %v787_v52  ;;  %790 = vst [vmem:[%s6760_s23 + $0x7a8] sm:$0xff] %v789_v53  ;;  %v791_v54 = vld [vmem:[%s6755_s22 + $0x1ec0] sm:$0xff]  ;;  %v793_v55 = vld [vmem:[%s6755_s22 + $0x1ec8] sm:$0xff] }
  0x8d   : > { %v795_v56 = vld [vmem:[%s6755_s22 + $0x1f00] sm:$0xff]  ;;  %792 = vst [vmem:[%s6760_s23 + $0x7b0] sm:$0xff] %v791_v54  ;;  %794 = vst [vmem:[%s6760_s23 + $0x7b8] sm:$0xff] %v793_v55  ;;  %v797_v57 = vld [vmem:[%s6755_s22 + $0x1f08] sm:$0xff] }
  0x8e   : > { %796 = vst [vmem:[%s6760_s23 + $0x7c0] sm:$0xff] %v795_v56  ;;  %v799_v58 = vld [vmem:[%s6755_s22 + $0x1f40] sm:$0xff]  ;;  %v801_v59 = vld [vmem:[%s6755_s22 + $0x1f48] sm:$0xff]  ;;  %798 = vst [vmem:[%s6760_s23 + $0x7c8] sm:$0xff] %v797_v57 }
  0x8f   : > { %800 = vst [vmem:[%s6760_s23 + $0x7d0] sm:$0xff] %v799_v58  ;;  %802 = vst [vmem:[%s6760_s23 + $0x7d8] sm:$0xff] %v801_v59  ;;  %v803_v60 = vld [vmem:[%s6755_s22 + $0x1f80] sm:$0xff]  ;;  %v805_v61 = vld [vmem:[%s6755_s22 + $0x1f88] sm:$0xff] }
  0x90   : > { %v807_v62 = vld [vmem:[%s6755_s22 + $0x1fc0] sm:$0xff]  ;;  %804 = vst [vmem:[%s6760_s23 + $0x7e0] sm:$0xff] %v803_v60  ;;  %806 = vst [vmem:[%s6760_s23 + $0x7e8] sm:$0xff] %v805_v61  ;;  %v809_v63 = vld [vmem:[%s6755_s22 + $0x1fc8] sm:$0xff] }
  0x91   : > { %808 = vst [vmem:[%s6760_s23 + $0x7f0] sm:$0xff] %v807_v62  ;;  %810 = vst [vmem:[%s6760_s23 + $0x7f8] sm:$0xff] %v809_v63 }
  0x92 PF: > { %p5465_p5 = scmp.ge.s32.totalorder %s6665_s11, 1  ;;  %p833_p6 = scmp.lt.s32.totalorder %s6665_s11, 5 }
  0x94   : > { %p834_p7 = pnand %p5465_p5, %p833_p6 }
  0x95   : > { %s840_s24 = sand.u32 (!%p834_p7), 1, %s6657_s30   ;;  %s5467_s25 = sshll.u32 (!%p834_p7), %s6735_s12, 2 }
  0x96   : > { %837 = sbr.rel (%p834_p7) target bundleno = 1530 (0x5fa), region = 75  ;;  %s5466_s26 = sshll.u32 (!%p834_p7), %s840_s24, 11 }
  0x97   : > { %p882_p8 = scmp.lt.s32.totalorder (!%p834_p7), %s5467_s25, 15  ;;  %s5468_s27 = sshll.u32 (!%p834_p7), %s6735_s12, 6 }
  0x98   : > { %p887_p9 = scmp.lt.s32.totalorder (!%p834_p7), %s5468_s27, 255  ;;  %s7287_s30 = scalar_lea.vmem (!%p834_p7), [#allocation4], %s5466_s26 }
  0x99   : > { %p5471_p10 = scmp.ne.s32.totalorder (!%p834_p7), %s6735_s12, 0 }
  0x9d   : > { %s8511_s25 = smov (!%p882_p8, %s5467_s25), 15  ;;  %s8513_s27 = smov (!%p887_p9, %s5468_s27), 255 }
  0x9e   : > { %s884_s14 = scalar_lea.vmem %s8503_s6, %s8511_s25  ;;  %s6064_s11 = sshll.u32 %s8513_s27, 3  ;;  %v6143_v0 = vld [vmem:[%s8498_s1 + $0x4] ss:$16 sps:$4 sm:$0xff] (!%p5471_p10)   ;;  %v6145_v1 = vld [vmem:[%s8498_s1] ss:$16 sps:$4 sm:$0xff] (!%p5471_p10)   ;;  %v6667_v2 = vmov (!%p5471_p10), 0  }
  0x9f   : > { %s7285_s18 = scalar_lea.vmem %s8504_s7, %s6064_s11  ;;  %897 = sbr.rel (%p5471_p10) target bundleno = 799 (0x31f), region = 83  ;;  %1006 = vmatprep.mubr.bf16.mxu0 (!%p5471_p10), %v6667_v2  ;;  %1047 = vmatprep.mubr.bf16.mxu1 (!%p5471_p10), %v6667_v2  ;;  %v6146_v3 = vld [vmem:[%s8498_s1 + $0x24] ss:$16 sps:$4 sm:$0xff] (!%p5471_p10)   ;;  %v6148_v4 = vld [vmem:[%s8498_s1 + $0x20] ss:$16 sps:$4 sm:$0xff] (!%p5471_p10)   ;;  %v1065_v13 = vld [vmem:[%s8500_s3 + $0x8] sm:$0xff] (!%p5471_p10) }
  0xa0   : > { %974 = vmatprep.subr.bf16.mxu0 (!%p5471_p10), %v6143_v0  ;;  %v898_v5 = vld [vmem:[%s8497_s0] sm:$0xff] (!%p5471_p10)  ;;  %v6149_v6 = vld [vmem:[%s8498_s1 + $0xc] ss:$16 sps:$4 sm:$0xff] (!%p5471_p10)   ;;  %v6151_v7 = vld [vmem:[%s8498_s1 + $0x8] ss:$16 sps:$4 sm:$0xff] (!%p5471_p10)   ;;  %vm970_vm0 = vcmask (!%p5471_p10), 261120  }
  0xa1   : > { %975 = vmatpush1.bf16.msra.mxu0 (!%p5471_p10), %v6145_v1  ;;  %1015 = vmatprep.subr.bf16.mxu1 (!%p5471_p10), %v6149_v6  ;;  %v6152_v8 = vld [vmem:[%s8498_s1 + $0x2c] ss:$16 sps:$4 sm:$0xff] (!%p5471_p10)   ;;  %v6154_v9 = vld [vmem:[%s8498_s1 + $0x28] ss:$16 sps:$4 sm:$0xff] (!%p5471_p10)   ;;  %v1064_v10 = vld [vmem:[%s8500_s3] sm:$0xff] (!%p5471_p10)  ;;  %v899_v11 = vpack.c.bf16 (!%p5471_p10), %v898_v5, %v898_v5 }
  0xa2   : > { %976 = vmatprep.subr.bf16.mxu0 (!%p5471_p10), %v6146_v3  ;;  %1016 = vmatpush1.bf16.msra.mxu1 (!%p5471_p10), %v6151_v7  ;;  %v1068_v12 = vld [vmem:[%s8500_s3 + $0x20] sm:$0xff] (!%p5471_p10)  ;;  %v1069_v14 = vld [vmem:[%s8500_s3 + $0x28] sm:$0xff] (!%p5471_p10) }
  0xa3   : > { %1017 = vmatprep.subr.bf16.mxu1 (!%p5471_p10), %v6152_v8  ;;  %v5482_v15 = vcombine.low (!%p5471_p10), %v1064_v10, %v1068_v12  ;;  %v5483_v16 = vcombine.high (!%p5471_p10), %v1064_v10, %v1068_v12  ;;  %v1072_v17 = vld [vmem:[%s8500_s3 + $0x40] sm:$0xff] (!%p5471_p10)  ;;  %v5485_v19 = vcombine.high (!%p5471_p10), %v1065_v13, %v1069_v14  ;;  %v1073_v21 = vld [vmem:[%s8500_s3 + $0x48] sm:$0xff] (!%p5471_p10)  ;;  %v5484_v25 = vcombine.low (!%p5471_p10), %v1065_v13, %v1069_v14 }
  0xa4   : > { %v1076_v18 = vld [vmem:[%s8500_s3 + $0x60] sm:$0xff] (!%p5471_p10)  ;;  %v1077_v22 = vld [vmem:[%s8500_s3 + $0x68] sm:$0xff] (!%p5471_p10) }
  0xa5   : > { %977 = vmatpush1.bf16.msra.mxu0 (!%p5471_p10), %v6148_v4  ;;  %v5491_v20 = vcombine.high (!%p5471_p10), %v1072_v17, %v1076_v18  ;;  %v1080_v23 = vld [vmem:[%s8500_s3 + $0x80] sm:$0xff] (!%p5471_p10)  ;;  %v5490_v26 = vcombine.low (!%p5471_p10), %v1072_v17, %v1076_v18  ;;  %v5493_v27 = vcombine.high (!%p5471_p10), %v1073_v21, %v1077_v22  ;;  %v1081_v29 = vld [vmem:[%s8500_s3 + $0x88] sm:$0xff] (!%p5471_p10)  ;;  %v5492_v33 = vcombine.low (!%p5471_p10), %v1073_v21, %v1077_v22 }
  0xa6   : > { %2642 = vmatprep.subr.bf16.mxu0 %v5483_v16  ;;  %v1084_v24 = vld [vmem:[%s8500_s3 + $0xa0] sm:$0xff]  ;;  %1018 = vmatpush1.bf16.msra.mxu1 %v6154_v9  ;;  %v1085_v30 = vld [vmem:[%s8500_s3 + $0xa8] sm:$0xff] }
  0xa7   : > { %2724 = vmatprep.subr.bf16.mxu1 %v5485_v19  ;;  %v5499_v28 = vcombine.high %v1080_v23, %v1084_v24  ;;  %v1088_v31 = vld [vmem:[%s8500_s3 + $0xc0] sm:$0xff]  ;;  %v5498_v34 = vcombine.low %v1080_v23, %v1084_v24  ;;  %v5501_v35 = vcombine.high %v1081_v29, %v1085_v30  ;;  %v1089_v37 = vld [vmem:[%s8500_s3 + $0xc8] sm:$0xff]  ;;  %v5500_v41 = vcombine.low %v1081_v29, %v1085_v30 }
  0xa8   : > { %5480 = vmatmul.mubr.msk.bf16.vlgmr.msra.gmra.mrb[0].mxu0 %vm970_vm0, %v899_v11  ;;  %v1092_v32 = vld [vmem:[%s8500_s3 + $0xe0] sm:$0xff]  ;;  %v1093_v38 = vld [vmem:[%s8500_s3 + $0xe8] sm:$0xff] }
  0xa9   : > { %2643 = vmatpush1.bf16.msra.mxu0 %v5482_v15  ;;  %5481 = vmatmul.mubr.msk.bf16.vlgmr.msra.gmra.mrb[0].mxu1 %vm970_vm0, %v899_v11  ;;  %v5507_v36 = vcombine.high %v1088_v31, %v1092_v32  ;;  %v1096_v39 = vld [vmem:[%s8500_s3 + $0x100] sm:$0xff]  ;;  %v5506_v42 = vcombine.low %v1088_v31, %v1092_v32  ;;  %v5509_v43 = vcombine.high %v1089_v37, %v1093_v38  ;;  %v1097_v45 = vld [vmem:[%s8500_s3 + $0x108] sm:$0xff] }
  0xaa   : > { %2644 = vmatprep.subr.bf16.mxu0 %v5491_v20  ;;  %2725 = vmatpush1.bf16.msra.mxu1 %v5484_v25  ;;  %v1100_v40 = vld [vmem:[%s8500_s3 + $0x120] sm:$0xff]  ;;  %v1101_v46 = vld [vmem:[%s8500_s3 + $0x128] sm:$0xff]  ;;  %v5508_v49 = vcombine.low %v1089_v37, %v1093_v38 }
  0xab   : > { %2726 = vmatprep.subr.bf16.mxu1 %v5493_v27  ;;  %v5515_v44 = vcombine.high %v1096_v39, %v1100_v40  ;;  %v1104_v47 = vld [vmem:[%s8500_s3 + $0x140] sm:$0xff]  ;;  %v5514_v50 = vcombine.low %v1096_v39, %v1100_v40  ;;  %v5517_v51 = vcombine.high %v1097_v45, %v1101_v46  ;;  %v1105_v53 = vld [vmem:[%s8500_s3 + $0x148] sm:$0xff]  ;;  %v5516_v57 = vcombine.low %v1097_v45, %v1101_v46 }
  0xac   : > { %v1108_v48 = vld [vmem:[%s8500_s3 + $0x160] sm:$0xff]  ;;  %v1109_v54 = vld [vmem:[%s8500_s3 + $0x168] sm:$0xff] }
  0xad   : > { %2645 = vmatpush1.bf16.msra.mxu0 %v5490_v26  ;;  %v5523_v52 = vcombine.high %v1104_v47, %v1108_v48  ;;  %v1112_v55 = vld [vmem:[%s8500_s3 + $0x180] sm:$0xff]  ;;  %v5522_v58 = vcombine.low %v1104_v47, %v1108_v48  ;;  %v5525_v59 = vcombine.high %v1105_v53, %v1109_v54  ;;  %v1113_v61 = vld [vmem:[%s8500_s3 + $0x188] sm:$0xff]  ;;  %v5524_v1 = vcombine.low %v1105_v53, %v1109_v54 }
  0xae   : > { %2646 = vmatprep.subr.bf16.mxu0 %v5499_v28  ;;  %2727 = vmatpush1.bf16.msra.mxu1 %v5492_v33  ;;  %v1116_v56 = vld [vmem:[%s8500_s3 + $0x1a0] sm:$0xff]  ;;  %v1117_v62 = vld [vmem:[%s8500_s3 + $0x1a8] sm:$0xff] }
  0xaf   : > { %2728 = vmatprep.subr.bf16.mxu1 %v5501_v35  ;;  %v5531_v60 = vcombine.high %v1112_v55, %v1116_v56  ;;  %v1120_v63 = vld [vmem:[%s8500_s3 + $0x1c0] sm:$0xff]  ;;  %v5530_v2 = vcombine.low %v1112_v55, %v1116_v56  ;;  %v5533_v3 = vcombine.high %v1113_v61, %v1117_v62  ;;  %v1121_v5 = vld [vmem:[%s8500_s3 + $0x1c8] sm:$0xff]  ;;  %v5532_v9 = vcombine.low %v1113_v61, %v1117_v62 }
  0xb0   : > { %v1124_v0 = vld [vmem:[%s8500_s3 + $0x1e0] sm:$0xff]  ;;  %v1125_v6 = vld [vmem:[%s8500_s3 + $0x1e8] sm:$0xff] }
  0xb1   : > { %2647 = vmatpush1.bf16.msra.mxu0 %v5498_v34  ;;  %v5539_v4 = vcombine.high %v1120_v63, %v1124_v0  ;;  %v1128_v7 = vld [vmem:[%s8500_s3 + $0x200] sm:$0xff]  ;;  %v5538_v10 = vcombine.low %v1120_v63, %v1124_v0  ;;  %v5541_v11 = vcombine.high %v1121_v5, %v1125_v6  ;;  %v1129_v13 = vld [vmem:[%s8500_s3 + $0x208] sm:$0xff]  ;;  %v5540_v17 = vcombine.low %v1121_v5, %v1125_v6 }
  0xb2   : > { %2648 = vmatprep.subr.bf16.mxu0 %v5507_v36  ;;  %2729 = vmatpush1.bf16.msra.mxu1 %v5500_v41  ;;  %v1132_v8 = vld [vmem:[%s8500_s3 + $0x220] sm:$0xff]  ;;  %v1133_v14 = vld [vmem:[%s8500_s3 + $0x228] sm:$0xff] }
  0xb3   : > { %2730 = vmatprep.subr.bf16.mxu1 %v5509_v43  ;;  %v5547_v12 = vcombine.high %v1128_v7, %v1132_v8  ;;  %v1136_v15 = vld [vmem:[%s8500_s3 + $0x240] sm:$0xff]  ;;  %v5546_v18 = vcombine.low %v1128_v7, %v1132_v8  ;;  %v5549_v19 = vcombine.high %v1129_v13, %v1133_v14  ;;  %v1137_v21 = vld [vmem:[%s8500_s3 + $0x248] sm:$0xff]  ;;  %v5548_v25 = vcombine.low %v1129_v13, %v1133_v14 }
  0xb4   : > { %v1140_v16 = vld [vmem:[%s8500_s3 + $0x260] sm:$0xff]  ;;  %v1141_v22 = vld [vmem:[%s8500_s3 + $0x268] sm:$0xff] }
  0xb5   : > { %2649 = vmatpush1.bf16.msra.mxu0 %v5506_v42  ;;  %v5555_v20 = vcombine.high %v1136_v15, %v1140_v16  ;;  %v1144_v23 = vld [vmem:[%s8500_s3 + $0x280] sm:$0xff]  ;;  %v5554_v26 = vcombine.low %v1136_v15, %v1140_v16  ;;  %v5557_v27 = vcombine.high %v1137_v21, %v1141_v22  ;;  %v1145_v29 = vld [vmem:[%s8500_s3 + $0x288] sm:$0xff]  ;;  %v5556_v33 = vcombine.low %v1137_v21, %v1141_v22 }
  0xb6   : > { %2650 = vmatprep.subr.bf16.mxu0 %v5515_v44  ;;  %2731 = vmatpush1.bf16.msra.mxu1 %v5508_v49  ;;  %v1148_v24 = vld [vmem:[%s8500_s3 + $0x2a0] sm:$0xff]  ;;  %v1149_v30 = vld [vmem:[%s8500_s3 + $0x2a8] sm:$0xff] }
  0xb7   : > { %2732 = vmatprep.subr.bf16.mxu1 %v5517_v51  ;;  %v5563_v28 = vcombine.high %v1144_v23, %v1148_v24  ;;  %v1152_v31 = vld [vmem:[%s8500_s3 + $0x2c0] sm:$0xff]  ;;  %v5562_v34 = vcombine.low %v1144_v23, %v1148_v24  ;;  %v5565_v35 = vcombine.high %v1145_v29, %v1149_v30  ;;  %v1153_v37 = vld [vmem:[%s8500_s3 + $0x2c8] sm:$0xff]  ;;  %v5564_v41 = vcombine.low %v1145_v29, %v1149_v30 }
  0xb8   : > { %v1156_v32 = vld [vmem:[%s8500_s3 + $0x2e0] sm:$0xff]  ;;  %v1157_v38 = vld [vmem:[%s8500_s3 + $0x2e8] sm:$0xff] }
  0xb9   : > { %2651 = vmatpush1.bf16.msra.mxu0 %v5514_v50  ;;  %v5571_v36 = vcombine.high %v1152_v31, %v1156_v32  ;;  %v1160_v39 = vld [vmem:[%s8500_s3 + $0x300] sm:$0xff]  ;;  %v5570_v42 = vcombine.low %v1152_v31, %v1156_v32  ;;  %v5573_v43 = vcombine.high %v1153_v37, %v1157_v38  ;;  %v1161_v45 = vld [vmem:[%s8500_s3 + $0x308] sm:$0xff]  ;;  %v5572_v49 = vcombine.low %v1153_v37, %v1157_v38 }
  0xba   : > { %2652 = vmatprep.subr.bf16.mxu0 %v5523_v52  ;;  %2733 = vmatpush1.bf16.msra.mxu1 %v5516_v57  ;;  %v1164_v40 = vld [vmem:[%s8500_s3 + $0x320] sm:$0xff]  ;;  %v1165_v46 = vld [vmem:[%s8500_s3 + $0x328] sm:$0xff] }
  0xbb   : > { %2734 = vmatprep.subr.bf16.mxu1 %v5525_v59  ;;  %v5579_v44 = vcombine.high %v1160_v39, %v1164_v40  ;;  %v1168_v47 = vld [vmem:[%s8500_s3 + $0x340] sm:$0xff]  ;;  %v5578_v50 = vcombine.low %v1160_v39, %v1164_v40  ;;  %v5581_v51 = vcombine.high %v1161_v45, %v1165_v46  ;;  %v1169_v53 = vld [vmem:[%s8500_s3 + $0x348] sm:$0xff]  ;;  %v5580_v55 = vcombine.low %v1161_v45, %v1165_v46 }
  0xbc   : > { %v1172_v48 = vld [vmem:[%s8500_s3 + $0x360] sm:$0xff]  ;;  %v1173_v54 = vld [vmem:[%s8500_s3 + $0x368] sm:$0xff] }
  0xbd   : > { %2653 = vmatpush1.bf16.msra.mxu0 %v5522_v58  ;;  %v5587_v52 = vcombine.high %v1168_v47, %v1172_v48  ;;  %v5586_v56 = vcombine.low %v1168_v47, %v1172_v48  ;;  %v5589_v57 = vcombine.high %v1169_v53, %v1173_v54  ;;  %v5588_v58 = vcombine.low %v1169_v53, %v1173_v54  ;;  %v1176_v59 = vld [vmem:[%s8500_s3 + $0x380] sm:$0xff]  ;;  %v1177_v61 = vld [vmem:[%s8500_s3 + $0x388] sm:$0xff] }
  0xbe   : > { %2654 = vmatprep.subr.bf16.mxu0 %v5531_v60  ;;  %2735 = vmatpush1.bf16.msra.mxu1 %v5524_v1  ;;  %v1180_v60 = vld [vmem:[%s8500_s3 + $0x3a0] sm:$0xff]  ;;  %v1181_v63 = vld [vmem:[%s8500_s3 + $0x3a8] sm:$0xff] }
  0xbf   : > { %2736 = vmatprep.subr.bf16.mxu1 %v5533_v3  ;;  %v5595_v62 = vcombine.high %v1176_v59, %v1180_v60  ;;  %v5594_v0 = vcombine.low %v1176_v59, %v1180_v60  ;;  %v5596_v1 = vcombine.low %v1177_v61, %v1181_v63  ;;  %v1184_v3 = vld [vmem:[%s8500_s3 + $0x3c0] sm:$0xff]  ;;  %v1185_v5 = vld [vmem:[%s8500_s3 + $0x3c8] sm:$0xff] }
  0xc0   : > { %v1189_v7 = vld [vmem:[%s8500_s3 + $0x3e8] sm:$0xff]  ;;  %v7529_v22 = vld [vmem:[%s8499_s2] sm:$0xf] }
  0xc1   : > { %2655 = vmatpush1.bf16.msra.mxu0 %v5530_v2  ;;  %v5597_v2 = vcombine.high %v1177_v61, %v1181_v63  ;;  %v1193_v13 = vld [vmem:[%s8500_s3 + $0x408] sm:$0xff]  ;;  %v1204_v38 = vld [vmem:[%s8500_s3 + $0x460] sm:$0xff] }
  0xc2   : > { %2656 = vmatprep.subr.bf16.mxu0 %v5539_v4  ;;  %2737 = vmatpush1.bf16.msra.mxu1 %v5532_v9  ;;  %v1188_v4 = vld [vmem:[%s8500_s3 + $0x3e0] sm:$0xff]  ;;  %v5604_v9 = vcombine.low %v1185_v5, %v1189_v7  ;;  %v1197_v15 = vld [vmem:[%s8500_s3 + $0x428] sm:$0xff] }
  0xc3   : > { %2738 = vmatprep.subr.bf16.mxu1 %v5541_v11  ;;  %v5603_v6 = vcombine.high %v1184_v3, %v1188_v4  ;;  %v5602_v8 = vcombine.low %v1184_v3, %v1188_v4  ;;  %v1192_v11 = vld [vmem:[%s8500_s3 + $0x400] sm:$0xff]  ;;  %v1201_v39 = vld [vmem:[%s8500_s3 + $0x448] sm:$0xff] }
  0xc4   : > { %v1205_v40 = vld [vmem:[%s8500_s3 + $0x468] sm:$0xff]  ;;  %v1216_v59 = vld [vmem:[%s8500_s3 + $0x4c0] sm:$0xff] }
  0xc5   : > { %2657 = vmatpush1.bf16.msra.mxu0 %v5538_v10  ;;  %v5605_v10 = vcombine.high %v1185_v5, %v1189_v7  ;;  %v5621_v48 = vcombine.high %v1201_v39, %v1205_v40  ;;  %v1213_v53 = vld [vmem:[%s8500_s3 + $0x4a8] sm:$0xff]  ;;  %v1220_v60 = vld [vmem:[%s8500_s3 + $0x4e0] sm:$0xff] }
  0xc6   : > { %2658 = vmatprep.subr.bf16.mxu0 %v5547_v12  ;;  %2739 = vmatpush1.bf16.msra.mxu1 %v5540_v17  ;;  %v1196_v12 = vld [vmem:[%s8500_s3 + $0x420] sm:$0xff]  ;;  %v5612_v17 = vcombine.low %v1193_v13, %v1197_v15  ;;  %v1217_v61 = vld [vmem:[%s8500_s3 + $0x4c8] sm:$0xff]  ;;  %v5634_v7 = vcombine.low %v1216_v59, %v1220_v60 }
  0xc7   : > { %2740 = vmatprep.subr.bf16.mxu1 %v5549_v19  ;;  %v5611_v14 = vcombine.high %v1192_v11, %v1196_v12  ;;  %v5610_v16 = vcombine.low %v1192_v11, %v1196_v12  ;;  %v910_v19 = vlaneseq  ;;  %v1224_v3 = vld [vmem:[%s8500_s3 + $0x500] sm:$0xff]  ;;  %v1225_v5 = vld [vmem:[%s8500_s3 + $0x508] sm:$0xff] }
  0xc8   : > { %v1228_v4 = vld [vmem:[%s8500_s3 + $0x520] sm:$0xff] }
  0xc9   : > { %2659 = vmatpush1.bf16.msra.mxu0 %v5546_v18  ;;  %v5613_v18 = vcombine.high %v1193_v13, %v1197_v15  ;;  %v1232_v11 = vld [vmem:[%s8500_s3 + $0x540] sm:$0xff]  ;;  %v1233_v13 = vld [vmem:[%s8500_s3 + $0x548] sm:$0xff]  ;;  %v5642_v15 = vcombine.low %v1224_v3, %v1228_v4 }
  0xca   : > { %2660 = vmatprep.subr.bf16.mxu0 %v5555_v20  ;;  %2741 = vmatpush1.bf16.msra.mxu1 %v5548_v25  ;;  %v7523_v20 = vshrl.u32 %v910_v19, 7  ;;  %v1236_v12 = vld [vmem:[%s8500_s3 + $0x560] sm:$0xff] }
  0xcb   : > { %2742 = vmatprep.subr.bf16.mxu1 %v5557_v27  ;;  %v1240_v19 = vld [vmem:[%s8500_s3 + $0x580] sm:$0xff] }
  0xcc   : > { %v912_v21 = vsub.s32 0, %v7523_v20  ;;  %v916_v23 = vsub.s32 1, %v7523_v20  ;;  %v924_v25 = vsub.s32 3, %v7523_v20 }
  0xcd   : > { %2661 = vmatpush1.bf16.msra.mxu0 %v5554_v26 }
  0xce   : > { %2662 = vmatprep.subr.bf16.mxu0 %v5563_v28  ;;  %2743 = vmatpush1.bf16.msra.mxu1 %v5556_v33  ;;  %v913_v24 = vrot.slane %v7529_v22, %v912_v21  ;;  %v917_v26 = vrot.slane %v7529_v22, %v916_v23  ;;  %v925_v30 = vrot.slane %v7529_v22, %v924_v25 }
  0xcf   : > { %2744 = vmatprep.subr.bf16.mxu1 %v5565_v35  ;;  %v1200_v35 = vld [vmem:[%s8500_s3 + $0x440] sm:$0xff] }
  0xd0   : > { %v5619_v47 = vcombine.high %v1200_v35, %v1204_v38 }
  0xd1   : > { %2663 = vmatpush1.bf16.msra.mxu0 %v5562_v34 }
  0xd2   : > { %2664 = vmatprep.subr.bf16.mxu0 %v5571_v36  ;;  %2745 = vmatpush1.bf16.msra.mxu1 %v5564_v41 }
  0xd3   : > { %2746 = vmatprep.subr.bf16.mxu1 %v5573_v43 }
  0xd5   : > { %2665 = vmatpush1.bf16.msra.mxu0 %v5570_v42 }
  0xd6   : > { %2666 = vmatprep.subr.bf16.mxu0 %v5579_v44  ;;  %2747 = vmatpush1.bf16.msra.mxu1 %v5572_v49  ;;  %v1208_v49 = vld [vmem:[%s8500_s3 + $0x480] sm:$0xff] }
  0xd7   : > { %2748 = vmatprep.subr.bf16.mxu1 %v5581_v51  ;;  %v1212_v51 = vld [vmem:[%s8500_s3 + $0x4a0] sm:$0xff] }
  0xd8   : > { %v5626_v63 = vcombine.low %v1208_v49, %v1212_v51 }
  0xd9   : > { %2667 = vmatpush1.bf16.msra.mxu0 %v5578_v50 }
  0xda   : > { %2668 = vmatprep.subr.bf16.mxu0 %v5587_v52  ;;  %2749 = vmatpush1.bf16.msra.mxu1 %v5580_v55  ;;  %v1209_v52 = vld [vmem:[%s8500_s3 + $0x488] sm:$0xff]  ;;  %v5618_v55 = vcombine.low %v1200_v35, %v1204_v38 }
  0xdb   : > { %2750 = vmatprep.subr.bf16.mxu1 %v5589_v57  ;;  %v5627_v57 = vcombine.high %v1208_v49, %v1212_v51  ;;  %v1253_v35 = vld [vmem:[%s8500_s3 + $0x5e8] sm:$0xff]  ;;  %v1264_v51 = vld [vmem:[%s8500_s3 + $0x640] sm:$0xff] }
  0xdd   : > { %2669 = vmatpush1.bf16.msra.mxu0 %v5586_v56  ;;  %v5620_v56 = vcombine.low %v1201_v39, %v1205_v40 }
  0xde   : > { %2751 = vmatpush1.bf16.msra.mxu1 %v5588_v58  ;;  %2670 = vmatprep.subr.bf16.mxu0 %v5595_v62  ;;  %v5629_v58 = vcombine.high %v1209_v52, %v1213_v53  ;;  %v1221_v62 = vld [vmem:[%s8500_s3 + $0x4e8] sm:$0xff] }
  0xdf   : > { %2752 = vmatprep.subr.bf16.mxu1 %v5597_v2  ;;  %v5637_v2 = vcombine.high %v1217_v61, %v1221_v62 }
  0xe1   : > { %2671 = vmatpush1.bf16.msra.mxu0 %v5594_v0  ;;  %v5628_v0 = vcombine.low %v1209_v52, %v1213_v53  ;;  %v1268_v52 = vld [vmem:[%s8500_s3 + $0x660] sm:$0xff]  ;;  %v1265_v53 = vld [vmem:[%s8500_s3 + $0x648] sm:$0xff] }
  0xe2   : > { %2753 = vmatpush1.bf16.msra.mxu1 %v5596_v1  ;;  %2672 = vmatprep.subr.bf16.mxu0 %v5603_v6  ;;  %v5635_v1 = vcombine.high %v1216_v59, %v1220_v60  ;;  %v1229_v6 = vld [vmem:[%s8500_s3 + $0x528] sm:$0xff]  ;;  %v1272_v60 = vld [vmem:[%s8500_s3 + $0x680] sm:$0xff] }
  0xe3   : > { %2754 = vmatprep.subr.bf16.mxu1 %v5605_v10  ;;  %v5645_v10 = vcombine.high %v1225_v5, %v1229_v6 }
  0xe5   : > { %2673 = vmatpush1.bf16.msra.mxu0 %v5602_v8  ;;  %v5636_v8 = vcombine.low %v1217_v61, %v1221_v62  ;;  %v1276_v61 = vld [vmem:[%s8500_s3 + $0x6a0] sm:$0xff]  ;;  %v1273_v62 = vld [vmem:[%s8500_s3 + $0x688] sm:$0xff] }
  0xe6   : > { %2755 = vmatpush1.bf16.msra.mxu1 %v5604_v9  ;;  %2683 = vmatprep.subr.bf16.mxu0 %v5611_v14  ;;  %v5643_v9 = vcombine.high %v1224_v3, %v1228_v4  ;;  %v1237_v14 = vld [vmem:[%s8500_s3 + $0x568] sm:$0xff]  ;;  %v1280_v4 = vld [vmem:[%s8500_s3 + $0x6c0] sm:$0xff] }
  0xe7   : > { %2765 = vmatprep.subr.bf16.mxu1 %v5613_v18  ;;  %v5653_v18 = vcombine.high %v1233_v13, %v1237_v14 }
 0x17b   : > { %v1008_v27 = vpop.f32.mrb[0].mxu0 }
 0x17c   : > { %v1009_v28 = vadd.f32 %v1008_v27, %v913_v24  ;;  %v1010_v29 = vpop.f32.mrb[1].mxu0  ;;  %v7545_v36 = vpop.f32.mrb[0].mxu1  ;;  %v1244_v24 = vld [vmem:[%s8500_s3 + $0x5a0] sm:$0xff]  ;;  %v1245_v27 = vld [vmem:[%s8500_s3 + $0x5a8] sm:$0xff] }
 0x17d   : > { %v1011_v31 = vadd.f32 %v1010_v29, %v917_v26  ;;  %v1012_v32 = vpop.f32.mrb[2].mxu0  ;;  %v1051_v41 = vpop.f32.mrb[1].mxu1  ;;  %v1241_v26 = vld [vmem:[%s8500_s3 + $0x588] sm:$0xff]  ;;  %v5652_v29 = vcombine.low %v1233_v13, %v1237_v14  ;;  %v1292_v13 = vld [vmem:[%s8500_s3 + $0x720] sm:$0xff] }
 0x17e   : > { %v1056_v33 = vmax.f32 %v1009_v28, 0.0  ;;  %v1013_v34 = vpop.f32.mrb[3].mxu0  ;;  %v1052_v42 = vadd.f32 %v1051_v41, %v925_v30  ;;  %v1053_v43 = vpop.f32.mrb[2].mxu1  ;;  %v5650_v28 = vcombine.low %v1232_v11, %v1236_v12  ;;  %v5659_v30 = vcombine.high %v1240_v19, %v1244_v24  ;;  %v1248_v32 = vld [vmem:[%s8500_s3 + $0x5c0] sm:$0xff]  ;;  %v1289_v14 = vld [vmem:[%s8500_s3 + $0x708] sm:$0xff] }
 0x17f   : > { %v1057_v37 = vmax.f32 %v1011_v31, 0.0  ;;  %v1054_v45 = vpop.f32.mrb[3].mxu1  ;;  %v5661_v31 = vcombine.high %v1241_v26, %v1245_v27  ;;  %v1249_v34 = vld [vmem:[%s8500_s3 + $0x5c8] sm:$0xff]  ;;  %v5660_v38 = vcombine.low %v1241_v26, %v1245_v27  ;;  %v1256_v41 = vld [vmem:[%s8500_s3 + $0x600] sm:$0xff] }
 0x180   : > { %v7558_v46 = vpack.c.bf16 %v1056_v33, %v1056_v33  ;;  %v1059_v50 = vmax.f32 %v1052_v42, 0.0  ;;  %v1252_v33 = vld [vmem:[%s8500_s3 + $0x5e0] sm:$0xff]  ;;  %v5669_v40 = vcombine.high %v1249_v34, %v1253_v35  ;;  %v1257_v43 = vld [vmem:[%s8500_s3 + $0x608] sm:$0xff] }
 0x181   : > { %v7556_v44 = vpack.c.bf16 %v1057_v37, %v1057_v37  ;;  %v5658_v37 = vcombine.low %v1240_v19, %v1244_v24  ;;  %v5667_v39 = vcombine.high %v1248_v32, %v1252_v33  ;;  %v1260_v42 = vld [vmem:[%s8500_s3 + $0x620] sm:$0xff]  ;;  %v1261_v45 = vld [vmem:[%s8500_s3 + $0x628] sm:$0xff] }
 0x182   : > { %v7576_v54 = vpack.c.bf16 %v1059_v50, %v1059_v50  ;;  %v5675_v49 = vcombine.high %v1256_v41, %v1260_v42  ;;  %v5677_v50 = vcombine.high %v1257_v43, %v1261_v45  ;;  %v1296_v24 = vld [vmem:[%s8500_s3 + $0x740] sm:$0xff]  ;;  %v1297_v27 = vld [vmem:[%s8500_s3 + $0x748] sm:$0xff] }
 0x183   : > { %2674 = vmatprep.mubr.bf16.mxu0 %v7556_v44  ;;  %2756 = vmatprep.mubr.bf16.mxu1 %v7556_v44  ;;  %v1300_v26 = vld [vmem:[%s8500_s3 + $0x760] sm:$0xff] }
 0x184   : > { %2675 = vmatmul.mubr.bf16.vlgmr.msra.gmra.mrb[4].mxu0 %v7558_v46  ;;  %2757 = vmatmul.mubr.bf16.vlgmr.msra.gmra.mrb[4].mxu1 %v7558_v46 }
 0x185   : > { %2684 = vmatpush1.bf16.msra.mxu0 %v5610_v16  ;;  %2766 = vmatpush1.bf16.msra.mxu1 %v5612_v17  ;;  %v5644_v16 = vcombine.low %v1225_v5, %v1229_v6  ;;  %v5651_v17 = vcombine.high %v1232_v11, %v1236_v12  ;;  %v1284_v5 = vld [vmem:[%s8500_s3 + $0x6e0] sm:$0xff]  ;;  %v1281_v6 = vld [vmem:[%s8500_s3 + $0x6c8] sm:$0xff] }
 0x186   : > { %2685 = vmatprep.subr.bf16.mxu0 %v5619_v47  ;;  %2767 = vmatprep.subr.bf16.mxu1 %v5621_v48  ;;  %v5666_v47 = vcombine.low %v1248_v32, %v1252_v33  ;;  %v5668_v48 = vcombine.low %v1249_v34, %v1253_v35  ;;  %v1288_v12 = vld [vmem:[%s8500_s3 + $0x700] sm:$0xff]  ;;  %v5715_v32 = vcombine.high %v1296_v24, %v1300_v26 }
 0x187   : > { %2715 = vmatprep.mubr.bf16.mxu0 %v7576_v54  ;;  %2797 = vmatprep.mubr.bf16.mxu1 %v7576_v54  ;;  %v1304_v34 = vld [vmem:[%s8500_s3 + $0x780] sm:$0xff] }
 0x188   : > { %v1308_v35 = vld [vmem:[%s8500_s3 + $0x7a0] sm:$0xff] }
 0x189   : > { %2686 = vmatpush1.bf16.msra.mxu0 %v5618_v55  ;;  %2768 = vmatpush1.bf16.msra.mxu1 %v5620_v56  ;;  %v1269_v55 = vld [vmem:[%s8500_s3 + $0x668] sm:$0xff]  ;;  %v5674_v56 = vcombine.low %v1256_v41, %v1260_v42  ;;  %v5723_v42 = vcombine.high %v1304_v34, %v1308_v35 }
 0x18a   : > { %2687 = vmatprep.subr.bf16.mxu0 %v5627_v57  ;;  %2769 = vmatprep.subr.bf16.mxu1 %v5629_v58  ;;  %v5676_v57 = vcombine.low %v1257_v43, %v1261_v45  ;;  %v5683_v58 = vcombine.high %v1264_v51, %v1268_v52  ;;  %v5685_v59 = vcombine.high %v1265_v53, %v1269_v55  ;;  %v1312_v45 = vld [vmem:[%s8500_s3 + $0x7c0] sm:$0xff] }
 0x18d   : > { %2688 = vmatpush1.bf16.msra.mxu0 %v5626_v63  ;;  %2770 = vmatpush1.bf16.msra.mxu1 %v5628_v0  ;;  %v1277_v63 = vld [vmem:[%s8500_s3 + $0x6a8] sm:$0xff]  ;;  %v5682_v0 = vcombine.low %v1264_v51, %v1268_v52 }
 0x18e   : > { %2689 = vmatprep.subr.bf16.mxu0 %v5635_v1  ;;  %2771 = vmatprep.subr.bf16.mxu1 %v5637_v2  ;;  %v5684_v1 = vcombine.low %v1265_v53, %v1269_v55  ;;  %v5691_v2 = vcombine.high %v1272_v60, %v1276_v61  ;;  %v5693_v3 = vcombine.high %v1273_v62, %v1277_v63  ;;  %v1066_v55 = vld [vmem:[%s8500_s3 + $0x10] sm:$0xff] }
 0x191   : > { %2690 = vmatpush1.bf16.msra.mxu0 %v5634_v7  ;;  %2772 = vmatpush1.bf16.msra.mxu1 %v5636_v8  ;;  %v1285_v7 = vld [vmem:[%s8500_s3 + $0x6e8] sm:$0xff]  ;;  %v5690_v8 = vcombine.low %v1272_v60, %v1276_v61 }
 0x192   : > { %2691 = vmatprep.subr.bf16.mxu0 %v5643_v9  ;;  %2773 = vmatprep.subr.bf16.mxu1 %v5645_v10  ;;  %v5692_v9 = vcombine.low %v1273_v62, %v1277_v63  ;;  %v5699_v10 = vcombine.high %v1280_v4, %v1284_v5  ;;  %v5701_v11 = vcombine.high %v1281_v6, %v1285_v7  ;;  %v1074_v63 = vld [vmem:[%s8500_s3 + $0x50] sm:$0xff] }
 0x195   : > { %2692 = vmatpush1.bf16.msra.mxu0 %v5642_v15  ;;  %2774 = vmatpush1.bf16.msra.mxu1 %v5644_v16  ;;  %v1293_v15 = vld [vmem:[%s8500_s3 + $0x728] sm:$0xff]  ;;  %v5698_v16 = vcombine.low %v1280_v4, %v1284_v5 }
 0x196   : > { %2693 = vmatprep.subr.bf16.mxu0 %v5651_v17  ;;  %2775 = vmatprep.subr.bf16.mxu1 %v5653_v18  ;;  %v5700_v17 = vcombine.low %v1281_v6, %v1285_v7  ;;  %v5707_v18 = vcombine.high %v1288_v12, %v1292_v13  ;;  %v5709_v19 = vcombine.high %v1289_v14, %v1293_v15 }
 0x199   : > { %2694 = vmatpush1.bf16.msra.mxu0 %v5650_v28  ;;  %2776 = vmatpush1.bf16.msra.mxu1 %v5652_v29  ;;  %v1301_v28 = vld [vmem:[%s8500_s3 + $0x768] sm:$0xff]  ;;  %v920_v29 = vsub.s32 2, %v7523_v20 }
 0x19a   : > { %2695 = vmatprep.subr.bf16.mxu0 %v5659_v30  ;;  %2777 = vmatprep.subr.bf16.mxu1 %v5661_v31  ;;  %v5706_v30 = vcombine.low %v1288_v12, %v1292_v13  ;;  %v5708_v31 = vcombine.low %v1289_v14, %v1293_v15  ;;  %v5717_v33 = vcombine.high %v1297_v27, %v1301_v28 }
 0x19b   : > { %v5716_v41 = vcombine.low %v1297_v27, %v1301_v28  ;;  %v1098_v28 = vld [vmem:[%s8500_s3 + $0x110] sm:$0xff] }
 0x19d   : > { %2696 = vmatpush1.bf16.msra.mxu0 %v5658_v37  ;;  %2778 = vmatpush1.bf16.msra.mxu1 %v5660_v38  ;;  %v1305_v37 = vld [vmem:[%s8500_s3 + $0x788] sm:$0xff] }
 0x19e   : > { %2697 = vmatprep.subr.bf16.mxu0 %v5667_v39  ;;  %2779 = vmatprep.subr.bf16.mxu1 %v5669_v40  ;;  %v1309_v38 = vld [vmem:[%s8500_s3 + $0x7a8] sm:$0xff]  ;;  %v921_v39 = vrot.slane %v7529_v22, %v920_v29  ;;  %v5714_v40 = vcombine.low %v1296_v24, %v1300_v26 }
 0x19f   : > { %v5725_v43 = vcombine.high %v1305_v37, %v1309_v38  ;;  %v1313_v22 = vld [vmem:[%s8500_s3 + $0x7c8] sm:$0xff]  ;;  %v5724_v51 = vcombine.low %v1305_v37, %v1309_v38  ;;  %v1106_v38 = vld [vmem:[%s8500_s3 + $0x150] sm:$0xff] }
 0x1a1   : > { %2698 = vmatpush1.bf16.msra.mxu0 %v5666_v47  ;;  %2780 = vmatpush1.bf16.msra.mxu1 %v5668_v48  ;;  %v1316_v47 = vld [vmem:[%s8500_s3 + $0x7e0] sm:$0xff]  ;;  %v1317_v48 = vld [vmem:[%s8500_s3 + $0x7e8] sm:$0xff] }
 0x1a2   : > { %2699 = vmatprep.subr.bf16.mxu0 %v5675_v49  ;;  %2781 = vmatprep.subr.bf16.mxu1 %v5677_v50  ;;  %v1050_v49 = vadd.f32 %v7545_v36, %v921_v39  ;;  %v5722_v50 = vcombine.low %v1304_v34, %v1308_v35  ;;  %v5731_v52 = vcombine.high %v1312_v45, %v1316_v47  ;;  %v1067_v36 = vld [vmem:[%s8500_s3 + $0x18] sm:$0xff]  ;;  %v1110_v39 = vld [vmem:[%s8500_s3 + $0x170] sm:$0xff] }
 0x1a3   : > { %v5733_v53 = vcombine.high %v1313_v22, %v1317_v48  ;;  %v5732_v60 = vcombine.low %v1313_v22, %v1317_v48  ;;  %v1114_v22 = vld [vmem:[%s8500_s3 + $0x190] sm:$0xff] }
 0x1a4   : > { %v1118_v48 = vld [vmem:[%s8500_s3 + $0x1b0] sm:$0xff] }
 0x1a5   : > { %2700 = vmatpush1.bf16.msra.mxu0 %v5674_v56  ;;  %2782 = vmatpush1.bf16.msra.mxu1 %v5676_v57  ;;  %v1070_v56 = vld [vmem:[%s8500_s3 + $0x30] sm:$0xff]  ;;  %v1071_v57 = vld [vmem:[%s8500_s3 + $0x38] sm:$0xff] }
 0x1a6   : > { %2701 = vmatprep.subr.bf16.mxu0 %v5683_v58  ;;  %2783 = vmatprep.subr.bf16.mxu1 %v5685_v59  ;;  %v1058_v58 = vmax.f32 %v1050_v49, 0.0  ;;  %v5730_v59 = vcombine.low %v1312_v45, %v1316_v47  ;;  %v5487_v61 = vcombine.high %v1066_v55, %v1070_v56  ;;  %v5489_v62 = vcombine.high %v1067_v36, %v1071_v57  ;;  %v1115_v49 = vld [vmem:[%s8500_s3 + $0x198] sm:$0xff] }
 0x1a7   : > { %v5486_v4 = vcombine.low %v1066_v55, %v1070_v56  ;;  %v5488_v5 = vcombine.low %v1067_v36, %v1071_v57  ;;  %v5527_v45 = vcombine.high %v1106_v38, %v1110_v39  ;;  %v1122_v56 = vld [vmem:[%s8500_s3 + $0x1d0] sm:$0xff]  ;;  %v1123_v57 = vld [vmem:[%s8500_s3 + $0x1d8] sm:$0xff] }
 0x1a8   : > { %v1126_v36 = vld [vmem:[%s8500_s3 + $0x1f0] sm:$0xff] }
 0x1a9   : > { %2702 = vmatpush1.bf16.msra.mxu0 %v5682_v0  ;;  %2784 = vmatpush1.bf16.msra.mxu1 %v5684_v1  ;;  %v7756_v0 = vpack.c.bf16 %v1058_v58, %v1058_v58  ;;  %v1078_v1 = vld [vmem:[%s8500_s3 + $0x70] sm:$0xff]  ;;  %v1127_v58 = vld [vmem:[%s8500_s3 + $0x1f8] sm:$0xff] }
 0x1aa   : > { %2703 = vmatprep.subr.bf16.mxu0 %v5691_v2  ;;  %2785 = vmatprep.subr.bf16.mxu1 %v5693_v3  ;;  %v1075_v2 = vld [vmem:[%s8500_s3 + $0x58] sm:$0xff]  ;;  %v5495_v6 = vcombine.high %v1074_v63, %v1078_v1  ;;  %v5494_v12 = vcombine.low %v1074_v63, %v1078_v1  ;;  %v1130_v63 = vld [vmem:[%s8500_s3 + $0x210] sm:$0xff] }
 0x1ab   : > { %v1079_v3 = vld [vmem:[%s8500_s3 + $0x78] sm:$0xff]  ;;  %v1134_v1 = vld [vmem:[%s8500_s3 + $0x230] sm:$0xff] }
 0x1ac   : > { %v5497_v7 = vcombine.high %v1075_v2, %v1079_v3  ;;  %v5496_v13 = vcombine.low %v1075_v2, %v1079_v3  ;;  %v1131_v2 = vld [vmem:[%s8500_s3 + $0x218] sm:$0xff] }
 0x1ad   : > { %2704 = vmatpush1.bf16.msra.mxu0 %v5690_v8  ;;  %2786 = vmatpush1.bf16.msra.mxu1 %v5692_v9  ;;  %v1082_v8 = vld [vmem:[%s8500_s3 + $0x90] sm:$0xff]  ;;  %v1135_v3 = vld [vmem:[%s8500_s3 + $0x238] sm:$0xff] }
 0x1ae   : > { %2705 = vmatprep.subr.bf16.mxu0 %v5699_v10  ;;  %2787 = vmatprep.subr.bf16.mxu1 %v5701_v11  ;;  %v1086_v9 = vld [vmem:[%s8500_s3 + $0xb0] sm:$0xff]  ;;  %v1083_v10 = vld [vmem:[%s8500_s3 + $0x98] sm:$0xff] }
 0x1af   : > { %v1087_v11 = vld [vmem:[%s8500_s3 + $0xb8] sm:$0xff]  ;;  %v5503_v14 = vcombine.high %v1082_v8, %v1086_v9 }
 0x1b0   : > { %v5505_v15 = vcombine.high %v1083_v10, %v1087_v11  ;;  %v5504_v24 = vcombine.low %v1083_v10, %v1087_v11  ;;  %v1139_v10 = vld [vmem:[%s8500_s3 + $0x258] sm:$0xff] }
 0x1b1   : > { %2706 = vmatpush1.bf16.msra.mxu0 %v5698_v16  ;;  %2788 = vmatpush1.bf16.msra.mxu1 %v5700_v17  ;;  %v1090_v16 = vld [vmem:[%s8500_s3 + $0xd0] sm:$0xff]  ;;  %v1143_v11 = vld [vmem:[%s8500_s3 + $0x278] sm:$0xff] }
 0x1b2   : > { %2707 = vmatprep.subr.bf16.mxu0 %v5707_v18  ;;  %2789 = vmatprep.subr.bf16.mxu1 %v5709_v19  ;;  %v1094_v17 = vld [vmem:[%s8500_s3 + $0xf0] sm:$0xff]  ;;  %v1091_v18 = vld [vmem:[%s8500_s3 + $0xd8] sm:$0xff]  ;;  %v5502_v19 = vcombine.low %v1082_v8, %v1086_v9 }
 0x1b3   : > { %v5511_v26 = vcombine.high %v1090_v16, %v1094_v17  ;;  %v1138_v8 = vld [vmem:[%s8500_s3 + $0x250] sm:$0xff] }
 0x1b4   : > { %v1142_v9 = vld [vmem:[%s8500_s3 + $0x270] sm:$0xff] }
 0x1b5   : > { %2708 = vmatpush1.bf16.msra.mxu0 %v5706_v30  ;;  %2790 = vmatpush1.bf16.msra.mxu1 %v5708_v31  ;;  %v1102_v30 = vld [vmem:[%s8500_s3 + $0x130] sm:$0xff]  ;;  %v1099_v31 = vld [vmem:[%s8500_s3 + $0x118] sm:$0xff] }
 0x1b6   : > { %2709 = vmatprep.subr.bf16.mxu0 %v5715_v32  ;;  %2791 = vmatprep.subr.bf16.mxu1 %v5717_v33  ;;  %v1103_v32 = vld [vmem:[%s8500_s3 + $0x138] sm:$0xff]  ;;  %v5510_v33 = vcombine.low %v1090_v16, %v1094_v17  ;;  %v5519_v35 = vcombine.high %v1098_v28, %v1102_v30  ;;  %v1146_v16 = vld [vmem:[%s8500_s3 + $0x290] sm:$0xff] }
 0x1b7   : > { %v5521_v37 = vcombine.high %v1099_v31, %v1103_v32  ;;  %v1150_v17 = vld [vmem:[%s8500_s3 + $0x2b0] sm:$0xff] }
 0x1b9   : > { %2710 = vmatpush1.bf16.msra.mxu0 %v5714_v40  ;;  %2792 = vmatpush1.bf16.msra.mxu1 %v5716_v41  ;;  %v1107_v40 = vld [vmem:[%s8500_s3 + $0x158] sm:$0xff] }
 0x1ba   : > { %2711 = vmatprep.subr.bf16.mxu0 %v5723_v42  ;;  %2793 = vmatprep.subr.bf16.mxu1 %v5725_v43  ;;  %v1111_v41 = vld [vmem:[%s8500_s3 + $0x178] sm:$0xff]  ;;  %v5518_v42 = vcombine.low %v1098_v28, %v1102_v30  ;;  %v5520_v43 = vcombine.low %v1099_v31, %v1103_v32  ;;  %v1154_v28 = vld [vmem:[%s8500_s3 + $0x2d0] sm:$0xff] }
 0x1bb   : > { %v5529_v47 = vcombine.high %v1107_v40, %v1111_v41  ;;  %v1158_v30 = vld [vmem:[%s8500_s3 + $0x2f0] sm:$0xff]  ;;  %v1155_v31 = vld [vmem:[%s8500_s3 + $0x2d8] sm:$0xff] }
 0x1bc   : > { %v1159_v32 = vld [vmem:[%s8500_s3 + $0x2f8] sm:$0xff] }
 0x1bd   : > { %2712 = vmatpush1.bf16.msra.mxu0 %v5722_v50  ;;  %2794 = vmatpush1.bf16.msra.mxu1 %v5724_v51  ;;  %v1119_v50 = vld [vmem:[%s8500_s3 + $0x1b8] sm:$0xff]  ;;  %v5526_v51 = vcombine.low %v1106_v38, %v1110_v39  ;;  %v1162_v38 = vld [vmem:[%s8500_s3 + $0x310] sm:$0xff] }
 0x1be   : > { %2713 = vmatprep.subr.bf16.mxu0 %v5731_v52  ;;  %2795 = vmatprep.subr.bf16.mxu1 %v5733_v53  ;;  %v5528_v52 = vcombine.low %v1107_v40, %v1111_v41  ;;  %v5535_v53 = vcombine.high %v1114_v22, %v1118_v48  ;;  %v5537_v55 = vcombine.high %v1115_v49, %v1119_v50  ;;  %v1166_v39 = vld [vmem:[%s8500_s3 + $0x330] sm:$0xff]  ;;  %v1163_v40 = vld [vmem:[%s8500_s3 + $0x318] sm:$0xff] }
 0x1bf   : > { %v1167_v41 = vld [vmem:[%s8500_s3 + $0x338] sm:$0xff] }
 0x1c1   : > { %2714 = vmatpush1.bf16.msra.mxu0 %v5730_v59  ;;  %2796 = vmatpush1.bf16.msra.mxu1 %v5732_v60  ;;  %v5534_v59 = vcombine.low %v1114_v22, %v1118_v48  ;;  %v5536_v60 = vcombine.low %v1115_v49, %v1119_v50  ;;  %v1170_v22 = vld [vmem:[%s8500_s3 + $0x350] sm:$0xff]  ;;  %v1171_v49 = vld [vmem:[%s8500_s3 + $0x358] sm:$0xff] }
 0x1c2   : > { %2806 = vmatprep.subr.bf16.mxu0 %v5487_v61  ;;  %2888 = vmatprep.subr.bf16.mxu1 %v5489_v62  ;;  %v5543_v61 = vcombine.high %v1122_v56, %v1126_v36  ;;  %v5545_v62 = vcombine.high %v1123_v57, %v1127_v58  ;;  %v1174_v48 = vld [vmem:[%s8500_s3 + $0x370] sm:$0xff]  ;;  %v1175_v50 = vld [vmem:[%s8500_s3 + $0x378] sm:$0xff] }
 0x1c4   : > { %2716 = vmatmul.mubr.bf16.vlgmr.msra.gmra.mrb[4].mxu0 %v7756_v0  ;;  %2798 = vmatmul.mubr.bf16.vlgmr.msra.gmra.mrb[4].mxu1 %v7756_v0 }
 0x1c5   : > { %2807 = vmatpush1.bf16.msra.mxu0 %v5486_v4  ;;  %2838 = vmatprep.mubr.bf16.mxu0 %v7556_v44  ;;  %v5542_v4 = vcombine.low %v1122_v56, %v1126_v36  ;;  %v1178_v56 = vld [vmem:[%s8500_s3 + $0x390] sm:$0xff] }
 0x1c6   : > { %2889 = vmatpush1.bf16.msra.mxu1 %v5488_v5  ;;  %2920 = vmatprep.mubr.bf16.mxu1 %v7556_v44  ;;  %v1095_v44 = vld [vmem:[%s8500_s3 + $0xf8] sm:$0xff]  ;;  %v5544_v5 = vcombine.low %v1123_v57, %v1127_v58  ;;  %v1182_v36 = vld [vmem:[%s8500_s3 + $0x3b0] sm:$0xff] }
 0x1c7   : > { %2808 = vmatprep.subr.bf16.mxu0 %v5495_v6  ;;  %2890 = vmatprep.subr.bf16.mxu1 %v5497_v7  ;;  %v5513_v27 = vcombine.high %v1091_v18, %v1095_v44  ;;  %v5512_v34 = vcombine.low %v1091_v18, %v1095_v44  ;;  %v5551_v6 = vcombine.high %v1130_v63, %v1134_v1  ;;  %v1147_v18 = vld [vmem:[%s8500_s3 + $0x298] sm:$0xff] }
 0x1c8   : > { %v5553_v7 = vcombine.high %v1131_v2, %v1135_v3  ;;  %v1151_v44 = vld [vmem:[%s8500_s3 + $0x2b8] sm:$0xff] }
 0x1c9   : > { %2809 = vmatpush1.bf16.msra.mxu0 %v5494_v12  ;;  %v5550_v12 = vcombine.low %v1130_v63, %v1134_v1  ;;  %v1179_v57 = vld [vmem:[%s8500_s3 + $0x398] sm:$0xff]  ;;  %v1186_v63 = vld [vmem:[%s8500_s3 + $0x3d0] sm:$0xff] }
 0x1ca   : > { %2891 = vmatpush1.bf16.msra.mxu1 %v5496_v13  ;;  %2810 = vmatprep.subr.bf16.mxu0 %v5503_v14  ;;  %v5552_v13 = vcombine.low %v1131_v2, %v1135_v3  ;;  %v5559_v14 = vcombine.high %v1138_v8, %v1142_v9  ;;  %v1183_v58 = vld [vmem:[%s8500_s3 + $0x3b8] sm:$0xff]  ;;  %v1190_v1 = vld [vmem:[%s8500_s3 + $0x3f0] sm:$0xff] }
 0x1cb   : > { %2892 = vmatprep.subr.bf16.mxu1 %v5505_v15  ;;  %v5561_v15 = vcombine.high %v1139_v10, %v1143_v11  ;;  %v1187_v2 = vld [vmem:[%s8500_s3 + $0x3d8] sm:$0xff] }
 0x1cc   : > { %v1191_v3 = vld [vmem:[%s8500_s3 + $0x3f8] sm:$0xff] }
 0x1cd   : > { %2811 = vmatpush1.bf16.msra.mxu0 %v5502_v19  ;;  %v5558_v19 = vcombine.low %v1138_v8, %v1142_v9  ;;  %v1194_v8 = vld [vmem:[%s8500_s3 + $0x410] sm:$0xff] }
 0x1ce   : > { %2893 = vmatpush1.bf16.msra.mxu1 %v5504_v24  ;;  %2812 = vmatprep.subr.bf16.mxu0 %v5511_v26  ;;  %v5560_v24 = vcombine.low %v1139_v10, %v1143_v11  ;;  %v5567_v26 = vcombine.high %v1146_v16, %v1150_v17  ;;  %v1198_v9 = vld [vmem:[%s8500_s3 + $0x430] sm:$0xff]  ;;  %v1195_v10 = vld [vmem:[%s8500_s3 + $0x418] sm:$0xff] }
 0x1cf   : > { %2894 = vmatprep.subr.bf16.mxu1 %v5513_v27  ;;  %v5569_v27 = vcombine.high %v1147_v18, %v1151_v44  ;;  %v1199_v11 = vld [vmem:[%s8500_s3 + $0x438] sm:$0xff] }
 0x1d1   : > { %2813 = vmatpush1.bf16.msra.mxu0 %v5510_v33  ;;  %v5566_v33 = vcombine.low %v1146_v16, %v1150_v17  ;;  %v1202_v16 = vld [vmem:[%s8500_s3 + $0x450] sm:$0xff] }
 0x1d2   : > { %2895 = vmatpush1.bf16.msra.mxu1 %v5512_v34  ;;  %2814 = vmatprep.subr.bf16.mxu0 %v5519_v35  ;;  %v5568_v34 = vcombine.low %v1147_v18, %v1151_v44  ;;  %v5575_v35 = vcombine.high %v1154_v28, %v1158_v30  ;;  %v1206_v17 = vld [vmem:[%s8500_s3 + $0x470] sm:$0xff]  ;;  %v5614_v18 = vcombine.low %v1194_v8, %v1198_v9  ;;  %v1203_v44 = vld [vmem:[%s8500_s3 + $0x458] sm:$0xff] }
 0x1d3   : > { %2896 = vmatprep.subr.bf16.mxu1 %v5521_v37  ;;  %v5577_v37 = vcombine.high %v1155_v31, %v1159_v32 }
 0x1d5   : > { %2815 = vmatpush1.bf16.msra.mxu0 %v5518_v42  ;;  %v5574_v42 = vcombine.low %v1154_v28, %v1158_v30  ;;  %v1214_v28 = vld [vmem:[%s8500_s3 + $0x4b0] sm:$0xff] }
 0x1d6   : > { %2897 = vmatpush1.bf16.msra.mxu1 %v5520_v43  ;;  %2816 = vmatprep.subr.bf16.mxu0 %v5527_v45  ;;  %v5576_v43 = vcombine.low %v1155_v31, %v1159_v32  ;;  %v5583_v45 = vcombine.high %v1162_v38, %v1166_v39  ;;  %v1211_v31 = vld [vmem:[%s8500_s3 + $0x498] sm:$0xff] }
 0x1d7   : > { %2898 = vmatprep.subr.bf16.mxu1 %v5529_v47  ;;  %v5585_v47 = vcombine.high %v1163_v40, %v1167_v41  ;;  %v1215_v32 = vld [vmem:[%s8500_s3 + $0x4b8] sm:$0xff] }
 0x1d9   : > { %2817 = vmatpush1.bf16.msra.mxu0 %v5526_v51  ;;  %v5582_v51 = vcombine.low %v1162_v38, %v1166_v39  ;;  %v1218_v38 = vld [vmem:[%s8500_s3 + $0x4d0] sm:$0xff] }
 0x1da   : > { %2899 = vmatpush1.bf16.msra.mxu1 %v5528_v52  ;;  %2818 = vmatprep.subr.bf16.mxu0 %v5535_v53  ;;  %v5584_v52 = vcombine.low %v1163_v40, %v1167_v41  ;;  %v5591_v53 = vcombine.high %v1170_v22, %v1174_v48  ;;  %v1222_v39 = vld [vmem:[%s8500_s3 + $0x4f0] sm:$0xff]  ;;  %v1223_v40 = vld [vmem:[%s8500_s3 + $0x4f8] sm:$0xff]  ;;  %v5632_v41 = vcombine.low %v1211_v31, %v1215_v32 }
 0x1db   : > { %2900 = vmatprep.subr.bf16.mxu1 %v5537_v55  ;;  %v5593_v55 = vcombine.high %v1171_v49, %v1175_v50 }
 0x1dd   : > { %2819 = vmatpush1.bf16.msra.mxu0 %v5534_v59  ;;  %v5590_v59 = vcombine.low %v1170_v22, %v1174_v48  ;;  %v1227_v22 = vld [vmem:[%s8500_s3 + $0x518] sm:$0xff] }
 0x1de   : > { %2901 = vmatpush1.bf16.msra.mxu1 %v5536_v60  ;;  %2820 = vmatprep.subr.bf16.mxu0 %v5543_v61  ;;  %v5592_v60 = vcombine.low %v1171_v49, %v1175_v50  ;;  %v5599_v61 = vcombine.high %v1178_v56, %v1182_v36  ;;  %v1231_v48 = vld [vmem:[%s8500_s3 + $0x538] sm:$0xff]  ;;  %v5638_v49 = vcombine.low %v1218_v38, %v1222_v39 }
 0x1df   : > { %2902 = vmatprep.subr.bf16.mxu1 %v5545_v62  ;;  %v5601_v62 = vcombine.high %v1179_v57, %v1183_v58 }
 0x1e1   : > { %2821 = vmatpush1.bf16.msra.mxu0 %v5542_v4  ;;  %v5598_v4 = vcombine.low %v1178_v56, %v1182_v36  ;;  %v1235_v56 = vld [vmem:[%s8500_s3 + $0x558] sm:$0xff] }
 0x1e2   : > { %2903 = vmatpush1.bf16.msra.mxu1 %v5544_v5  ;;  %2822 = vmatprep.subr.bf16.mxu0 %v5551_v6  ;;  %v5600_v5 = vcombine.low %v1179_v57, %v1183_v58  ;;  %v5607_v6 = vcombine.high %v1186_v63, %v1190_v1  ;;  %v1239_v36 = vld [vmem:[%s8500_s3 + $0x578] sm:$0xff]  ;;  %v5648_v58 = vcombine.low %v1227_v22, %v1231_v48 }
 0x1e3   : > { %2904 = vmatprep.subr.bf16.mxu1 %v5553_v7  ;;  %v5609_v7 = vcombine.high %v1187_v2, %v1191_v3 }
 0x1e5   : > { %2823 = vmatpush1.bf16.msra.mxu0 %v5550_v12  ;;  %v5606_v12 = vcombine.low %v1186_v63, %v1190_v1  ;;  %v1243_v63 = vld [vmem:[%s8500_s3 + $0x598] sm:$0xff] }
 0x1e6   : > { %2905 = vmatpush1.bf16.msra.mxu1 %v5552_v13  ;;  %2824 = vmatprep.subr.bf16.mxu0 %v5559_v14  ;;  %v5608_v13 = vcombine.low %v1187_v2, %v1191_v3  ;;  %v5615_v14 = vcombine.high %v1194_v8, %v1198_v9  ;;  %v1247_v1 = vld [vmem:[%s8500_s3 + $0x5b8] sm:$0xff]  ;;  %v5656_v3 = vcombine.low %v1235_v56, %v1239_v36 }
 0x1e7   : > { %2906 = vmatprep.subr.bf16.mxu1 %v5561_v15  ;;  %v5617_v15 = vcombine.high %v1195_v10, %v1199_v11  ;;  %v1251_v8 = vld [vmem:[%s8500_s3 + $0x5d8] sm:$0xff] }
 0x1e8   : > { %v1255_v9 = vld [vmem:[%s8500_s3 + $0x5f8] sm:$0xff] }
 0x1e9   : > { %2825 = vmatpush1.bf16.msra.mxu0 %v5558_v19  ;;  %v1207_v19 = vld [vmem:[%s8500_s3 + $0x478] sm:$0xff] }
 0x1ea   : > { %2907 = vmatpush1.bf16.msra.mxu1 %v5560_v24  ;;  %2826 = vmatprep.subr.bf16.mxu0 %v5567_v26  ;;  %v5616_v24 = vcombine.low %v1195_v10, %v1199_v11  ;;  %v5623_v26 = vcombine.high %v1202_v16, %v1206_v17  ;;  %v5625_v30 = vcombine.high %v1203_v44, %v1207_v19 }
 0x1eb   : > { %2908 = vmatprep.subr.bf16.mxu1 %v5569_v27  ;;  %v1210_v27 = vld [vmem:[%s8500_s3 + $0x490] sm:$0xff]  ;;  %v5664_v11 = vcombine.low %v1243_v63, %v1247_v1 }
 0x1ed   : > { %2827 = vmatpush1.bf16.msra.mxu0 %v5566_v33  ;;  %v5622_v33 = vcombine.low %v1202_v16, %v1206_v17  ;;  %v1259_v16 = vld [vmem:[%s8500_s3 + $0x618] sm:$0xff] }
 0x1ee   : > { %2909 = vmatpush1.bf16.msra.mxu1 %v5568_v34  ;;  %2828 = vmatprep.subr.bf16.mxu0 %v5575_v35  ;;  %v5624_v34 = vcombine.low %v1203_v44, %v1207_v19  ;;  %v5631_v35 = vcombine.high %v1210_v27, %v1214_v28  ;;  %v1263_v17 = vld [vmem:[%s8500_s3 + $0x638] sm:$0xff]  ;;  %v5672_v44 = vcombine.low %v1251_v8, %v1255_v9 }
 0x1ef   : > { %2910 = vmatprep.subr.bf16.mxu1 %v5577_v37  ;;  %v5633_v37 = vcombine.high %v1211_v31, %v1215_v32  ;;  %v5680_v32 = vcombine.low %v1259_v16, %v1263_v17 }
 0x1f1   : > { %2829 = vmatpush1.bf16.msra.mxu0 %v5574_v42  ;;  %v5639_v42 = vcombine.high %v1218_v38, %v1222_v39  ;;  %v1275_v38 = vld [vmem:[%s8500_s3 + $0x698] sm:$0xff] }
 0x1f2   : > { %2911 = vmatpush1.bf16.msra.mxu1 %v5576_v43  ;;  %2830 = vmatprep.subr.bf16.mxu0 %v5583_v45  ;;  %v1226_v45 = vld [vmem:[%s8500_s3 + $0x510] sm:$0xff]  ;;  %v1279_v39 = vld [vmem:[%s8500_s3 + $0x6b8] sm:$0xff] }
 0x1f3   : > { %2912 = vmatprep.subr.bf16.mxu1 %v5585_v47  ;;  %v1230_v47 = vld [vmem:[%s8500_s3 + $0x530] sm:$0xff] }
 0x1f4   : > { %v5646_v57 = vcombine.low %v1226_v45, %v1230_v47 }
 0x1f5   : > { %2831 = vmatpush1.bf16.msra.mxu0 %v5582_v51  ;;  %v5647_v51 = vcombine.high %v1226_v45, %v1230_v47  ;;  %v1283_v45 = vld [vmem:[%s8500_s3 + $0x6d8] sm:$0xff] }
 0x1f6   : > { %2913 = vmatpush1.bf16.msra.mxu1 %v5584_v52  ;;  %2832 = vmatprep.subr.bf16.mxu0 %v5591_v53  ;;  %v5649_v52 = vcombine.high %v1227_v22, %v1231_v48  ;;  %v1234_v53 = vld [vmem:[%s8500_s3 + $0x550] sm:$0xff]  ;;  %v1287_v47 = vld [vmem:[%s8500_s3 + $0x6f8] sm:$0xff]  ;;  %v5696_v48 = vcombine.low %v1275_v38, %v1279_v39 }
 0x1f7   : > { %2914 = vmatprep.subr.bf16.mxu1 %v5593_v55  ;;  %v1238_v55 = vld [vmem:[%s8500_s3 + $0x570] sm:$0xff] }
 0x1f8   : > { %v5654_v2 = vcombine.low %v1234_v53, %v1238_v55 }
 0x1f9   : > { %2833 = vmatpush1.bf16.msra.mxu0 %v5590_v59  ;;  %v5655_v59 = vcombine.high %v1234_v53, %v1238_v55  ;;  %v1291_v53 = vld [vmem:[%s8500_s3 + $0x718] sm:$0xff] }
 0x1fa   : > { %2915 = vmatpush1.bf16.msra.mxu1 %v5592_v60  ;;  %2834 = vmatprep.subr.bf16.mxu0 %v5599_v61  ;;  %v5657_v60 = vcombine.high %v1235_v56, %v1239_v36  ;;  %v1242_v61 = vld [vmem:[%s8500_s3 + $0x590] sm:$0xff]  ;;  %v1295_v55 = vld [vmem:[%s8500_s3 + $0x738] sm:$0xff]  ;;  %v5704_v36 = vcombine.low %v1283_v45, %v1287_v47 }
 0x1fb   : > { %2916 = vmatprep.subr.bf16.mxu1 %v5601_v62  ;;  %v1246_v62 = vld [vmem:[%s8500_s3 + $0x5b0] sm:$0xff] }
 0x1fc   : > { %v5662_v10 = vcombine.low %v1242_v61, %v1246_v62 }
 0x1fd   : > { %2835 = vmatpush1.bf16.msra.mxu0 %v5598_v4  ;;  %v5663_v4 = vcombine.high %v1242_v61, %v1246_v62  ;;  %v1299_v61 = vld [vmem:[%s8500_s3 + $0x758] sm:$0xff] }
 0x1fe   : > { %2917 = vmatpush1.bf16.msra.mxu1 %v5600_v5  ;;  %2836 = vmatprep.subr.bf16.mxu0 %v5607_v6  ;;  %v5665_v5 = vcombine.high %v1243_v63, %v1247_v1  ;;  %v1250_v6 = vld [vmem:[%s8500_s3 + $0x5d0] sm:$0xff]  ;;  %v1303_v62 = vld [vmem:[%s8500_s3 + $0x778] sm:$0xff]  ;;  %v5712_v1 = vcombine.low %v1291_v53, %v1295_v55 }
 0x1ff   : > { %2918 = vmatprep.subr.bf16.mxu1 %v5609_v7  ;;  %v1254_v7 = vld [vmem:[%s8500_s3 + $0x5f0] sm:$0xff] }
 0x201   : > { %2837 = vmatpush1.bf16.msra.mxu0 %v5606_v12  ;;  %v5671_v12 = vcombine.high %v1250_v6, %v1254_v7 }
 0x202   : > { %2919 = vmatpush1.bf16.msra.mxu1 %v5608_v13  ;;  %2847 = vmatprep.subr.bf16.mxu0 %v5615_v14  ;;  %v5673_v13 = vcombine.high %v1251_v8, %v1255_v9  ;;  %v1258_v14 = vld [vmem:[%s8500_s3 + $0x610] sm:$0xff]  ;;  %v5720_v9 = vcombine.low %v1299_v61, %v1303_v62 }
 0x203   : > { %2929 = vmatprep.subr.bf16.mxu1 %v5617_v15  ;;  %v1262_v15 = vld [vmem:[%s8500_s3 + $0x630] sm:$0xff] }
 0x204   : > { %2839 = vmatmul.mubr.bf16.vlgmr.msra.gmra.mrb[8].mxu0 %v7558_v46  ;;  %v5679_v19 = vcombine.high %v1258_v14, %v1262_v15  ;;  %v5678_v31 = vcombine.low %v1258_v14, %v1262_v15  ;;  %v1315_v14 = vld [vmem:[%s8500_s3 + $0x7d8] sm:$0xff] }
 0x205   : > { %2921 = vmatmul.mubr.bf16.vlgmr.msra.gmra.mrb[8].mxu1 %v7558_v46  ;;  %2848 = vmatpush1.bf16.msra.mxu0 %v5614_v18  ;;  %v1219_v46 = vld [vmem:[%s8500_s3 + $0x4d8] sm:$0xff]  ;;  %v5670_v18 = vcombine.low %v1250_v6, %v1254_v7 }
 0x206   : > { %2879 = vmatprep.mubr.bf16.mxu0 %v7576_v54  ;;  %2930 = vmatpush1.bf16.msra.mxu1 %v5616_v24  ;;  %v5641_v43 = vcombine.high %v1219_v46, %v1223_v40  ;;  %v5640_v50 = vcombine.low %v1219_v46, %v1223_v40  ;;  %v5681_v24 = vcombine.high %v1259_v16, %v1263_v17  ;;  %v1307_v6 = vld [vmem:[%s8500_s3 + $0x798] sm:$0xff] }
 0x207   : > { %2961 = vmatprep.mubr.bf16.mxu1 %v7576_v54  ;;  %2849 = vmatprep.subr.bf16.mxu0 %v5623_v26  ;;  %v5630_v54 = vcombine.low %v1210_v27, %v1214_v28  ;;  %v1266_v26 = vld [vmem:[%s8500_s3 + $0x650] sm:$0xff]  ;;  %v1267_v28 = vld [vmem:[%s8500_s3 + $0x658] sm:$0xff] }
 0x208   : > { %2931 = vmatprep.subr.bf16.mxu1 %v5625_v30  ;;  %v1270_v27 = vld [vmem:[%s8500_s3 + $0x670] sm:$0xff]  ;;  %v1271_v30 = vld [vmem:[%s8500_s3 + $0x678] sm:$0xff] }
 0x209   : > { %2850 = vmatpush1.bf16.msra.mxu0 %v5622_v33  ;;  %v5687_v33 = vcombine.high %v1266_v26, %v1270_v27  ;;  %v5686_v46 = vcombine.low %v1266_v26, %v1270_v27  ;;  %v5688_v40 = vcombine.low %v1267_v28, %v1271_v30  ;;  %v1311_v7 = vld [vmem:[%s8500_s3 + $0x7b8] sm:$0xff]  ;;  %v1320_v26 = vld [vmem:[%s8501_s4] sm:$0xff] }
 0x20a   : > { %2932 = vmatpush1.bf16.msra.mxu1 %v5624_v34  ;;  %2851 = vmatprep.subr.bf16.mxu0 %v5631_v35  ;;  %v5689_v34 = vcombine.high %v1267_v28, %v1271_v30  ;;  %v1274_v35 = vld [vmem:[%s8500_s3 + $0x690] sm:$0xff]  ;;  %v1319_v15 = vld [vmem:[%s8500_s3 + $0x7f8] sm:$0xff]  ;;  %v5728_v17 = vcombine.low %v1307_v6, %v1311_v7  ;;  %v1325_v27 = vrot.slane %v1320_v26, %v912_v21 }
 0x20b   : > { %2933 = vmatprep.subr.bf16.mxu1 %v5633_v37  ;;  %v1278_v37 = vld [vmem:[%s8500_s3 + $0x6b0] sm:$0xff]  ;;  %v1333_v28 = vrot.slane %v1320_v26, %v920_v29  ;;  %v1329_v30 = vrot.slane %v1320_v26, %v916_v23  ;;  %v6668_v23 = vmov 0.0  }
 0x20c   : > { %v5694_v22 = vcombine.low %v1274_v35, %v1278_v37  ;;  %2986 = vst [vmem:[#allocation3] sm:$0xff] %v6668_v23  ;;  %2987 = vst [vmem:[#allocation3 + $0x8] sm:$0xff] %v6668_v23 }
 0x20d   : > { %2852 = vmatpush1.bf16.msra.mxu0 %v5630_v54  ;;  %v5695_v54 = vcombine.high %v1274_v35, %v1278_v37 }
 0x20e   : > { %2934 = vmatpush1.bf16.msra.mxu1 %v5632_v41  ;;  %2853 = vmatprep.subr.bf16.mxu0 %v5639_v42  ;;  %v5697_v41 = vcombine.high %v1275_v38, %v1279_v39  ;;  %v1282_v42 = vld [vmem:[%s8500_s3 + $0x6d0] sm:$0xff] }
 0x20f   : > { %2935 = vmatprep.subr.bf16.mxu1 %v5641_v43  ;;  %v1286_v43 = vld [vmem:[%s8500_s3 + $0x6f0] sm:$0xff] }
 0x210   : > { %v5702_v56 = vcombine.low %v1282_v42, %v1286_v43 }
 0x211   : > { %2854 = vmatpush1.bf16.msra.mxu0 %v5638_v49  ;;  %v5703_v49 = vcombine.high %v1282_v42, %v1286_v43 }
 0x212   : > { %2936 = vmatpush1.bf16.msra.mxu1 %v5640_v50  ;;  %2855 = vmatprep.subr.bf16.mxu0 %v5647_v51  ;;  %v5705_v50 = vcombine.high %v1283_v45, %v1287_v47  ;;  %v1290_v51 = vld [vmem:[%s8500_s3 + $0x710] sm:$0xff]  ;;  %v1348_v45 = vsub.s32 6, %v7523_v20  ;;  %v1344_v47 = vsub.s32 5, %v7523_v20 }
 0x213   : > { %2937 = vmatprep.subr.bf16.mxu1 %v5649_v52  ;;  %v1294_v52 = vld [vmem:[%s8500_s3 + $0x730] sm:$0xff] }
 0x214   : > { %v5710_v63 = vcombine.low %v1290_v51, %v1294_v52 }
 0x215   : > { %2856 = vmatpush1.bf16.msra.mxu0 %v5646_v57  ;;  %v5711_v57 = vcombine.high %v1290_v51, %v1294_v52 }
 0x216   : > { %2938 = vmatpush1.bf16.msra.mxu1 %v5648_v58  ;;  %2857 = vmatprep.subr.bf16.mxu0 %v5655_v59  ;;  %v5713_v58 = vcombine.high %v1291_v53, %v1295_v55  ;;  %v1298_v59 = vld [vmem:[%s8500_s3 + $0x750] sm:$0xff] }
 0x217   : > { %2939 = vmatprep.subr.bf16.mxu1 %v5657_v60  ;;  %v1302_v60 = vld [vmem:[%s8500_s3 + $0x770] sm:$0xff] }
 0x218   : > { %v5718_v8 = vcombine.low %v1298_v59, %v1302_v60 }
 0x219   : > { %2858 = vmatpush1.bf16.msra.mxu0 %v5654_v2  ;;  %v5719_v2 = vcombine.high %v1298_v59, %v1302_v60 }
 0x21a   : > { %2940 = vmatpush1.bf16.msra.mxu1 %v5656_v3  ;;  %2859 = vmatprep.subr.bf16.mxu0 %v5663_v4  ;;  %v5721_v3 = vcombine.high %v1299_v61, %v1303_v62  ;;  %v1306_v4 = vld [vmem:[%s8500_s3 + $0x790] sm:$0xff] }
 0x21b   : > { %2941 = vmatprep.subr.bf16.mxu1 %v5665_v5  ;;  %v1310_v5 = vld [vmem:[%s8500_s3 + $0x7b0] sm:$0xff] }
 0x21c   : > { %v5726_v16 = vcombine.low %v1306_v4, %v1310_v5 }
 0x21d   : > { %2860 = vmatpush1.bf16.msra.mxu0 %v5662_v10  ;;  %v5727_v10 = vcombine.high %v1306_v4, %v1310_v5 }
 0x21e   : > { %2942 = vmatpush1.bf16.msra.mxu1 %v5664_v11  ;;  %2861 = vmatprep.subr.bf16.mxu0 %v5671_v12  ;;  %v5729_v11 = vcombine.high %v1307_v6, %v1311_v7  ;;  %v1314_v12 = vld [vmem:[%s8500_s3 + $0x7d0] sm:$0xff] }
 0x21f   : > { %2943 = vmatprep.subr.bf16.mxu1 %v5673_v13  ;;  %v1318_v13 = vld [vmem:[%s8500_s3 + $0x7f0] sm:$0xff] }
 0x221   : > { %2862 = vmatpush1.bf16.msra.mxu0 %v5670_v18  ;;  %v5735_v18 = vcombine.high %v1314_v12, %v1318_v13 }
 0x222   : > { %2944 = vmatpush1.bf16.msra.mxu1 %v5672_v44  ;;  %2863 = vmatprep.subr.bf16.mxu0 %v5679_v19  ;;  %v5737_v44 = vcombine.high %v1315_v14, %v1319_v15  ;;  %v5734_v19 = vcombine.low %v1314_v12, %v1318_v13 }
 0x223   : > { %2945 = vmatprep.subr.bf16.mxu1 %v5681_v24  ;;  %v5736_v24 = vcombine.low %v1315_v14, %v1319_v15 }
 0x225   : > { %2864 = vmatpush1.bf16.msra.mxu0 %v5678_v31  ;;  %v1337_v31 = vrot.slane %v1320_v26, %v924_v25  ;;  %v1340_v25 = vsub.s32 4, %v7523_v20 }
 0x226   : > { %2946 = vmatpush1.bf16.msra.mxu1 %v5680_v32  ;;  %2865 = vmatprep.subr.bf16.mxu0 %v5687_v33 }
 0x227   : > { %2947 = vmatprep.subr.bf16.mxu1 %v5689_v34 }
 0x229   : > { %2866 = vmatpush1.bf16.msra.mxu0 %v5686_v46 }
 0x22a   : > { %2948 = vmatpush1.bf16.msra.mxu1 %v5688_v40  ;;  %2867 = vmatprep.subr.bf16.mxu0 %v5695_v54 }
 0x22b   : > { %2949 = vmatprep.subr.bf16.mxu1 %v5697_v41 }
 0x22d   : > { %2868 = vmatpush1.bf16.msra.mxu0 %v5694_v22  ;;  %v1352_v22 = vsub.s32 7, %v7523_v20 }
 0x22e   : > { %2950 = vmatpush1.bf16.msra.mxu1 %v5696_v48  ;;  %2869 = vmatprep.subr.bf16.mxu0 %v5703_v49  ;;  %v1341_v48 = vrot.slane %v1320_v26, %v1340_v25  ;;  %v1349_v49 = vrot.slane %v1320_v26, %v1348_v45 }
 0x22f   : > { %2951 = vmatprep.subr.bf16.mxu1 %v5705_v50  ;;  %v1345_v50 = vrot.slane %v1320_v26, %v1344_v47  ;;  %v1353_v51 = vrot.slane %v1320_v26, %v1352_v22 }
 0x231   : > { %2870 = vmatpush1.bf16.msra.mxu0 %v5702_v56 }
 0x232   : > { %2952 = vmatpush1.bf16.msra.mxu1 %v5704_v36  ;;  %2871 = vmatprep.subr.bf16.mxu0 %v5711_v57 }
 0x233   : > { %2953 = vmatprep.subr.bf16.mxu1 %v5713_v58 }
 0x235   : > { %2872 = vmatpush1.bf16.msra.mxu0 %v5710_v63 }
 0x236   : > { %2954 = vmatpush1.bf16.msra.mxu1 %v5712_v1  ;;  %2873 = vmatprep.subr.bf16.mxu0 %v5719_v2 }
 0x237   : > { %2955 = vmatprep.subr.bf16.mxu1 %v5721_v3 }
 0x239   : > { %2874 = vmatpush1.bf16.msra.mxu0 %v5718_v8 }
 0x23a   : > { %2956 = vmatpush1.bf16.msra.mxu1 %v5720_v9  ;;  %2875 = vmatprep.subr.bf16.mxu0 %v5727_v10 }
 0x23b   : > { %2957 = vmatprep.subr.bf16.mxu1 %v5729_v11 }
 0x23d   : > { %2876 = vmatpush1.bf16.msra.mxu0 %v5726_v16 }
 0x23e   : > { %2958 = vmatpush1.bf16.msra.mxu1 %v5728_v17  ;;  %2877 = vmatprep.subr.bf16.mxu0 %v5735_v18 }
 0x23f   : > { %2959 = vmatprep.subr.bf16.mxu1 %v5737_v44 }
 0x241   : > { %2878 = vmatpush1.bf16.msra.mxu0 %v5734_v19 }
 0x242   : > { %2960 = vmatpush1.bf16.msra.mxu1 %v5736_v24 }
 0x244   : > { %2880 = vmatmul.mubr.bf16.vlgmr.msra.gmra.mrb[8].mxu0 %v7756_v0 }
 0x245   : > { %2962 = vmatmul.mubr.bf16.vlgmr.msra.gmra.mrb[8].mxu1 %v7756_v0 }
 0x297   : > { %v2717_v32 = vpop.f32.mrb[4].mxu0  ;;  %v2799_v33 = vpop.f32.mrb[4].mxu1 }
 0x298   : > { %v6065_v34 = vadd.f32 %v2717_v32, %v1325_v27  ;;  %v6067_v0 = vadd.f32 %v2799_v33, %v1333_v28  ;;  %v2719_v35 = vpop.f32.mrb[5].mxu0  ;;  %v2801_v37 = vpop.f32.mrb[5].mxu1 }
 0x299   : > { %v6066_v38 = vadd.f32 %v2719_v35, %v1329_v30  ;;  %v6068_v39 = vadd.f32 %v2801_v37, %v1337_v31  ;;  %v2721_v46 = vpop.f32.mrb[6].mxu0  ;;  %v2803_v40 = vpop.f32.mrb[6].mxu1 }
 0x29a   : > { %v2970_v21 = vmax.f32 %v6065_v34, 0.0  ;;  %v2972_v54 = vmax.f32 %v6067_v0, 0.0  ;;  %v2722_v41 = vpop.f32.mrb[7].mxu0  ;;  %v2804_v29 = vpop.f32.mrb[7].mxu1 }
 0x29b   : > { %v2971_v42 = vmax.f32 %v6066_v38, 0.0  ;;  %v2973_v43 = vmax.f32 %v6068_v39, 0.0 }
 0x29c   : > { %2978 = vst [vmem:[#allocation2] sm:$0xff] %v2970_v21  ;;  %2980 = vst [vmem:[#allocation2 + $0x10] sm:$0xff] %v2972_v54 }
 0x29d   : > { %2979 = vst [vmem:[#allocation2 + $0x8] sm:$0xff] %v2971_v42  ;;  %2981 = vst [vmem:[#allocation2 + $0x18] sm:$0xff] %v2973_v43 }
 0x317   : > { %v2881_v52 = vpop.f32.mrb[8].mxu0 }
 0x318   : > { %v6069_v53 = vadd.f32 %v2881_v52, %v1341_v48  ;;  %v2963_v55 = vpop.f32.mrb[8].mxu1  ;;  %v2883_v56 = vpop.f32.mrb[9].mxu0 }
 0x319   : > { %v6071_v36 = vadd.f32 %v2963_v55, %v1349_v49  ;;  %v6070_v57 = vadd.f32 %v2883_v56, %v1345_v50  ;;  %v2965_v58 = vpop.f32.mrb[9].mxu1  ;;  %v2885_v59 = vpop.f32.mrb[10].mxu0 }
 0x31a   : > { %v2974_v60 = vmax.f32 %v6069_v53, 0.0  ;;  %v6072_v61 = vadd.f32 %v2965_v58, %v1353_v51  ;;  %v2967_v62 = vpop.f32.mrb[10].mxu1  ;;  %v2886_v63 = vpop.f32.mrb[11].mxu0 }
 0x31b   : > { %v2976_v1 = vmax.f32 %v6071_v36, 0.0  ;;  %v2975_v2 = vmax.f32 %v6070_v57, 0.0  ;;  %v2968_v3 = vpop.f32.mrb[11].mxu1 }
 0x31c   : > { %2982 = vst [vmem:[#allocation2 + $0x20] sm:$0xff] %v2974_v60  ;;  %v2977_v20 = vmax.f32 %v6072_v61, 0.0 }
 0x31d   : > { %2984 = vst [vmem:[#allocation2 + $0x30] sm:$0xff] %v2976_v1  ;;  %2983 = vst [vmem:[#allocation2 + $0x28] sm:$0xff] %v2975_v2 }
 0x31e   : > { %2985 = vst [vmem:[#allocation2 + $0x38] sm:$0xff] %v2977_v20 }
 0x31f PF: > { %v6155_v4 = vld [vmem:[%s7287_s30 + $0x4] ss:$16 sps:$4 sm:$0xff]   ;;  %v6157_v5 = vld [vmem:[%s7287_s30 + $0xc] ss:$16 sps:$4 sm:$0xff]   ;;  %v6159_v6 = vld [vmem:[%s7287_s30] ss:$16 sps:$4 sm:$0xff]  }
 0x320   : > { %4562 = vmatprep.subr.bf16.mxu0 %v6155_v4  ;;  %v6160_v7 = vld [vmem:[%s7287_s30 + $0x8] ss:$16 sps:$4 sm:$0xff]   ;;  %4726 = vmatprep.subr.bf16.mxu1 %v6157_v5  ;;  %v6161_v8 = vld [vmem:[%s7287_s30 + $0x24] ss:$16 sps:$4 sm:$0xff]   ;;  %v6163_v9 = vld [vmem:[%s7287_s30 + $0x2c] ss:$16 sps:$4 sm:$0xff]  }
 0x321   : > { %4563 = vmatpush1.bf16.msra.mxu0 %v6159_v6  ;;  %4727 = vmatpush1.bf16.msra.mxu1 %v6160_v7  ;;  %v6165_v10 = vld [vmem:[%s7287_s30 + $0x20] ss:$16 sps:$4 sm:$0xff]   ;;  %v6166_v11 = vld [vmem:[%s7287_s30 + $0x28] ss:$16 sps:$4 sm:$0xff]   ;;  %v6167_v12 = vld [vmem:[%s7287_s30 + $0x44] ss:$16 sps:$4 sm:$0xff]  }
 0x322   : > { %4564 = vmatprep.subr.bf16.mxu0 %v6161_v8  ;;  %4728 = vmatprep.subr.bf16.mxu1 %v6163_v9  ;;  %v6169_v13 = vld [vmem:[%s7287_s30 + $0x4c] ss:$16 sps:$4 sm:$0xff]   ;;  %v6171_v14 = vld [vmem:[%s7287_s30 + $0x40] ss:$16 sps:$4 sm:$0xff]   ;;  %v6172_v15 = vld [vmem:[%s7287_s30 + $0x48] ss:$16 sps:$4 sm:$0xff]  }
 0x323   : > { %v6173_v16 = vld [vmem:[%s7287_s30 + $0x64] ss:$16 sps:$4 sm:$0xff]   ;;  %v6175_v17 = vld [vmem:[%s7287_s30 + $0x6c] ss:$16 sps:$4 sm:$0xff]   ;;  %v6177_v18 = vld [vmem:[%s7287_s30 + $0x60] ss:$16 sps:$4 sm:$0xff]  }
 0x324   : > { %v6178_v44 = vld [vmem:[%s7287_s30 + $0x68] ss:$16 sps:$4 sm:$0xff]   ;;  %v6179_v19 = vld [vmem:[%s7287_s30 + $0x84] ss:$16 sps:$4 sm:$0xff]   ;;  %v6181_v24 = vld [vmem:[%s7287_s30 + $0x8c] ss:$16 sps:$4 sm:$0xff]  }
 0x325   : > { %4565 = vmatpush1.bf16.msra.mxu0 %v6165_v10  ;;  %4729 = vmatpush1.bf16.msra.mxu1 %v6166_v11  ;;  %v6183_v26 = vld [vmem:[%s7287_s30 + $0x80] ss:$16 sps:$4 sm:$0xff]   ;;  %v6184_v27 = vld [vmem:[%s7287_s30 + $0x88] ss:$16 sps:$4 sm:$0xff]   ;;  %v6185_v28 = vld [vmem:[%s7287_s30 + $0xa4] ss:$16 sps:$4 sm:$0xff]  }
 0x326   : > { %4566 = vmatprep.subr.bf16.mxu0 %v6167_v12  ;;  %4730 = vmatprep.subr.bf16.mxu1 %v6169_v13  ;;  %v6187_v30 = vld [vmem:[%s7287_s30 + $0xac] ss:$16 sps:$4 sm:$0xff]   ;;  %v6189_v31 = vld [vmem:[%s7287_s30 + $0xa0] ss:$16 sps:$4 sm:$0xff]   ;;  %v6190_v32 = vld [vmem:[%s7287_s30 + $0xa8] ss:$16 sps:$4 sm:$0xff]  }
 0x327   : > { %v6191_v33 = vld [vmem:[%s7287_s30 + $0xc4] ss:$16 sps:$4 sm:$0xff]   ;;  %v6193_v34 = vld [vmem:[%s7287_s30 + $0xcc] ss:$16 sps:$4 sm:$0xff]   ;;  %v6195_v0 = vld [vmem:[%s7287_s30 + $0xc0] ss:$16 sps:$4 sm:$0xff]  }
 0x328   : > { %v6196_v35 = vld [vmem:[%s7287_s30 + $0xc8] ss:$16 sps:$4 sm:$0xff]   ;;  %v6197_v37 = vld [vmem:[%s7287_s30 + $0xe4] ss:$16 sps:$4 sm:$0xff]   ;;  %v6199_v38 = vld [vmem:[%s7287_s30 + $0xec] ss:$16 sps:$4 sm:$0xff]  }
 0x329   : > { %4567 = vmatpush1.bf16.msra.mxu0 %v6171_v14  ;;  %4731 = vmatpush1.bf16.msra.mxu1 %v6172_v15  ;;  %v6201_v39 = vld [vmem:[%s7287_s30 + $0xe0] ss:$16 sps:$4 sm:$0xff]   ;;  %v6202_v46 = vld [vmem:[%s7287_s30 + $0xe8] ss:$16 sps:$4 sm:$0xff]   ;;  %v6203_v40 = vld [vmem:[%s7287_s30 + $0x104] ss:$16 sps:$4 sm:$0xff]  }
 0x32a   : > { %4568 = vmatprep.subr.bf16.mxu0 %v6173_v16  ;;  %4732 = vmatprep.subr.bf16.mxu1 %v6175_v17  ;;  %v6205_v21 = vld [vmem:[%s7287_s30 + $0x10c] ss:$16 sps:$4 sm:$0xff]   ;;  %v6207_v54 = vld [vmem:[%s7287_s30 + $0x100] ss:$16 sps:$4 sm:$0xff]   ;;  %v6208_v41 = vld [vmem:[%s7287_s30 + $0x108] ss:$16 sps:$4 sm:$0xff]  }
 0x32b   : > { %v6209_v29 = vld [vmem:[%s7287_s30 + $0x124] ss:$16 sps:$4 sm:$0xff]   ;;  %v6211_v42 = vld [vmem:[%s7287_s30 + $0x12c] ss:$16 sps:$4 sm:$0xff]   ;;  %v6213_v43 = vld [vmem:[%s7287_s30 + $0x120] ss:$16 sps:$4 sm:$0xff]  }
 0x32c   : > { %v6214_v23 = vld [vmem:[%s7287_s30 + $0x128] ss:$16 sps:$4 sm:$0xff]   ;;  %v6215_v25 = vld [vmem:[%s7287_s30 + $0x144] ss:$16 sps:$4 sm:$0xff]   ;;  %v6217_v45 = vld [vmem:[%s7287_s30 + $0x14c] ss:$16 sps:$4 sm:$0xff]  }
 0x32d   : > { %4569 = vmatpush1.bf16.msra.mxu0 %v6177_v18  ;;  %4733 = vmatpush1.bf16.msra.mxu1 %v6178_v44  ;;  %v6219_v47 = vld [vmem:[%s7287_s30 + $0x140] ss:$16 sps:$4 sm:$0xff]   ;;  %v6220_v22 = vld [vmem:[%s7287_s30 + $0x148] ss:$16 sps:$4 sm:$0xff]   ;;  %v6221_v48 = vld [vmem:[%s7287_s30 + $0x164] ss:$16 sps:$4 sm:$0xff]  }
 0x32e   : > { %4570 = vmatprep.subr.bf16.mxu0 %v6179_v19  ;;  %4734 = vmatprep.subr.bf16.mxu1 %v6181_v24  ;;  %v6223_v49 = vld [vmem:[%s7287_s30 + $0x16c] ss:$16 sps:$4 sm:$0xff]   ;;  %v6225_v51 = vld [vmem:[%s7287_s30 + $0x160] ss:$16 sps:$4 sm:$0xff]   ;;  %v6226_v53 = vld [vmem:[%s7287_s30 + $0x168] ss:$16 sps:$4 sm:$0xff]  }
 0x32f   : > { %v2989_v50 = vld [vmem:[#allocation2 + $0x8] sm:$0xff]  ;;  %v6227_v55 = vld [vmem:[%s7287_s30 + $0x184] ss:$16 sps:$4 sm:$0xff]   ;;  %v6231_v36 = vld [vmem:[%s7287_s30 + $0x180] ss:$16 sps:$4 sm:$0xff]   ;;  %p6058_p11 = scmp.ne.s32.totalorder %s6735_s12, 3 }
 0x330   : > { %v2997_v52 = vpack.c.bf16 %v2989_v50, %v2989_v50  ;;  %v6229_v56 = vld [vmem:[%s7287_s30 + $0x18c] ss:$16 sps:$4 sm:$0xff]   ;;  %v6232_v57 = vld [vmem:[%s7287_s30 + $0x188] ss:$16 sps:$4 sm:$0xff]   ;;  %v6233_v58 = vld [vmem:[%s7287_s30 + $0x1a4] ss:$16 sps:$4 sm:$0xff]  }
 0x331   : > { %4571 = vmatpush1.bf16.msra.mxu0 %v6183_v26  ;;  %4735 = vmatpush1.bf16.msra.mxu1 %v6184_v27  ;;  %v6235_v59 = vld [vmem:[%s7287_s30 + $0x1ac] ss:$16 sps:$4 sm:$0xff]   ;;  %v6237_v60 = vld [vmem:[%s7287_s30 + $0x1a0] ss:$16 sps:$4 sm:$0xff]   ;;  %v6238_v61 = vld [vmem:[%s7287_s30 + $0x1a8] ss:$16 sps:$4 sm:$0xff]  }
 0x332   : > { %4572 = vmatprep.subr.bf16.mxu0 %v6185_v28  ;;  %4736 = vmatprep.subr.bf16.mxu1 %v6187_v30  ;;  %v6239_v62 = vld [vmem:[%s7287_s30 + $0x1c4] ss:$16 sps:$4 sm:$0xff]   ;;  %v6241_v63 = vld [vmem:[%s7287_s30 + $0x1cc] ss:$16 sps:$4 sm:$0xff]   ;;  %v6243_v1 = vld [vmem:[%s7287_s30 + $0x1c0] ss:$16 sps:$4 sm:$0xff]  }
 0x333   : > { %4594 = vmatprep.mubr.bf16.mxu0 %v2997_v52  ;;  %4758 = vmatprep.mubr.bf16.mxu1 %v2997_v52  ;;  %v6244_v2 = vld [vmem:[%s7287_s30 + $0x1c8] ss:$16 sps:$4 sm:$0xff]   ;;  %v6245_v3 = vld [vmem:[%s7287_s30 + $0x1e4] ss:$16 sps:$4 sm:$0xff]   ;;  %v6247_v20 = vld [vmem:[%s7287_s30 + $0x1ec] ss:$16 sps:$4 sm:$0xff]  }
 0x334   : > { %v6249_v4 = vld [vmem:[%s7287_s30 + $0x1e0] ss:$16 sps:$4 sm:$0xff]   ;;  %v6250_v5 = vld [vmem:[%s7287_s30 + $0x1e8] ss:$16 sps:$4 sm:$0xff]   ;;  %v6253_v7 = vld [vmem:[%s7287_s30 + $0x204] ss:$16 sps:$4 sm:$0xff]  }
 0x335   : > { %4573 = vmatpush1.bf16.msra.mxu0 %v6189_v31  ;;  %4737 = vmatpush1.bf16.msra.mxu1 %v6190_v32  ;;  %v2988_v6 = vld [vmem:[#allocation2] sm:$0xff]  ;;  %v6256_v8 = vld [vmem:[%s7287_s30 + $0x20c] ss:$16 sps:$4 sm:$0xff]   ;;  %v6254_v11 = vld [vmem:[%s7287_s30 + $0x208] ss:$16 sps:$4 sm:$0xff]  }
 0x336   : > { %4574 = vmatprep.subr.bf16.mxu0 %v6191_v33  ;;  %4738 = vmatprep.subr.bf16.mxu1 %v6193_v34  ;;  %v2996_v9 = vpack.c.bf16 %v2988_v6, %v2988_v6  ;;  %v6251_v10 = vld [vmem:[%s7287_s30 + $0x200] ss:$16 sps:$4 sm:$0xff]   ;;  %v6259_v12 = vld [vmem:[%s7287_s30 + $0x224] ss:$16 sps:$4 sm:$0xff]   ;;  %v6262_v13 = vld [vmem:[%s7287_s30 + $0x22c] ss:$16 sps:$4 sm:$0xff]  }
 0x337   : > { %v6257_v14 = vld [vmem:[%s7287_s30 + $0x220] ss:$16 sps:$4 sm:$0xff]   ;;  %v6260_v15 = vld [vmem:[%s7287_s30 + $0x228] ss:$16 sps:$4 sm:$0xff]   ;;  %v6265_v16 = vld [vmem:[%s7287_s30 + $0x244] ss:$16 sps:$4 sm:$0xff]  }
 0x338   : > { %v6268_v17 = vld [vmem:[%s7287_s30 + $0x24c] ss:$16 sps:$4 sm:$0xff]   ;;  %v6263_v18 = vld [vmem:[%s7287_s30 + $0x240] ss:$16 sps:$4 sm:$0xff]   ;;  %v6266_v44 = vld [vmem:[%s7287_s30 + $0x248] ss:$16 sps:$4 sm:$0xff]  }
 0x339   : > { %4575 = vmatpush1.bf16.msra.mxu0 %v6195_v0  ;;  %4739 = vmatpush1.bf16.msra.mxu1 %v6196_v35  ;;  %v6271_v19 = vld [vmem:[%s7287_s30 + $0x264] ss:$16 sps:$4 sm:$0xff]   ;;  %v6274_v24 = vld [vmem:[%s7287_s30 + $0x26c] ss:$16 sps:$4 sm:$0xff]   ;;  %v6269_v26 = vld [vmem:[%s7287_s30 + $0x260] ss:$16 sps:$4 sm:$0xff]  }
 0x33a   : > { %4576 = vmatprep.subr.bf16.mxu0 %v6197_v37  ;;  %4740 = vmatprep.subr.bf16.mxu1 %v6199_v38  ;;  %v6272_v27 = vld [vmem:[%s7287_s30 + $0x268] ss:$16 sps:$4 sm:$0xff]   ;;  %v6277_v28 = vld [vmem:[%s7287_s30 + $0x284] ss:$16 sps:$4 sm:$0xff]   ;;  %v6280_v30 = vld [vmem:[%s7287_s30 + $0x28c] ss:$16 sps:$4 sm:$0xff]  }
 0x33b   : > { %v6275_v31 = vld [vmem:[%s7287_s30 + $0x280] ss:$16 sps:$4 sm:$0xff]   ;;  %v6278_v32 = vld [vmem:[%s7287_s30 + $0x288] ss:$16 sps:$4 sm:$0xff]   ;;  %v6283_v33 = vld [vmem:[%s7287_s30 + $0x2a4] ss:$16 sps:$4 sm:$0xff]  }
 0x33c   : > { %v6286_v34 = vld [vmem:[%s7287_s30 + $0x2ac] ss:$16 sps:$4 sm:$0xff]   ;;  %v6281_v0 = vld [vmem:[%s7287_s30 + $0x2a0] ss:$16 sps:$4 sm:$0xff]   ;;  %v6284_v35 = vld [vmem:[%s7287_s30 + $0x2a8] ss:$16 sps:$4 sm:$0xff]  }
 0x33d   : > { %4577 = vmatpush1.bf16.msra.mxu0 %v6201_v39  ;;  %4741 = vmatpush1.bf16.msra.mxu1 %v6202_v46  ;;  %v6289_v37 = vld [vmem:[%s7287_s30 + $0x2c4] ss:$16 sps:$4 sm:$0xff]   ;;  %v6292_v38 = vld [vmem:[%s7287_s30 + $0x2cc] ss:$16 sps:$4 sm:$0xff]   ;;  %v6287_v46 = vld [vmem:[%s7287_s30 + $0x2c0] ss:$16 sps:$4 sm:$0xff]  }
 0x33e   : > { %4578 = vmatprep.subr.bf16.mxu0 %v6203_v40  ;;  %4742 = vmatprep.subr.bf16.mxu1 %v6205_v21  ;;  %v2991_v39 = vld [vmem:[#allocation2 + $0x18] sm:$0xff]  ;;  %v6313_v50 = vld [vmem:[%s7287_s30 + $0x344] ss:$16 sps:$4 sm:$0xff]   ;;  %v6311_v52 = vld [vmem:[%s7287_s30 + $0x340] ss:$16 sps:$4 sm:$0xff]  }
 0x33f   : > { %v2999_v40 = vpack.c.bf16 %v2991_v39, %v2991_v39  ;;  %v6290_v21 = vld [vmem:[%s7287_s30 + $0x2c8] ss:$16 sps:$4 sm:$0xff]   ;;  %v6343_v6 = vld [vmem:[%s7287_s30 + $0x3e4] ss:$16 sps:$4 sm:$0xff]  }
 0x340   : > { %v6379_v39 = vld [vmem:[%s7287_s30 + $0x4a4] ss:$16 sps:$4 sm:$0xff]  }
 0x341   : > { %4579 = vmatpush1.bf16.msra.mxu0 %v6207_v54  ;;  %4743 = vmatpush1.bf16.msra.mxu1 %v6208_v41  ;;  %v6295_v54 = vld [vmem:[%s7287_s30 + $0x2e4] ss:$16 sps:$4 sm:$0xff]   ;;  %v6298_v41 = vld [vmem:[%s7287_s30 + $0x2ec] ss:$16 sps:$4 sm:$0xff]  }
 0x342   : > { %4580 = vmatprep.subr.bf16.mxu0 %v6209_v29  ;;  %4744 = vmatprep.subr.bf16.mxu1 %v6211_v42  ;;  %v6293_v29 = vld [vmem:[%s7287_s30 + $0x2e0] ss:$16 sps:$4 sm:$0xff]   ;;  %v6296_v42 = vld [vmem:[%s7287_s30 + $0x2e8] ss:$16 sps:$4 sm:$0xff]  }
 0x345   : > { %4581 = vmatpush1.bf16.msra.mxu0 %v6213_v43  ;;  %4745 = vmatpush1.bf16.msra.mxu1 %v6214_v23  ;;  %v6301_v43 = vld [vmem:[%s7287_s30 + $0x304] ss:$16 sps:$4 sm:$0xff]   ;;  %v6304_v23 = vld [vmem:[%s7287_s30 + $0x30c] ss:$16 sps:$4 sm:$0xff]  }
 0x346   : > { %4582 = vmatprep.subr.bf16.mxu0 %v6215_v25  ;;  %4746 = vmatprep.subr.bf16.mxu1 %v6217_v45  ;;  %v6299_v25 = vld [vmem:[%s7287_s30 + $0x300] ss:$16 sps:$4 sm:$0xff]   ;;  %v6302_v45 = vld [vmem:[%s7287_s30 + $0x308] ss:$16 sps:$4 sm:$0xff]  }
 0x349   : > { %4583 = vmatpush1.bf16.msra.mxu0 %v6219_v47  ;;  %4747 = vmatpush1.bf16.msra.mxu1 %v6220_v22  ;;  %v6307_v47 = vld [vmem:[%s7287_s30 + $0x324] ss:$16 sps:$4 sm:$0xff]   ;;  %v6310_v22 = vld [vmem:[%s7287_s30 + $0x32c] ss:$16 sps:$4 sm:$0xff]  }
 0x34a   : > { %4584 = vmatprep.subr.bf16.mxu0 %v6221_v48  ;;  %4748 = vmatprep.subr.bf16.mxu1 %v6223_v49  ;;  %v6305_v48 = vld [vmem:[%s7287_s30 + $0x320] ss:$16 sps:$4 sm:$0xff]   ;;  %v6308_v49 = vld [vmem:[%s7287_s30 + $0x328] ss:$16 sps:$4 sm:$0xff]  }
 0x34d   : > { %4585 = vmatpush1.bf16.msra.mxu0 %v6225_v51  ;;  %4749 = vmatpush1.bf16.msra.mxu1 %v6226_v53  ;;  %v6316_v51 = vld [vmem:[%s7287_s30 + $0x34c] ss:$16 sps:$4 sm:$0xff]   ;;  %v6314_v53 = vld [vmem:[%s7287_s30 + $0x348] ss:$16 sps:$4 sm:$0xff]  }
 0x34e   : > { %4586 = vmatprep.subr.bf16.mxu0 %v6227_v55  ;;  %4750 = vmatprep.subr.bf16.mxu1 %v6229_v56  ;;  %v6319_v55 = vld [vmem:[%s7287_s30 + $0x364] ss:$16 sps:$4 sm:$0xff]   ;;  %v6322_v56 = vld [vmem:[%s7287_s30 + $0x36c] ss:$16 sps:$4 sm:$0xff]  }
 0x351   : > { %4587 = vmatpush1.bf16.msra.mxu0 %v6231_v36  ;;  %4751 = vmatpush1.bf16.msra.mxu1 %v6232_v57  ;;  %v6317_v36 = vld [vmem:[%s7287_s30 + $0x360] ss:$16 sps:$4 sm:$0xff]   ;;  %v6320_v57 = vld [vmem:[%s7287_s30 + $0x368] ss:$16 sps:$4 sm:$0xff]  }
 0x352   : > { %4588 = vmatprep.subr.bf16.mxu0 %v6233_v58  ;;  %4752 = vmatprep.subr.bf16.mxu1 %v6235_v59  ;;  %v6325_v58 = vld [vmem:[%s7287_s30 + $0x384] ss:$16 sps:$4 sm:$0xff]   ;;  %v6328_v59 = vld [vmem:[%s7287_s30 + $0x38c] ss:$16 sps:$4 sm:$0xff]  }
 0x355   : > { %4589 = vmatpush1.bf16.msra.mxu0 %v6237_v60  ;;  %4753 = vmatpush1.bf16.msra.mxu1 %v6238_v61  ;;  %v6323_v60 = vld [vmem:[%s7287_s30 + $0x380] ss:$16 sps:$4 sm:$0xff]   ;;  %v6326_v61 = vld [vmem:[%s7287_s30 + $0x388] ss:$16 sps:$4 sm:$0xff]  }
 0x356   : > { %4590 = vmatprep.subr.bf16.mxu0 %v6239_v62  ;;  %4754 = vmatprep.subr.bf16.mxu1 %v6241_v63  ;;  %v6331_v62 = vld [vmem:[%s7287_s30 + $0x3a4] ss:$16 sps:$4 sm:$0xff]   ;;  %v6334_v63 = vld [vmem:[%s7287_s30 + $0x3ac] ss:$16 sps:$4 sm:$0xff]  }
 0x359   : > { %4591 = vmatpush1.bf16.msra.mxu0 %v6243_v1  ;;  %4755 = vmatpush1.bf16.msra.mxu1 %v6244_v2  ;;  %v6329_v1 = vld [vmem:[%s7287_s30 + $0x3a0] ss:$16 sps:$4 sm:$0xff]   ;;  %v6332_v2 = vld [vmem:[%s7287_s30 + $0x3a8] ss:$16 sps:$4 sm:$0xff]  }
 0x35a   : > { %4592 = vmatprep.subr.bf16.mxu0 %v6245_v3  ;;  %4756 = vmatprep.subr.bf16.mxu1 %v6247_v20  ;;  %v6337_v3 = vld [vmem:[%s7287_s30 + $0x3c4] ss:$16 sps:$4 sm:$0xff]   ;;  %v6340_v20 = vld [vmem:[%s7287_s30 + $0x3cc] ss:$16 sps:$4 sm:$0xff]  }
 0x35d   : > { %4593 = vmatpush1.bf16.msra.mxu0 %v6249_v4  ;;  %4757 = vmatpush1.bf16.msra.mxu1 %v6250_v5  ;;  %v6335_v4 = vld [vmem:[%s7287_s30 + $0x3c0] ss:$16 sps:$4 sm:$0xff]   ;;  %v6338_v5 = vld [vmem:[%s7287_s30 + $0x3c8] ss:$16 sps:$4 sm:$0xff]  }
 0x35e   : > { %4603 = vmatprep.subr.bf16.mxu0 %v6253_v7  ;;  %4767 = vmatprep.subr.bf16.mxu1 %v6256_v8  ;;  %v6346_v7 = vld [vmem:[%s7287_s30 + $0x3ec] ss:$16 sps:$4 sm:$0xff]   ;;  %v6341_v8 = vld [vmem:[%s7287_s30 + $0x3e0] ss:$16 sps:$4 sm:$0xff]  }
 0x360   : > { %4595 = vmatmul.mubr.bf16.vlgmr.msra.gmra.mrb[0].mxu0 %v2996_v9  ;;  %4759 = vmatmul.mubr.bf16.vlgmr.msra.gmra.mrb[0].mxu1 %v2996_v9  ;;  %v6344_v9 = vld [vmem:[%s7287_s30 + $0x3e8] ss:$16 sps:$4 sm:$0xff]  }
 0x361   : > { %4604 = vmatpush1.bf16.msra.mxu0 %v6251_v10  ;;  %4768 = vmatpush1.bf16.msra.mxu1 %v6254_v11  ;;  %v6349_v10 = vld [vmem:[%s7287_s30 + $0x404] ss:$16 sps:$4 sm:$0xff]  }
 0x362   : > { %4605 = vmatprep.subr.bf16.mxu0 %v6259_v12  ;;  %4769 = vmatprep.subr.bf16.mxu1 %v6262_v13  ;;  %v2990_v11 = vld [vmem:[#allocation2 + $0x10] sm:$0xff]  ;;  %v6352_v12 = vld [vmem:[%s7287_s30 + $0x40c] ss:$16 sps:$4 sm:$0xff]  }
 0x363   : > { %4635 = vmatprep.mubr.bf16.mxu0 %v2999_v40  ;;  %4799 = vmatprep.mubr.bf16.mxu1 %v2999_v40  ;;  %v6347_v13 = vld [vmem:[%s7287_s30 + $0x400] ss:$16 sps:$4 sm:$0xff]  }
 0x364   : > { %v6377_v40 = vld [vmem:[%s7287_s30 + $0x4a0] ss:$16 sps:$4 sm:$0xff]  }
 0x365   : > { %4606 = vmatpush1.bf16.msra.mxu0 %v6257_v14  ;;  %4770 = vmatpush1.bf16.msra.mxu1 %v6260_v15  ;;  %v6350_v14 = vld [vmem:[%s7287_s30 + $0x408] ss:$16 sps:$4 sm:$0xff]   ;;  %v2998_v15 = vpack.c.bf16 %v2990_v11, %v2990_v11  ;;  %v6442_v11 = vld [vmem:[%s7287_s30 + $0x5ec] ss:$16 sps:$4 sm:$0xff]  }
 0x366   : > { %4607 = vmatprep.subr.bf16.mxu0 %v6265_v16  ;;  %4771 = vmatprep.subr.bf16.mxu1 %v6268_v17  ;;  %v6355_v16 = vld [vmem:[%s7287_s30 + $0x424] ss:$16 sps:$4 sm:$0xff]   ;;  %v6358_v17 = vld [vmem:[%s7287_s30 + $0x42c] ss:$16 sps:$4 sm:$0xff]  }
 0x369   : > { %4608 = vmatpush1.bf16.msra.mxu0 %v6263_v18  ;;  %4772 = vmatpush1.bf16.msra.mxu1 %v6266_v44  ;;  %v2993_v18 = vld [vmem:[#allocation2 + $0x28] sm:$0xff] }
 0x36a   : > { %4609 = vmatprep.subr.bf16.mxu0 %v6271_v19  ;;  %4773 = vmatprep.subr.bf16.mxu1 %v6274_v24  ;;  %v3001_v44 = vpack.c.bf16 %v2993_v18, %v2993_v18  ;;  %v6353_v19 = vld [vmem:[%s7287_s30 + $0x420] ss:$16 sps:$4 sm:$0xff]   ;;  %v6356_v24 = vld [vmem:[%s7287_s30 + $0x428] ss:$16 sps:$4 sm:$0xff]  }
 0x36b   : > { %v6446_v18 = vld [vmem:[%s7287_s30 + $0x608] ss:$16 sps:$4 sm:$0xff]  }
 0x36d   : > { %4610 = vmatpush1.bf16.msra.mxu0 %v6269_v26  ;;  %4774 = vmatpush1.bf16.msra.mxu1 %v6272_v27  ;;  %v6361_v26 = vld [vmem:[%s7287_s30 + $0x444] ss:$16 sps:$4 sm:$0xff]   ;;  %v6364_v27 = vld [vmem:[%s7287_s30 + $0x44c] ss:$16 sps:$4 sm:$0xff]  }
 0x36e   : > { %4611 = vmatprep.subr.bf16.mxu0 %v6277_v28  ;;  %4775 = vmatprep.subr.bf16.mxu1 %v6280_v30  ;;  %v6359_v28 = vld [vmem:[%s7287_s30 + $0x440] ss:$16 sps:$4 sm:$0xff]   ;;  %v6362_v30 = vld [vmem:[%s7287_s30 + $0x448] ss:$16 sps:$4 sm:$0xff]  }
 0x371   : > { %4612 = vmatpush1.bf16.msra.mxu0 %v6275_v31  ;;  %4776 = vmatpush1.bf16.msra.mxu1 %v6278_v32  ;;  %v6367_v31 = vld [vmem:[%s7287_s30 + $0x464] ss:$16 sps:$4 sm:$0xff]   ;;  %v6370_v32 = vld [vmem:[%s7287_s30 + $0x46c] ss:$16 sps:$4 sm:$0xff]  }
 0x372   : > { %4613 = vmatprep.subr.bf16.mxu0 %v6283_v33  ;;  %4777 = vmatprep.subr.bf16.mxu1 %v6286_v34  ;;  %v6365_v33 = vld [vmem:[%s7287_s30 + $0x460] ss:$16 sps:$4 sm:$0xff]   ;;  %v6368_v34 = vld [vmem:[%s7287_s30 + $0x468] ss:$16 sps:$4 sm:$0xff]  }
 0x375   : > { %4614 = vmatpush1.bf16.msra.mxu0 %v6281_v0  ;;  %4778 = vmatpush1.bf16.msra.mxu1 %v6284_v35  ;;  %v6373_v0 = vld [vmem:[%s7287_s30 + $0x484] ss:$16 sps:$4 sm:$0xff]   ;;  %v6376_v35 = vld [vmem:[%s7287_s30 + $0x48c] ss:$16 sps:$4 sm:$0xff]  }
 0x376   : > { %4615 = vmatprep.subr.bf16.mxu0 %v6289_v37  ;;  %4779 = vmatprep.subr.bf16.mxu1 %v6292_v38  ;;  %v6371_v37 = vld [vmem:[%s7287_s30 + $0x480] ss:$16 sps:$4 sm:$0xff]   ;;  %v6374_v38 = vld [vmem:[%s7287_s30 + $0x488] ss:$16 sps:$4 sm:$0xff]  }
 0x379   : > { %4616 = vmatpush1.bf16.msra.mxu0 %v6287_v46  ;;  %4780 = vmatpush1.bf16.msra.mxu1 %v6290_v21  ;;  %v6382_v46 = vld [vmem:[%s7287_s30 + $0x4ac] ss:$16 sps:$4 sm:$0xff]   ;;  %v6380_v21 = vld [vmem:[%s7287_s30 + $0x4a8] ss:$16 sps:$4 sm:$0xff]  }
 0x37a   : > { %4617 = vmatprep.subr.bf16.mxu0 %v6295_v54  ;;  %4781 = vmatprep.subr.bf16.mxu1 %v6298_v41  ;;  %v6385_v54 = vld [vmem:[%s7287_s30 + $0x4c4] ss:$16 sps:$4 sm:$0xff]   ;;  %v6388_v41 = vld [vmem:[%s7287_s30 + $0x4cc] ss:$16 sps:$4 sm:$0xff]  }
 0x37d   : > { %4618 = vmatpush1.bf16.msra.mxu0 %v6293_v29  ;;  %4782 = vmatpush1.bf16.msra.mxu1 %v6296_v42  ;;  %v6383_v29 = vld [vmem:[%s7287_s30 + $0x4c0] ss:$16 sps:$4 sm:$0xff]   ;;  %v6386_v42 = vld [vmem:[%s7287_s30 + $0x4c8] ss:$16 sps:$4 sm:$0xff]  }
 0x37e   : > { %4619 = vmatprep.subr.bf16.mxu0 %v6301_v43  ;;  %4783 = vmatprep.subr.bf16.mxu1 %v6304_v23  ;;  %v6391_v43 = vld [vmem:[%s7287_s30 + $0x4e4] ss:$16 sps:$4 sm:$0xff]   ;;  %v6394_v23 = vld [vmem:[%s7287_s30 + $0x4ec] ss:$16 sps:$4 sm:$0xff]  }
 0x381   : > { %4620 = vmatpush1.bf16.msra.mxu0 %v6299_v25  ;;  %4784 = vmatpush1.bf16.msra.mxu1 %v6302_v45  ;;  %v6389_v25 = vld [vmem:[%s7287_s30 + $0x4e0] ss:$16 sps:$4 sm:$0xff]   ;;  %v6392_v45 = vld [vmem:[%s7287_s30 + $0x4e8] ss:$16 sps:$4 sm:$0xff]  }
 0x382   : > { %4621 = vmatprep.subr.bf16.mxu0 %v6307_v47  ;;  %4785 = vmatprep.subr.bf16.mxu1 %v6310_v22  ;;  %v6397_v47 = vld [vmem:[%s7287_s30 + $0x504] ss:$16 sps:$4 sm:$0xff]   ;;  %v6400_v22 = vld [vmem:[%s7287_s30 + $0x50c] ss:$16 sps:$4 sm:$0xff]  }
 0x385   : > { %4622 = vmatpush1.bf16.msra.mxu0 %v6305_v48  ;;  %4786 = vmatpush1.bf16.msra.mxu1 %v6308_v49  ;;  %v6395_v48 = vld [vmem:[%s7287_s30 + $0x500] ss:$16 sps:$4 sm:$0xff]   ;;  %v6398_v49 = vld [vmem:[%s7287_s30 + $0x508] ss:$16 sps:$4 sm:$0xff]  }
 0x386   : > { %4623 = vmatprep.subr.bf16.mxu0 %v6313_v50  ;;  %4787 = vmatprep.subr.bf16.mxu1 %v6316_v51  ;;  %v6403_v50 = vld [vmem:[%s7287_s30 + $0x524] ss:$16 sps:$4 sm:$0xff]   ;;  %v6406_v51 = vld [vmem:[%s7287_s30 + $0x52c] ss:$16 sps:$4 sm:$0xff]  }
 0x389   : > { %4624 = vmatpush1.bf16.msra.mxu0 %v6311_v52  ;;  %4788 = vmatpush1.bf16.msra.mxu1 %v6314_v53  ;;  %v6401_v52 = vld [vmem:[%s7287_s30 + $0x520] ss:$16 sps:$4 sm:$0xff]   ;;  %v6404_v53 = vld [vmem:[%s7287_s30 + $0x528] ss:$16 sps:$4 sm:$0xff]  }
 0x38a   : > { %4625 = vmatprep.subr.bf16.mxu0 %v6319_v55  ;;  %4789 = vmatprep.subr.bf16.mxu1 %v6322_v56  ;;  %v6409_v55 = vld [vmem:[%s7287_s30 + $0x544] ss:$16 sps:$4 sm:$0xff]   ;;  %v6412_v56 = vld [vmem:[%s7287_s30 + $0x54c] ss:$16 sps:$4 sm:$0xff]  }
 0x38d   : > { %4626 = vmatpush1.bf16.msra.mxu0 %v6317_v36  ;;  %4790 = vmatpush1.bf16.msra.mxu1 %v6320_v57  ;;  %v6407_v36 = vld [vmem:[%s7287_s30 + $0x540] ss:$16 sps:$4 sm:$0xff]   ;;  %v6410_v57 = vld [vmem:[%s7287_s30 + $0x548] ss:$16 sps:$4 sm:$0xff]  }
 0x38e   : > { %4627 = vmatprep.subr.bf16.mxu0 %v6325_v58  ;;  %4791 = vmatprep.subr.bf16.mxu1 %v6328_v59  ;;  %v6415_v58 = vld [vmem:[%s7287_s30 + $0x564] ss:$16 sps:$4 sm:$0xff]   ;;  %v6418_v59 = vld [vmem:[%s7287_s30 + $0x56c] ss:$16 sps:$4 sm:$0xff]  }
 0x391   : > { %4628 = vmatpush1.bf16.msra.mxu0 %v6323_v60  ;;  %4792 = vmatpush1.bf16.msra.mxu1 %v6326_v61  ;;  %v6413_v60 = vld [vmem:[%s7287_s30 + $0x560] ss:$16 sps:$4 sm:$0xff]   ;;  %v6416_v61 = vld [vmem:[%s7287_s30 + $0x568] ss:$16 sps:$4 sm:$0xff]  }
 0x392   : > { %4629 = vmatprep.subr.bf16.mxu0 %v6331_v62  ;;  %4793 = vmatprep.subr.bf16.mxu1 %v6334_v63  ;;  %v6421_v62 = vld [vmem:[%s7287_s30 + $0x584] ss:$16 sps:$4 sm:$0xff]   ;;  %v6424_v63 = vld [vmem:[%s7287_s30 + $0x58c] ss:$16 sps:$4 sm:$0xff]  }
 0x395   : > { %4630 = vmatpush1.bf16.msra.mxu0 %v6329_v1  ;;  %4794 = vmatpush1.bf16.msra.mxu1 %v6332_v2  ;;  %v6419_v1 = vld [vmem:[%s7287_s30 + $0x580] ss:$16 sps:$4 sm:$0xff]   ;;  %v6422_v2 = vld [vmem:[%s7287_s30 + $0x588] ss:$16 sps:$4 sm:$0xff]  }
 0x396   : > { %4631 = vmatprep.subr.bf16.mxu0 %v6337_v3  ;;  %4795 = vmatprep.subr.bf16.mxu1 %v6340_v20  ;;  %v6427_v3 = vld [vmem:[%s7287_s30 + $0x5a4] ss:$16 sps:$4 sm:$0xff]   ;;  %v6430_v20 = vld [vmem:[%s7287_s30 + $0x5ac] ss:$16 sps:$4 sm:$0xff]  }
 0x399   : > { %4632 = vmatpush1.bf16.msra.mxu0 %v6335_v4  ;;  %4796 = vmatpush1.bf16.msra.mxu1 %v6338_v5  ;;  %v6425_v4 = vld [vmem:[%s7287_s30 + $0x5a0] ss:$16 sps:$4 sm:$0xff]   ;;  %v6428_v5 = vld [vmem:[%s7287_s30 + $0x5a8] ss:$16 sps:$4 sm:$0xff]  }
 0x39a   : > { %4633 = vmatprep.subr.bf16.mxu0 %v6343_v6  ;;  %4797 = vmatprep.subr.bf16.mxu1 %v6346_v7  ;;  %v6433_v6 = vld [vmem:[%s7287_s30 + $0x5c4] ss:$16 sps:$4 sm:$0xff]   ;;  %v6436_v7 = vld [vmem:[%s7287_s30 + $0x5cc] ss:$16 sps:$4 sm:$0xff]  }
 0x39d   : > { %4634 = vmatpush1.bf16.msra.mxu0 %v6341_v8  ;;  %4798 = vmatpush1.bf16.msra.mxu1 %v6344_v9  ;;  %v6431_v8 = vld [vmem:[%s7287_s30 + $0x5c0] ss:$16 sps:$4 sm:$0xff]   ;;  %v6434_v9 = vld [vmem:[%s7287_s30 + $0x5c8] ss:$16 sps:$4 sm:$0xff]  }
 0x39e   : > { %4644 = vmatprep.subr.bf16.mxu0 %v6349_v10  ;;  %4808 = vmatprep.subr.bf16.mxu1 %v6352_v12  ;;  %v6439_v10 = vld [vmem:[%s7287_s30 + $0x5e4] ss:$16 sps:$4 sm:$0xff]   ;;  %v6437_v12 = vld [vmem:[%s7287_s30 + $0x5e0] ss:$16 sps:$4 sm:$0xff]  }
 0x3a0   : > { %4636 = vmatmul.mubr.bf16.vlgmr.msra.gmra.mrb[0].mxu0 %v2998_v15  ;;  %4800 = vmatmul.mubr.bf16.vlgmr.msra.gmra.mrb[0].mxu1 %v2998_v15  ;;  %v2992_v15 = vld [vmem:[#allocation2 + $0x20] sm:$0xff] }
 0x3a1   : > { %4645 = vmatpush1.bf16.msra.mxu0 %v6347_v13  ;;  %4809 = vmatpush1.bf16.msra.mxu1 %v6350_v14  ;;  %v6440_v13 = vld [vmem:[%s7287_s30 + $0x5e8] ss:$16 sps:$4 sm:$0xff]   ;;  %v6445_v14 = vld [vmem:[%s7287_s30 + $0x604] ss:$16 sps:$4 sm:$0xff]  }
 0x3a2   : > { %4646 = vmatprep.subr.bf16.mxu0 %v6355_v16  ;;  %4810 = vmatprep.subr.bf16.mxu1 %v6358_v17  ;;  %v6448_v16 = vld [vmem:[%s7287_s30 + $0x60c] ss:$16 sps:$4 sm:$0xff]   ;;  %v6443_v17 = vld [vmem:[%s7287_s30 + $0x600] ss:$16 sps:$4 sm:$0xff]  }
 0x3a3   : > { %4676 = vmatprep.mubr.bf16.mxu0 %v3001_v44  ;;  %4840 = vmatprep.mubr.bf16.mxu1 %v3001_v44  ;;  %v3000_v44 = vpack.c.bf16 %v2992_v15, %v2992_v15  ;;  %v6538_v15 = vld [vmem:[%s7287_s30 + $0x7ec] ss:$16 sps:$4 sm:$0xff]  }
 0x3a5   : > { %4647 = vmatpush1.bf16.msra.mxu0 %v6353_v19  ;;  %4811 = vmatpush1.bf16.msra.mxu1 %v6356_v24  ;;  %v2995_v19 = vld [vmem:[#allocation2 + $0x38] sm:$0xff]  ;;  %v6451_v24 = vld [vmem:[%s7287_s30 + $0x624] ss:$16 sps:$4 sm:$0xff]  }
 0x3a6   : > { %4648 = vmatprep.subr.bf16.mxu0 %v6361_v26  ;;  %4812 = vmatprep.subr.bf16.mxu1 %v6364_v27  ;;  %v6454_v26 = vld [vmem:[%s7287_s30 + $0x62c] ss:$16 sps:$4 sm:$0xff]   ;;  %v3003_v27 = vpack.c.bf16 %v2995_v19, %v2995_v19 }
 0x3a7   : > { %v6544_v19 = vld [vmem:[%s7285_s18 + $0x104] ss:$8 sps:$4 sm:$0xff]  }
 0x3a9   : > { %4649 = vmatpush1.bf16.msra.mxu0 %v6359_v28  ;;  %4813 = vmatpush1.bf16.msra.mxu1 %v6362_v30  ;;  %v6449_v28 = vld [vmem:[%s7287_s30 + $0x620] ss:$16 sps:$4 sm:$0xff]   ;;  %v6452_v30 = vld [vmem:[%s7287_s30 + $0x628] ss:$16 sps:$4 sm:$0xff]  }
 0x3aa   : > { %4650 = vmatprep.subr.bf16.mxu0 %v6367_v31  ;;  %4814 = vmatprep.subr.bf16.mxu1 %v6370_v32  ;;  %v6457_v31 = vld [vmem:[%s7287_s30 + $0x644] ss:$16 sps:$4 sm:$0xff]   ;;  %v6460_v32 = vld [vmem:[%s7287_s30 + $0x64c] ss:$16 sps:$4 sm:$0xff]  }
 0x3ad   : > { %4651 = vmatpush1.bf16.msra.mxu0 %v6365_v33  ;;  %4815 = vmatpush1.bf16.msra.mxu1 %v6368_v34  ;;  %v6455_v33 = vld [vmem:[%s7287_s30 + $0x640] ss:$16 sps:$4 sm:$0xff]   ;;  %v6458_v34 = vld [vmem:[%s7287_s30 + $0x648] ss:$16 sps:$4 sm:$0xff]  }
 0x3ae   : > { %4652 = vmatprep.subr.bf16.mxu0 %v6373_v0  ;;  %4816 = vmatprep.subr.bf16.mxu1 %v6376_v35  ;;  %v6463_v0 = vld [vmem:[%s7287_s30 + $0x664] ss:$16 sps:$4 sm:$0xff]   ;;  %v6466_v35 = vld [vmem:[%s7287_s30 + $0x66c] ss:$16 sps:$4 sm:$0xff]  }
 0x3b1   : > { %4653 = vmatpush1.bf16.msra.mxu0 %v6371_v37  ;;  %4817 = vmatpush1.bf16.msra.mxu1 %v6374_v38  ;;  %v6461_v37 = vld [vmem:[%s7287_s30 + $0x660] ss:$16 sps:$4 sm:$0xff]   ;;  %v6464_v38 = vld [vmem:[%s7287_s30 + $0x668] ss:$16 sps:$4 sm:$0xff]  }
 0x3b2   : > { %4654 = vmatprep.subr.bf16.mxu0 %v6379_v39  ;;  %4818 = vmatprep.subr.bf16.mxu1 %v6382_v46  ;;  %v6469_v39 = vld [vmem:[%s7287_s30 + $0x684] ss:$16 sps:$4 sm:$0xff]   ;;  %v6472_v46 = vld [vmem:[%s7287_s30 + $0x68c] ss:$16 sps:$4 sm:$0xff]  }
 0x3b5   : > { %4655 = vmatpush1.bf16.msra.mxu0 %v6377_v40  ;;  %4819 = vmatpush1.bf16.msra.mxu1 %v6380_v21  ;;  %v6467_v40 = vld [vmem:[%s7287_s30 + $0x680] ss:$16 sps:$4 sm:$0xff]   ;;  %v6470_v21 = vld [vmem:[%s7287_s30 + $0x688] ss:$16 sps:$4 sm:$0xff]  }
 0x3b6   : > { %4656 = vmatprep.subr.bf16.mxu0 %v6385_v54  ;;  %4820 = vmatprep.subr.bf16.mxu1 %v6388_v41  ;;  %v6475_v54 = vld [vmem:[%s7287_s30 + $0x6a4] ss:$16 sps:$4 sm:$0xff]   ;;  %v6478_v41 = vld [vmem:[%s7287_s30 + $0x6ac] ss:$16 sps:$4 sm:$0xff]  }
 0x3b9   : > { %4657 = vmatpush1.bf16.msra.mxu0 %v6383_v29  ;;  %4821 = vmatpush1.bf16.msra.mxu1 %v6386_v42  ;;  %v6473_v29 = vld [vmem:[%s7287_s30 + $0x6a0] ss:$16 sps:$4 sm:$0xff]   ;;  %v6476_v42 = vld [vmem:[%s7287_s30 + $0x6a8] ss:$16 sps:$4 sm:$0xff]  }
 0x3ba   : > { %4658 = vmatprep.subr.bf16.mxu0 %v6391_v43  ;;  %4822 = vmatprep.subr.bf16.mxu1 %v6394_v23  ;;  %v6481_v43 = vld [vmem:[%s7287_s30 + $0x6c4] ss:$16 sps:$4 sm:$0xff]   ;;  %v6484_v23 = vld [vmem:[%s7287_s30 + $0x6cc] ss:$16 sps:$4 sm:$0xff]  }
 0x3bd   : > { %4659 = vmatpush1.bf16.msra.mxu0 %v6389_v25  ;;  %4823 = vmatpush1.bf16.msra.mxu1 %v6392_v45  ;;  %v6479_v25 = vld [vmem:[%s7287_s30 + $0x6c0] ss:$16 sps:$4 sm:$0xff]   ;;  %v6482_v45 = vld [vmem:[%s7287_s30 + $0x6c8] ss:$16 sps:$4 sm:$0xff]  }
 0x3be   : > { %4660 = vmatprep.subr.bf16.mxu0 %v6397_v47  ;;  %4824 = vmatprep.subr.bf16.mxu1 %v6400_v22  ;;  %v6487_v47 = vld [vmem:[%s7287_s30 + $0x6e4] ss:$16 sps:$4 sm:$0xff]   ;;  %v6490_v22 = vld [vmem:[%s7287_s30 + $0x6ec] ss:$16 sps:$4 sm:$0xff]  }
 0x3c1   : > { %4661 = vmatpush1.bf16.msra.mxu0 %v6395_v48  ;;  %4825 = vmatpush1.bf16.msra.mxu1 %v6398_v49  ;;  %v6485_v48 = vld [vmem:[%s7287_s30 + $0x6e0] ss:$16 sps:$4 sm:$0xff]   ;;  %v6488_v49 = vld [vmem:[%s7287_s30 + $0x6e8] ss:$16 sps:$4 sm:$0xff]  }
 0x3c2   : > { %4662 = vmatprep.subr.bf16.mxu0 %v6403_v50  ;;  %4826 = vmatprep.subr.bf16.mxu1 %v6406_v51  ;;  %v6493_v50 = vld [vmem:[%s7287_s30 + $0x704] ss:$16 sps:$4 sm:$0xff]   ;;  %v6496_v51 = vld [vmem:[%s7287_s30 + $0x70c] ss:$16 sps:$4 sm:$0xff]  }
 0x3c5   : > { %4663 = vmatpush1.bf16.msra.mxu0 %v6401_v52  ;;  %4827 = vmatpush1.bf16.msra.mxu1 %v6404_v53  ;;  %v6491_v52 = vld [vmem:[%s7287_s30 + $0x700] ss:$16 sps:$4 sm:$0xff]   ;;  %v6494_v53 = vld [vmem:[%s7287_s30 + $0x708] ss:$16 sps:$4 sm:$0xff]  }
 0x3c6   : > { %4664 = vmatprep.subr.bf16.mxu0 %v6409_v55  ;;  %4828 = vmatprep.subr.bf16.mxu1 %v6412_v56  ;;  %v6499_v55 = vld [vmem:[%s7287_s30 + $0x724] ss:$16 sps:$4 sm:$0xff]   ;;  %v6502_v56 = vld [vmem:[%s7287_s30 + $0x72c] ss:$16 sps:$4 sm:$0xff]  }
 0x3c9   : > { %4665 = vmatpush1.bf16.msra.mxu0 %v6407_v36  ;;  %4829 = vmatpush1.bf16.msra.mxu1 %v6410_v57  ;;  %v6497_v36 = vld [vmem:[%s7287_s30 + $0x720] ss:$16 sps:$4 sm:$0xff]   ;;  %v6500_v57 = vld [vmem:[%s7287_s30 + $0x728] ss:$16 sps:$4 sm:$0xff]  }
 0x3ca   : > { %4666 = vmatprep.subr.bf16.mxu0 %v6415_v58  ;;  %4830 = vmatprep.subr.bf16.mxu1 %v6418_v59  ;;  %v6505_v58 = vld [vmem:[%s7287_s30 + $0x744] ss:$16 sps:$4 sm:$0xff]   ;;  %v6508_v59 = vld [vmem:[%s7287_s30 + $0x74c] ss:$16 sps:$4 sm:$0xff]  }
 0x3cd   : > { %4667 = vmatpush1.bf16.msra.mxu0 %v6413_v60  ;;  %4831 = vmatpush1.bf16.msra.mxu1 %v6416_v61  ;;  %v6503_v60 = vld [vmem:[%s7287_s30 + $0x740] ss:$16 sps:$4 sm:$0xff]   ;;  %v6506_v61 = vld [vmem:[%s7287_s30 + $0x748] ss:$16 sps:$4 sm:$0xff]  }
 0x3ce   : > { %4668 = vmatprep.subr.bf16.mxu0 %v6421_v62  ;;  %4832 = vmatprep.subr.bf16.mxu1 %v6424_v63  ;;  %v6511_v62 = vld [vmem:[%s7287_s30 + $0x764] ss:$16 sps:$4 sm:$0xff]   ;;  %v6514_v63 = vld [vmem:[%s7287_s30 + $0x76c] ss:$16 sps:$4 sm:$0xff]  }
 0x3d1   : > { %4669 = vmatpush1.bf16.msra.mxu0 %v6419_v1  ;;  %4833 = vmatpush1.bf16.msra.mxu1 %v6422_v2  ;;  %v6509_v1 = vld [vmem:[%s7287_s30 + $0x760] ss:$16 sps:$4 sm:$0xff]   ;;  %v6512_v2 = vld [vmem:[%s7287_s30 + $0x768] ss:$16 sps:$4 sm:$0xff]  }
 0x3d2   : > { %4670 = vmatprep.subr.bf16.mxu0 %v6427_v3  ;;  %4834 = vmatprep.subr.bf16.mxu1 %v6430_v20  ;;  %v6517_v3 = vld [vmem:[%s7287_s30 + $0x784] ss:$16 sps:$4 sm:$0xff]   ;;  %v6520_v20 = vld [vmem:[%s7287_s30 + $0x78c] ss:$16 sps:$4 sm:$0xff]  }
 0x3d5   : > { %4671 = vmatpush1.bf16.msra.mxu0 %v6425_v4  ;;  %4835 = vmatpush1.bf16.msra.mxu1 %v6428_v5  ;;  %v6515_v4 = vld [vmem:[%s7287_s30 + $0x780] ss:$16 sps:$4 sm:$0xff]   ;;  %v6518_v5 = vld [vmem:[%s7287_s30 + $0x788] ss:$16 sps:$4 sm:$0xff]  }
 0x3d6   : > { %4672 = vmatprep.subr.bf16.mxu0 %v6433_v6  ;;  %4836 = vmatprep.subr.bf16.mxu1 %v6436_v7  ;;  %v6523_v6 = vld [vmem:[%s7287_s30 + $0x7a4] ss:$16 sps:$4 sm:$0xff]   ;;  %v6526_v7 = vld [vmem:[%s7287_s30 + $0x7ac] ss:$16 sps:$4 sm:$0xff]  }
 0x3d9   : > { %4673 = vmatpush1.bf16.msra.mxu0 %v6431_v8  ;;  %4837 = vmatpush1.bf16.msra.mxu1 %v6434_v9  ;;  %v6521_v8 = vld [vmem:[%s7287_s30 + $0x7a0] ss:$16 sps:$4 sm:$0xff]   ;;  %v6524_v9 = vld [vmem:[%s7287_s30 + $0x7a8] ss:$16 sps:$4 sm:$0xff]  }
 0x3da   : > { %4674 = vmatprep.subr.bf16.mxu0 %v6439_v10  ;;  %4838 = vmatprep.subr.bf16.mxu1 %v6442_v11  ;;  %v6529_v10 = vld [vmem:[%s7287_s30 + $0x7c4] ss:$16 sps:$4 sm:$0xff]   ;;  %v6532_v11 = vld [vmem:[%s7287_s30 + $0x7cc] ss:$16 sps:$4 sm:$0xff]  }
 0x3dd   : > { %4675 = vmatpush1.bf16.msra.mxu0 %v6437_v12  ;;  %4839 = vmatpush1.bf16.msra.mxu1 %v6440_v13  ;;  %v6527_v12 = vld [vmem:[%s7287_s30 + $0x7c0] ss:$16 sps:$4 sm:$0xff]   ;;  %v6530_v13 = vld [vmem:[%s7287_s30 + $0x7c8] ss:$16 sps:$4 sm:$0xff]  }
 0x3de   : > { %4685 = vmatprep.subr.bf16.mxu0 %v6445_v14  ;;  %4849 = vmatprep.subr.bf16.mxu1 %v6448_v16  ;;  %v6535_v14 = vld [vmem:[%s7287_s30 + $0x7e4] ss:$16 sps:$4 sm:$0xff]   ;;  %v6533_v16 = vld [vmem:[%s7287_s30 + $0x7e0] ss:$16 sps:$4 sm:$0xff]  }
 0x3e0   : > { %4677 = vmatmul.mubr.bf16.vlgmr.msra.gmra.mrb[0].mxu0 %v3000_v44  ;;  %4841 = vmatmul.mubr.bf16.vlgmr.msra.gmra.mrb[0].mxu1 %v3000_v44  ;;  %v6541_v44 = vld [vmem:[%s7285_s18 + $0x4] ss:$8 sps:$4 sm:$0xff]  }
 0x3e1   : > { %4686 = vmatpush1.bf16.msra.mxu0 %v6443_v17  ;;  %4850 = vmatpush1.bf16.msra.mxu1 %v6446_v18  ;;  %v6536_v17 = vld [vmem:[%s7287_s30 + $0x7e8] ss:$16 sps:$4 sm:$0xff]   ;;  %v2994_v18 = vld [vmem:[#allocation2 + $0x30] sm:$0xff] }
 0x3e2   : > { %4687 = vmatprep.subr.bf16.mxu0 %v6451_v24  ;;  %4851 = vmatprep.subr.bf16.mxu1 %v6454_v26  ;;  %v3002_v24 = vpack.c.bf16 %v2994_v18, %v2994_v18  ;;  %v6539_v26 = vld [vmem:[%s7285_s18] ss:$8 sps:$4 sm:$0xff]   ;;  %v6629_v18 = vld [vmem:[%s7285_s18 + $0xf0] ss:$8 sps:$4 sm:$0xff]  }
 0x3e3   : > { %4717 = vmatprep.mubr.bf16.mxu0 %v3003_v27  ;;  %4881 = vmatprep.mubr.bf16.mxu1 %v3003_v27  ;;  %v6542_v27 = vld [vmem:[%s7285_s18 + $0x100] ss:$8 sps:$4 sm:$0xff]  }
 0x3e5   : > { %4688 = vmatpush1.bf16.msra.mxu0 %v6449_v28  ;;  %4852 = vmatpush1.bf16.msra.mxu1 %v6452_v30  ;;  %v6547_v28 = vld [vmem:[%s7285_s18 + $0x14] ss:$8 sps:$4 sm:$0xff]  }
 0x3e6   : > { %4689 = vmatprep.subr.bf16.mxu0 %v6457_v31  ;;  %4853 = vmatprep.subr.bf16.mxu1 %v6460_v32  ;;  %v6550_v30 = vld [vmem:[%s7285_s18 + $0x114] ss:$8 sps:$4 sm:$0xff]   ;;  %v6545_v31 = vld [vmem:[%s7285_s18 + $0x10] ss:$8 sps:$4 sm:$0xff]  }
 0x3e7   : > { %v6548_v32 = vld [vmem:[%s7285_s18 + $0x110] ss:$8 sps:$4 sm:$0xff]  }
 0x3e9   : > { %4690 = vmatpush1.bf16.msra.mxu0 %v6455_v33  ;;  %4854 = vmatpush1.bf16.msra.mxu1 %v6458_v34  ;;  %v6553_v33 = vld [vmem:[%s7285_s18 + $0x24] ss:$8 sps:$4 sm:$0xff]  }
 0x3ea   : > { %4691 = vmatprep.subr.bf16.mxu0 %v6463_v0  ;;  %4855 = vmatprep.subr.bf16.mxu1 %v6466_v35  ;;  %v6556_v34 = vld [vmem:[%s7285_s18 + $0x124] ss:$8 sps:$4 sm:$0xff]   ;;  %v6551_v0 = vld [vmem:[%s7285_s18 + $0x20] ss:$8 sps:$4 sm:$0xff]  }
 0x3eb   : > { %v6554_v35 = vld [vmem:[%s7285_s18 + $0x120] ss:$8 sps:$4 sm:$0xff]  }
 0x3ed   : > { %4692 = vmatpush1.bf16.msra.mxu0 %v6461_v37  ;;  %4856 = vmatpush1.bf16.msra.mxu1 %v6464_v38  ;;  %v6559_v37 = vld [vmem:[%s7285_s18 + $0x34] ss:$8 sps:$4 sm:$0xff]  }
 0x3ee   : > { %4693 = vmatprep.subr.bf16.mxu0 %v6469_v39  ;;  %4857 = vmatprep.subr.bf16.mxu1 %v6472_v46  ;;  %v6562_v38 = vld [vmem:[%s7285_s18 + $0x134] ss:$8 sps:$4 sm:$0xff]   ;;  %v6557_v39 = vld [vmem:[%s7285_s18 + $0x30] ss:$8 sps:$4 sm:$0xff]  }
 0x3ef   : > { %v6560_v46 = vld [vmem:[%s7285_s18 + $0x130] ss:$8 sps:$4 sm:$0xff]  }
 0x3f1   : > { %4694 = vmatpush1.bf16.msra.mxu0 %v6467_v40  ;;  %4858 = vmatpush1.bf16.msra.mxu1 %v6470_v21  ;;  %v6565_v40 = vld [vmem:[%s7285_s18 + $0x44] ss:$8 sps:$4 sm:$0xff]  }
 0x3f2   : > { %4695 = vmatprep.subr.bf16.mxu0 %v6475_v54  ;;  %4859 = vmatprep.subr.bf16.mxu1 %v6478_v41  ;;  %v6568_v21 = vld [vmem:[%s7285_s18 + $0x144] ss:$8 sps:$4 sm:$0xff]   ;;  %v6563_v54 = vld [vmem:[%s7285_s18 + $0x40] ss:$8 sps:$4 sm:$0xff]  }
 0x3f3   : > { %v6566_v41 = vld [vmem:[%s7285_s18 + $0x140] ss:$8 sps:$4 sm:$0xff]  }
 0x3f5   : > { %4696 = vmatpush1.bf16.msra.mxu0 %v6473_v29  ;;  %4860 = vmatpush1.bf16.msra.mxu1 %v6476_v42  ;;  %v6571_v29 = vld [vmem:[%s7285_s18 + $0x54] ss:$8 sps:$4 sm:$0xff]  }
 0x3f6   : > { %4697 = vmatprep.subr.bf16.mxu0 %v6481_v43  ;;  %4861 = vmatprep.subr.bf16.mxu1 %v6484_v23  ;;  %v6574_v42 = vld [vmem:[%s7285_s18 + $0x154] ss:$8 sps:$4 sm:$0xff]   ;;  %v6569_v43 = vld [vmem:[%s7285_s18 + $0x50] ss:$8 sps:$4 sm:$0xff]  }
 0x3f7   : > { %v6572_v23 = vld [vmem:[%s7285_s18 + $0x150] ss:$8 sps:$4 sm:$0xff]  }
 0x3f9   : > { %4698 = vmatpush1.bf16.msra.mxu0 %v6479_v25  ;;  %4862 = vmatpush1.bf16.msra.mxu1 %v6482_v45  ;;  %v6577_v25 = vld [vmem:[%s7285_s18 + $0x64] ss:$8 sps:$4 sm:$0xff]  }
 0x3fa   : > { %4699 = vmatprep.subr.bf16.mxu0 %v6487_v47  ;;  %4863 = vmatprep.subr.bf16.mxu1 %v6490_v22  ;;  %v6580_v45 = vld [vmem:[%s7285_s18 + $0x164] ss:$8 sps:$4 sm:$0xff]   ;;  %v6575_v47 = vld [vmem:[%s7285_s18 + $0x60] ss:$8 sps:$4 sm:$0xff]  }
 0x3fb   : > { %v6578_v22 = vld [vmem:[%s7285_s18 + $0x160] ss:$8 sps:$4 sm:$0xff]  }
 0x3fd   : > { %4700 = vmatpush1.bf16.msra.mxu0 %v6485_v48  ;;  %4864 = vmatpush1.bf16.msra.mxu1 %v6488_v49  ;;  %v6583_v48 = vld [vmem:[%s7285_s18 + $0x74] ss:$8 sps:$4 sm:$0xff]  }
 0x3fe   : > { %4701 = vmatprep.subr.bf16.mxu0 %v6493_v50  ;;  %4865 = vmatprep.subr.bf16.mxu1 %v6496_v51  ;;  %v6586_v49 = vld [vmem:[%s7285_s18 + $0x174] ss:$8 sps:$4 sm:$0xff]   ;;  %v6581_v50 = vld [vmem:[%s7285_s18 + $0x70] ss:$8 sps:$4 sm:$0xff]  }
 0x3ff   : > { %v6584_v51 = vld [vmem:[%s7285_s18 + $0x170] ss:$8 sps:$4 sm:$0xff]  }
 0x401   : > { %4702 = vmatpush1.bf16.msra.mxu0 %v6491_v52  ;;  %4866 = vmatpush1.bf16.msra.mxu1 %v6494_v53  ;;  %v6589_v52 = vld [vmem:[%s7285_s18 + $0x84] ss:$8 sps:$4 sm:$0xff]  }
 0x402   : > { %4703 = vmatprep.subr.bf16.mxu0 %v6499_v55  ;;  %4867 = vmatprep.subr.bf16.mxu1 %v6502_v56  ;;  %v6592_v53 = vld [vmem:[%s7285_s18 + $0x184] ss:$8 sps:$4 sm:$0xff]   ;;  %v6587_v55 = vld [vmem:[%s7285_s18 + $0x80] ss:$8 sps:$4 sm:$0xff]  }
 0x403   : > { %v6590_v56 = vld [vmem:[%s7285_s18 + $0x180] ss:$8 sps:$4 sm:$0xff]  }
 0x405   : > { %4704 = vmatpush1.bf16.msra.mxu0 %v6497_v36  ;;  %4868 = vmatpush1.bf16.msra.mxu1 %v6500_v57  ;;  %v6595_v36 = vld [vmem:[%s7285_s18 + $0x94] ss:$8 sps:$4 sm:$0xff]  }
 0x406   : > { %4705 = vmatprep.subr.bf16.mxu0 %v6505_v58  ;;  %4869 = vmatprep.subr.bf16.mxu1 %v6508_v59  ;;  %v6598_v57 = vld [vmem:[%s7285_s18 + $0x194] ss:$8 sps:$4 sm:$0xff]   ;;  %v6593_v58 = vld [vmem:[%s7285_s18 + $0x90] ss:$8 sps:$4 sm:$0xff]  }
 0x407   : > { %v6596_v59 = vld [vmem:[%s7285_s18 + $0x190] ss:$8 sps:$4 sm:$0xff]  }
 0x409   : > { %4706 = vmatpush1.bf16.msra.mxu0 %v6503_v60  ;;  %4870 = vmatpush1.bf16.msra.mxu1 %v6506_v61  ;;  %v6601_v60 = vld [vmem:[%s7285_s18 + $0xa4] ss:$8 sps:$4 sm:$0xff]  }
 0x40a   : > { %4707 = vmatprep.subr.bf16.mxu0 %v6511_v62  ;;  %4871 = vmatprep.subr.bf16.mxu1 %v6514_v63  ;;  %v6604_v61 = vld [vmem:[%s7285_s18 + $0x1a4] ss:$8 sps:$4 sm:$0xff]   ;;  %v6599_v62 = vld [vmem:[%s7285_s18 + $0xa0] ss:$8 sps:$4 sm:$0xff]  }
 0x40b   : > { %v6602_v63 = vld [vmem:[%s7285_s18 + $0x1a0] ss:$8 sps:$4 sm:$0xff]  }
 0x40d   : > { %4708 = vmatpush1.bf16.msra.mxu0 %v6509_v1  ;;  %4872 = vmatpush1.bf16.msra.mxu1 %v6512_v2  ;;  %v6607_v1 = vld [vmem:[%s7285_s18 + $0xb4] ss:$8 sps:$4 sm:$0xff]  }
 0x40e   : > { %4709 = vmatprep.subr.bf16.mxu0 %v6517_v3  ;;  %4873 = vmatprep.subr.bf16.mxu1 %v6520_v20  ;;  %v6610_v2 = vld [vmem:[%s7285_s18 + $0x1b4] ss:$8 sps:$4 sm:$0xff]   ;;  %v6605_v3 = vld [vmem:[%s7285_s18 + $0xb0] ss:$8 sps:$4 sm:$0xff]  }
 0x40f   : > { %v6608_v20 = vld [vmem:[%s7285_s18 + $0x1b0] ss:$8 sps:$4 sm:$0xff]  }
 0x411   : > { %4710 = vmatpush1.bf16.msra.mxu0 %v6515_v4  ;;  %4874 = vmatpush1.bf16.msra.mxu1 %v6518_v5  ;;  %v6613_v4 = vld [vmem:[%s7285_s18 + $0xc4] ss:$8 sps:$4 sm:$0xff]  }
 0x412   : > { %4711 = vmatprep.subr.bf16.mxu0 %v6523_v6  ;;  %4875 = vmatprep.subr.bf16.mxu1 %v6526_v7  ;;  %v6616_v5 = vld [vmem:[%s7285_s18 + $0x1c4] ss:$8 sps:$4 sm:$0xff]   ;;  %v6611_v6 = vld [vmem:[%s7285_s18 + $0xc0] ss:$8 sps:$4 sm:$0xff]  }
 0x413   : > { %v6614_v7 = vld [vmem:[%s7285_s18 + $0x1c0] ss:$8 sps:$4 sm:$0xff]  }
 0x415   : > { %4712 = vmatpush1.bf16.msra.mxu0 %v6521_v8  ;;  %4876 = vmatpush1.bf16.msra.mxu1 %v6524_v9  ;;  %v6619_v8 = vld [vmem:[%s7285_s18 + $0xd4] ss:$8 sps:$4 sm:$0xff]  }
 0x416   : > { %4713 = vmatprep.subr.bf16.mxu0 %v6529_v10  ;;  %4877 = vmatprep.subr.bf16.mxu1 %v6532_v11  ;;  %v6622_v9 = vld [vmem:[%s7285_s18 + $0x1d4] ss:$8 sps:$4 sm:$0xff]   ;;  %v6617_v10 = vld [vmem:[%s7285_s18 + $0xd0] ss:$8 sps:$4 sm:$0xff]  }
 0x417   : > { %v6620_v11 = vld [vmem:[%s7285_s18 + $0x1d0] ss:$8 sps:$4 sm:$0xff]  }
 0x419   : > { %4714 = vmatpush1.bf16.msra.mxu0 %v6527_v12  ;;  %4878 = vmatpush1.bf16.msra.mxu1 %v6530_v13  ;;  %v6625_v12 = vld [vmem:[%s7285_s18 + $0xe4] ss:$8 sps:$4 sm:$0xff]  }
 0x41a   : > { %4715 = vmatprep.subr.bf16.mxu0 %v6535_v14  ;;  %4879 = vmatprep.subr.bf16.mxu1 %v6538_v15  ;;  %v6628_v13 = vld [vmem:[%s7285_s18 + $0x1e4] ss:$8 sps:$4 sm:$0xff]   ;;  %v6623_v14 = vld [vmem:[%s7285_s18 + $0xe0] ss:$8 sps:$4 sm:$0xff]  }
 0x41b   : > { %v6626_v15 = vld [vmem:[%s7285_s18 + $0x1e0] ss:$8 sps:$4 sm:$0xff]  }
 0x41d   : > { %4716 = vmatpush1.bf16.msra.mxu0 %v6533_v16  ;;  %4880 = vmatpush1.bf16.msra.mxu1 %v6536_v17  ;;  %v6631_v16 = vld [vmem:[%s7285_s18 + $0xf4] ss:$8 sps:$4 sm:$0xff]  }
 0x41e   : > { %5284 = vmatprep.subr.bf16.mxu0 %v6541_v44  ;;  %5325 = vmatprep.subr.bf16.mxu1 %v6544_v19  ;;  %v6634_v17 = vld [vmem:[%s7285_s18 + $0x1f4] ss:$8 sps:$4 sm:$0xff]   ;;  %v6632_v44 = vld [vmem:[%s7285_s18 + $0x1f0] ss:$8 sps:$4 sm:$0xff]   ;;  %v3262_v19 = vlaneseq }
 0x420   : > { %4718 = vmatmul.mubr.bf16.vlgmr.msra.gmra.mrb[0].mxu0 %v3002_v24  ;;  %4882 = vmatmul.mubr.bf16.vlgmr.msra.gmra.mrb[0].mxu1 %v3002_v24  ;;  %v3263_v24 = vshrl.u32 %v3262_v19, 7 }
 0x421   : > { %5285 = vmatpush1.bf16.msra.mxu0 %v6539_v26  ;;  %5326 = vmatpush1.bf16.msra.mxu1 %v6542_v27 }
 0x422   : > { %5286 = vmatprep.subr.bf16.mxu0 %v6547_v28  ;;  %5327 = vmatprep.subr.bf16.mxu1 %v6550_v30  ;;  %v3264_v26 = vsub.s32 0, %v3263_v24  ;;  %v3272_v27 = vsub.s32 2, %v3263_v24  ;;  %v3260_v28 = vld [vmem:[%s884_s14] sm:$0xf]  ;;  %v3268_v30 = vsub.s32 1, %v3263_v24 }
 0x425   : > { %5287 = vmatpush1.bf16.msra.mxu0 %v6545_v31  ;;  %5328 = vmatpush1.bf16.msra.mxu1 %v6548_v32  ;;  %v3276_v31 = vsub.s32 3, %v3263_v24  ;;  %v3265_v32 = vrot.slane %v3260_v28, %v3264_v26 }
 0x426   : > { %5288 = vmatprep.subr.bf16.mxu0 %v6553_v33  ;;  %5329 = vmatprep.subr.bf16.mxu1 %v6556_v34  ;;  %v3273_v33 = vrot.slane %v3260_v28, %v3272_v27  ;;  %v3269_v34 = vrot.slane %v3260_v28, %v3268_v30 }
 0x429   : > { %5289 = vmatpush1.bf16.msra.mxu0 %v6551_v0  ;;  %5330 = vmatpush1.bf16.msra.mxu1 %v6554_v35  ;;  %v3277_v0 = vrot.slane %v3260_v28, %v3276_v31 }
 0x42a   : > { %5290 = vmatprep.subr.bf16.mxu0 %v6559_v37  ;;  %5331 = vmatprep.subr.bf16.mxu1 %v6562_v38 }
 0x42d   : > { %5291 = vmatpush1.bf16.msra.mxu0 %v6557_v39  ;;  %5332 = vmatpush1.bf16.msra.mxu1 %v6560_v46 }
 0x42e   : > { %5292 = vmatprep.subr.bf16.mxu0 %v6565_v40  ;;  %5333 = vmatprep.subr.bf16.mxu1 %v6568_v21 }
 0x431   : > { %5293 = vmatpush1.bf16.msra.mxu0 %v6563_v54  ;;  %5334 = vmatpush1.bf16.msra.mxu1 %v6566_v41 }
 0x432   : > { %5294 = vmatprep.subr.bf16.mxu0 %v6571_v29  ;;  %5335 = vmatprep.subr.bf16.mxu1 %v6574_v42 }
 0x435   : > { %5295 = vmatpush1.bf16.msra.mxu0 %v6569_v43  ;;  %5336 = vmatpush1.bf16.msra.mxu1 %v6572_v23 }
 0x436   : > { %5296 = vmatprep.subr.bf16.mxu0 %v6577_v25  ;;  %5337 = vmatprep.subr.bf16.mxu1 %v6580_v45 }
 0x439   : > { %5297 = vmatpush1.bf16.msra.mxu0 %v6575_v47  ;;  %5338 = vmatpush1.bf16.msra.mxu1 %v6578_v22 }
 0x43a   : > { %5298 = vmatprep.subr.bf16.mxu0 %v6583_v48  ;;  %5339 = vmatprep.subr.bf16.mxu1 %v6586_v49 }
 0x43d   : > { %5299 = vmatpush1.bf16.msra.mxu0 %v6581_v50  ;;  %5340 = vmatpush1.bf16.msra.mxu1 %v6584_v51 }
 0x43e   : > { %5300 = vmatprep.subr.bf16.mxu0 %v6589_v52  ;;  %5341 = vmatprep.subr.bf16.mxu1 %v6592_v53  ;;  %v4894_v52 = vld [vmem:[#allocation3] sm:$0xff] }
 0x441   : > { %5301 = vmatpush1.bf16.msra.mxu0 %v6587_v55  ;;  %5342 = vmatpush1.bf16.msra.mxu1 %v6590_v56 }
 0x442   : > { %5302 = vmatprep.subr.bf16.mxu0 %v6595_v36  ;;  %5343 = vmatprep.subr.bf16.mxu1 %v6598_v57  ;;  %v4895_v36 = vld [vmem:[#allocation3 + $0x8] sm:$0xff] }
 0x445   : > { %5303 = vmatpush1.bf16.msra.mxu0 %v6593_v58  ;;  %5344 = vmatpush1.bf16.msra.mxu1 %v6596_v59 }
 0x446   : > { %5304 = vmatprep.subr.bf16.mxu0 %v6601_v60  ;;  %5345 = vmatprep.subr.bf16.mxu1 %v6604_v61 }
 0x449   : > { %5305 = vmatpush1.bf16.msra.mxu0 %v6599_v62  ;;  %5346 = vmatpush1.bf16.msra.mxu1 %v6602_v63 }
 0x44a   : > { %5306 = vmatprep.subr.bf16.mxu0 %v6607_v1  ;;  %5347 = vmatprep.subr.bf16.mxu1 %v6610_v2 }
 0x44d   : > { %5307 = vmatpush1.bf16.msra.mxu0 %v6605_v3  ;;  %5348 = vmatpush1.bf16.msra.mxu1 %v6608_v20  ;;  %v5376_v3 = vld [vmem:[%s8505_s8] sm:$0x3] (!%p6058_p11) }
 0x44e   : > { %5308 = vmatprep.subr.bf16.mxu0 %v6613_v4  ;;  %5349 = vmatprep.subr.bf16.mxu1 %v6616_v5  ;;  %v5381_v4 = vrot.slane (!%p6058_p11), %v5376_v3, %v3264_v26  ;;  %v5385_v5 = vrot.slane (!%p6058_p11), %v5376_v3, %v3268_v30 }
 0x451   : > { %5309 = vmatpush1.bf16.msra.mxu0 %v6611_v6  ;;  %5350 = vmatpush1.bf16.msra.mxu1 %v6614_v7 }
 0x452   : > { %5310 = vmatprep.subr.bf16.mxu0 %v6619_v8  ;;  %5351 = vmatprep.subr.bf16.mxu1 %v6622_v9 }
 0x455   : > { %5311 = vmatpush1.bf16.msra.mxu0 %v6617_v10  ;;  %5352 = vmatpush1.bf16.msra.mxu1 %v6620_v11 }
 0x456   : > { %5312 = vmatprep.subr.bf16.mxu0 %v6625_v12  ;;  %5353 = vmatprep.subr.bf16.mxu1 %v6628_v13 }
 0x459   : > { %5313 = vmatpush1.bf16.msra.mxu0 %v6623_v14  ;;  %5354 = vmatpush1.bf16.msra.mxu1 %v6626_v15 }
 0x45a   : > { %5314 = vmatprep.subr.bf16.mxu0 %v6631_v16  ;;  %5355 = vmatprep.subr.bf16.mxu1 %v6634_v17 }
 0x45d   : > { %5315 = vmatpush1.bf16.msra.mxu0 %v6629_v18  ;;  %5356 = vmatpush1.bf16.msra.mxu1 %v6632_v44 }
 0x4f3   : > { %v4719_v35 = vpop.f32.mrb[0].mxu0  ;;  %v4883_v37 = vpop.f32.mrb[0].mxu1 }
 0x4f4   : > { %v6089_v38 = vadd.f32 %v4719_v35, %v3265_v32  ;;  %v6091_v39 = vadd.f32 %v4883_v37, %v3273_v33  ;;  %v4721_v46 = vpop.f32.mrb[1].mxu0  ;;  %v4885_v40 = vpop.f32.mrb[1].mxu1 }
 0x4f5   : > { %v6090_v21 = vadd.f32 %v4721_v46, %v3269_v34  ;;  %v6092_v54 = vadd.f32 %v4885_v40, %v3277_v0  ;;  %v4723_v41 = vpop.f32.mrb[2].mxu0  ;;  %v4887_v29 = vpop.f32.mrb[2].mxu1 }
 0x4f6   : > { %v4890_v42 = vmax.f32 %v6089_v38, 0.0  ;;  %v4892_v43 = vmax.f32 %v6091_v39, 0.0  ;;  %v4724_v23 = vpop.f32.mrb[3].mxu0  ;;  %v4888_v25 = vpop.f32.mrb[3].mxu1 }
 0x4f7   : > { %v4891_v45 = vmax.f32 %v6090_v21, 0.0  ;;  %v4893_v47 = vmax.f32 %v6092_v54, 0.0 }
 0x4f8   : > { %v4896_v49 = vpack.c.bf16 %v4890_v42, %v4890_v42  ;;  %v4898_v50 = vpack.c.bf16 %v4892_v43, %v4892_v43 }
 0x4f9   : > { %v4897_v22 = vpack.c.bf16 %v4891_v45, %v4891_v45  ;;  %v4899_v48 = vpack.c.bf16 %v4893_v47, %v4893_v47 }
 0x4fb   : > { %5316 = vmatprep.mubr.bf16.mxu0 %v4897_v22  ;;  %5357 = vmatprep.mubr.bf16.mxu1 %v4899_v48 }
 0x4fc   : > { %5317 = vmatmul.mubr.bf16.vlgmr.msra.gmra.mrb[4].mxu0 %v4896_v49  ;;  %5358 = vmatmul.mubr.bf16.vlgmr.msra.gmra.mrb[4].mxu1 %v4898_v50 }
 0x5cf   : > { %v5318_v51 = vpop.f32.mrb[4].mxu0  ;;  %v5359_v53 = vpop.f32.mrb[4].mxu1  ;;  %5373 = sbr.rel (%p6058_p11) target bundleno = 1530 (0x5fa), region = 87 }
 0x5d0   : > { %v5360_v55 = vadd.f32 %v5359_v53, %v5318_v51  ;;  %v5320_v56 = vpop.f32.mrb[5].mxu0  ;;  %v5361_v57 = vpop.f32.mrb[5].mxu1 }
 0x5d1   : > { %v5362_v58 = vadd.f32 %v5361_v57, %v5320_v56  ;;  %v5322_v59 = vpop.f32.mrb[6].mxu0  ;;  %v5363_v60 = vpop.f32.mrb[6].mxu1 }
 0x5d2   : > { %v5366_v61 = vadd.f32 %v5360_v55, %v4894_v52  ;;  %v5323_v62 = vpop.f32.mrb[7].mxu0  ;;  %v5364_v63 = vpop.f32.mrb[7].mxu1 }
 0x5d3   : > { %v5367_v1 = vadd.f32 %v5362_v58, %v4895_v36 }
 0x5d4   : > { %5368 = vst [vmem:[#allocation3] sm:$0xff] %v5366_v61 }
 0x5d5   : > { %5369 = vst [vmem:[#allocation3 + $0x8] sm:$0xff] %v5367_v1 }
 0x5db   : > { %v5374_v2 = vld [vmem:[#allocation3] sm:$0xff] }
 0x5dc   : > { %v5375_v20 = vld [vmem:[#allocation3 + $0x8] sm:$0xff]  ;;  %v5388_v6 = vadd.f32 %v5381_v4, %v5374_v2 }
 0x5dd   : > { %v5389_v7 = vadd.f32 %v5385_v5, %v5375_v20 }
 0x5de   : > { %v6059_v8 = vmul.f32 -1.442695, %v5388_v6 }
 0x5df   : > { %v6060_v9 = vmul.f32 -1.442695, %v5389_v7 }
 0x5e0   : > { %6635 = vpow2.f32 %v6059_v8 }
 0x5e1   : > { %6637 = vpow2.f32 %v6060_v9 }
 0x5ea   : > { %v6636_v10 = vpop.eup %6635 }
 0x5eb   : > { %v6638_v11 = vpop.eup %6637  ;;  %v5396_v12 = vadd.f32 1.0, %v6636_v10 }
 0x5ec   : > { %v5397_v13 = vadd.f32 1.0, %v6638_v11 }
 0x5ed   : > { %6639 = vrcp.f32 %v5396_v12 }
 0x5ee   : > { %6641 = vrcp.f32 %v5397_v13 }
 0x5f7   : > { %v6640_v14 = vpop.eup %6639 }
 0x5f8   : > { %v6642_v15 = vpop.eup %6641  ;;  %5402 = vst [vmem:[%s8506_s9] sm:$0xff] %v6640_v14 }
 0x5f9   : > { %5403 = vst [vmem:[%s8506_s9 + $0x8] sm:$0xff] %v6642_v15 }
 0x5fa PF: > { %p16_p12 = scmp.ge.s32.totalorder %s6738_s13, 6   ;;  %s8507_s30 = smov %s6661_s10 }
 0x5fb   : > { %s8508_s10 = smov %s6747_s16  ;;  %s8509_s11 = smov %s6738_s13 }
 0x5fc   :  { %18 = sbr.rel (!%p16_p12) target bundleno = 2 (0x2), region = 124 }

</bundles_post_ra>
